<compile_context>
chip_gen: v7x
topology: tpu7x:2x2x1
jax: 0.10.0
libtpu: 0.0.40
codegen_flags: <defaults>
</compile_context>

<pallas_src>
import math
import functools

import jax
import jax.numpy as jnp
from jax.experimental import pallas as pl
from jax.experimental.pallas import tpu as pltpu

EPS = 1e-8

# Set to jnp.bfloat16 on v6e/v7x for ~2x MXU throughput on the matmuls
# (accumulation stays f32 via preferred_element_type).  None keeps the
# reference f32 numerics exactly (also best for v5e's f32-only VPU).
_MXU_INPUT_DTYPE = None


def _mx(a):
    return a if _MXU_INPUT_DTYPE is None else a.astype(_MXU_INPUT_DTYPE)


def _gln_stats(y):
    """Single-pass global mean / rsqrt(var + eps) over a (C, L) tile."""
    n = y.shape[0] * y.shape[1]
    mean = jnp.sum(y) / n
    var = jnp.maximum(jnp.sum(y * y) / n - mean * mean, 0.0)
    return mean, jax.lax.rsqrt(var + EPS)


def _prelu(z, alpha):
    return jnp.where(z >= 0.0, z, alpha * z)


# ----------------------------------------------------------------------------
# Fused Pallas kernels (one batch element per grid step)
# ----------------------------------------------------------------------------
def _conv_gln_prelu_kernel(x_ref, w_ref, b_ref, g_ref, bb_ref, a_ref, o_ref):
    # 1x1 conv + bias -> gLN -> PReLU          (ConvNormAct mode 'CNA', k=1)
    y = jnp.dot(_mx(w_ref[...]), _mx(x_ref[0]),
                preferred_element_type=jnp.float32) + b_ref[...]
    mean, rstd = _gln_stats(y)
    z = g_ref[...] * (y - mean) * rstd + bb_ref[...]
    o_ref[0] = _prelu(z, a_ref[0]).astype(o_ref.dtype)


def _gln_conv_kernel(x_ref, g_ref, bb_ref, w_ref, b_ref, o_ref):
    # gLN -> 1x1 conv + bias                   (ln -> bottleneck)
    x = x_ref[0]
    mean, rstd = _gln_stats(x)
    xn = g_ref[...] * (x - mean) * rstd + bb_ref[...]
    o_ref[0] = (jnp.dot(_mx(w_ref[...]), _mx(xn),
                        preferred_element_type=jnp.float32)
                + b_ref[...]).astype(o_ref.dtype)


def _dw_gln_kernel(K, stride, Lout, x_ref, w_ref, b_ref, g_ref, bb_ref, o_ref):
    # depthwise conv (computed directly at the strided output rate via the
    # phase-split input) + bias -> gLN         (ConvNormAct mode 'CN')
    # x_ref: (1, stride, C, Lph)   phase[p][c, t] == x_padded[c, t*stride + p]
    C = w_ref.shape[0]
    x = x_ref[0]                                    # (stride, C, Lph)
    acc = jnp.zeros((C, Lout), jnp.float32)
    for k in range(K):
        p, o = k % stride, k // stride
        acc = acc + w_ref[:, k:k + 1] * x[p, :, o:o + Lout]
    y = acc + b_ref[...]
    mean, rstd = _gln_stats(y)
    o_ref[0] = (g_ref[...] * (y - mean) * rstd + bb_ref[...]).astype(o_ref.dtype)


def _sum_gln_prelu_kernel(n_in, *refs):
    # (y1 + y2 [+ y3]) -> gLN -> PReLU         (top_down, ConvNormAct 'NA')
    x_refs = refs[:n_in]
    g_ref, bb_ref, a_ref, o_ref = refs[n_in:]
    y = x_refs[0][0]
    for r in x_refs[1:]:
        y = y + r[0]
    mean, rstd = _gln_stats(y)
    z = g_ref[...] * (y - mean) * rstd + bb_ref[...]
    o_ref[0] = _prelu(z, a_ref[0]).astype(o_ref.dtype)


def _concat_conv_gln_prelu_kernel(n_in, *refs):
    # channel-concat -> 1x1 conv + bias -> gLN -> PReLU   (top_down_skip)
    x_refs = refs[:n_in]
    w_ref, b_ref, g_ref, bb_ref, a_ref, o_ref = refs[n_in:]
    xs = jnp.concatenate([r[0] for r in x_refs], axis=0)
    y = jnp.dot(_mx(w_ref[...]), _mx(xs),
                preferred_element_type=jnp.float32) + b_ref[...]
    mean, rstd = _gln_stats(y)
    z = g_ref[...] * (y - mean) * rstd + bb_ref[...]
    o_ref[0] = _prelu(z, a_ref[0]).astype(o_ref.dtype)


def _add_scale_prelu_kernel(m_ref, x_ref, w_ref, b_ref, a_ref, o_ref):
    # (mixture + x) -> depthwise 1x1 conv (per-channel scale+bias) -> PReLU
    z = (m_ref[0] + x_ref[0]) * w_ref[...] + b_ref[...]
    o_ref[0] = _prelu(z, a_ref[0]).astype(o_ref.dtype)


def _mask_head_kernel(S, N, x_ref, w_ref, b_ref, a_ref, wf_ref, o_ref):
    # PReLU -> mask conv + bias -> ReLU -> multiply by encoder features
    x = _prelu(x_ref[0], a_ref[0])
    y = jnp.dot(_mx(w_ref[...]), _mx(x),
                preferred_element_type=jnp.float32) + b_ref[...]
    y = jnp.maximum(y, 0.0)
    wf = wf_ref[0]                                   # (N, L) encoder features
    parts = [y[s * N:(s + 1) * N, :] * wf for s in range(S)]
    o_ref[0] = jnp.concatenate(parts, axis=0).astype(o_ref.dtype)


def _conv_bias_residual_kernel(x_ref, w_ref, b_ref, r_ref, o_ref):
    # res_conv (1x1 conv + bias) + residual add
    y = (jnp.dot(_mx(w_ref[...]), _mx(x_ref[0]),
                 preferred_element_type=jnp.float32)
         + b_ref[...] + r_ref[0])
    o_ref[0] = y.astype(o_ref.dtype)


def _matmul_kernel(x_ref, w_ref, o_ref):
    # plain y = W @ x  (encoder / decoder im2col matmuls, no bias)
    o_ref[0] = jnp.dot(_mx(w_ref[...]), _mx(x_ref[0]),
                       preferred_element_type=jnp.float32).astype(o_ref.dtype)


# ----------------------------------------------------------------------------
# Wrappers (BlockSpecs / grids)
# ----------------------------------------------------------------------------
_PAR1 = pltpu.CompilerParams(dimension_semantics=("parallel",))


def _bcl(c, l):
    return pl.BlockSpec((1, c, l), lambda i: (i, 0, 0))


def _col(c):
    return pl.BlockSpec((c, 1), lambda i: (0, 0))


def _smem():
    # scalar PReLU alpha lives in SMEM (no VMEM tile per grid step)
    return pl.BlockSpec(memory_space=pltpu.MemorySpace.SMEM)


def conv_gln_prelu(x, w, b, gamma, beta, alpha):
    B, Cin, L = x.shape
    Cout = w.shape[0]
    return pl.pallas_call(
        _conv_gln_prelu_kernel,
        out_shape=jax.ShapeDtypeStruct((B, Cout, L), jnp.float32),
        grid=(B,),
        in_specs=[_bcl(Cin, L),
                  pl.BlockSpec((Cout, Cin), lambda i: (0, 0)),
                  _col(Cout), _col(Cout), _col(Cout), _smem()],
        out_specs=_bcl(Cout, L),
        compiler_params=_PAR1,
    )(x, w, b.reshape(Cout, 1), gamma.reshape(Cout, 1), beta.reshape(Cout, 1),
      alpha.reshape(1))


def gln_conv(x, gamma, beta, w, b):
    B, Cin, L = x.shape
    Cout = w.shape[0]
    return pl.pallas_call(
        _gln_conv_kernel,
        out_shape=jax.ShapeDtypeStruct((B, Cout, L), jnp.float32),
        grid=(B,),
        in_specs=[_bcl(Cin, L), _col(Cin), _col(Cin),
                  pl.BlockSpec((Cout, Cin), lambda i: (0, 0)), _col(Cout)],
        out_specs=_bcl(Cout, L),
        compiler_params=_PAR1,
    )(x, gamma.reshape(Cin, 1), beta.reshape(Cin, 1), w, b.reshape(Cout, 1))


def dw_gln(x, w, b, gamma, beta, stride, padding):
    """Depthwise Conv1d (groups == channels) fused with gLN.  The strided conv
    is computed directly: the padded input is split into `stride` phases in
    glue (pure layout), and the kernel accumulates only the Lout real outputs."""
    B, C, L = x.shape
    K = w.shape[1]
    Lout = (L + 2 * padding - K) // stride + 1
    Lph = (K - 1) // stride + Lout
    need = stride * Lph
    xp = jnp.pad(x, ((0, 0), (0, 0), (padding, need - L - padding)))
    if stride == 1:
        phases = xp[:, None]                          # (B, 1, C, Lph), no copy
    else:
        phases = xp.reshape(B, C, Lph, stride).transpose(0, 3, 1, 2)
    return pl.pallas_call(
        functools.partial(_dw_gln_kernel, K, stride, Lout),
        out_shape=jax.ShapeDtypeStruct((B, C, Lout), jnp.float32),
        grid=(B,),
        in_specs=[pl.BlockSpec((1, stride, C, Lph), lambda i: (i, 0, 0, 0)),
                  pl.BlockSpec((C, K), lambda i: (0, 0)),
                  _col(C), _col(C), _col(C)],
        out_specs=_bcl(C, Lout),
        compiler_params=_PAR1,
    )(phases, w, b.reshape(C, 1), gamma.reshape(C, 1), beta.reshape(C, 1))


def sum_gln_prelu(xs, gamma, beta, alpha):
    n = len(xs)
    B, C, L = xs[0].shape
    in_specs = [_bcl(C, L) for _ in range(n)] + [_col(C), _col(C), _smem()]
    return pl.pallas_call(
        functools.partial(_sum_gln_prelu_kernel, n),
        out_shape=jax.ShapeDtypeStruct((B, C, L), jnp.float32),
        grid=(B,),
        in_specs=in_specs,
        out_specs=_bcl(C, L),
        compiler_params=_PAR1,
    )(*xs, gamma.reshape(C, 1), beta.reshape(C, 1), alpha.reshape(1))


def concat_conv_gln_prelu(xs, w, b, gamma, beta, alpha):
    n = len(xs)
    B, C, L = xs[0].shape
    Cout = w.shape[0]
    in_specs = ([_bcl(C, L) for _ in range(n)]
                + [pl.BlockSpec((Cout, n * C), lambda i: (0, 0)),
                   _col(Cout), _col(Cout), _col(Cout), _smem()])
    return pl.pallas_call(
        functools.partial(_concat_conv_gln_prelu_kernel, n),
        out_shape=jax.ShapeDtypeStruct((B, Cout, L), jnp.float32),
        grid=(B,),
        in_specs=in_specs,
        out_specs=_bcl(Cout, L),
        compiler_params=_PAR1,
    )(*xs, w, b.reshape(Cout, 1), gamma.reshape(Cout, 1), beta.reshape(Cout, 1),
      alpha.reshape(1))


def add_scale_prelu(mixture, x, w, b, alpha):
    B, C, L = x.shape
    return pl.pallas_call(
        _add_scale_prelu_kernel,
        out_shape=jax.ShapeDtypeStruct((B, C, L), jnp.float32),
        grid=(B,),
        in_specs=[_bcl(C, L), _bcl(C, L), _col(C), _col(C), _smem()],
        out_specs=_bcl(C, L),
        compiler_params=_PAR1,
    )(mixture, x, w.reshape(C, 1), b.reshape(C, 1), alpha.reshape(1))


def mask_head(x, w, b, alpha, w_feat, num_sources, num_basis):
    B, Cb, L = x.shape
    Cout = num_sources * num_basis
    return pl.pallas_call(
        functools.partial(_mask_head_kernel, num_sources, num_basis),
        out_shape=jax.ShapeDtypeStruct((B, Cout, L), jnp.float32),
        grid=(B,),
        in_specs=[_bcl(Cb, L),
                  pl.BlockSpec((Cout, Cb), lambda i: (0, 0)),
                  _col(Cout), _smem(), _bcl(num_basis, L)],
        out_specs=_bcl(Cout, L),
        compiler_params=_PAR1,
    )(x, w, b.reshape(Cout, 1), alpha.reshape(1), w_feat)


def conv_bias_residual(x, w, b, residual):
    B, Cin, L = x.shape
    Cout = w.shape[0]
    return pl.pallas_call(
        _conv_bias_residual_kernel,
        out_shape=jax.ShapeDtypeStruct((B, Cout, L), jnp.float32),
        grid=(B,),
        in_specs=[_bcl(Cin, L),
                  pl.BlockSpec((Cout, Cin), lambda i: (0, 0)),
                  _col(Cout), _bcl(Cout, L)],
        out_specs=_bcl(Cout, L),
        compiler_params=_PAR1,
    )(x, w, b.reshape(Cout, 1), residual)


def _pick_tile_l(L, cin, cout):
    # lane-dense tiles (multiple of 128) bounded so a single operand tile
    # stays ~2 MiB (safe for v7x's 64 MiB VMEM with double buffering).
    if L <= 512:
        return L
    tl = (2 * 1024 * 1024) // (4 * max(cin, cout, 1))
    tl = max(128, (tl // 128) * 128)
    return min(L, tl)


def matmul_nobias(x, w):
    """y[b] = W @ x[b]; 2-D grid (batch x L-tiles) so long sequences get
    lane-dense blocks and both grid axes run in parallel (megacore / 2 TCs)."""
    B, Cin, L = x.shape
    Cout = w.shape[0]
    tl = _pick_tile_l(L, Cin, Cout)
    return pl.pallas_call(
        _matmul_kernel,
        out_shape=jax.ShapeDtypeStruct((B, Cout, L), jnp.float32),
        grid=(B, pl.cdiv(L, tl)),
        in_specs=[pl.BlockSpec((1, Cin, tl), lambda i, j: (i, 0, j)),
                  pl.BlockSpec((Cout, Cin), lambda i, j: (0, 0))],
        out_specs=pl.BlockSpec((1, Cout, tl), lambda i, j: (i, 0, j)),
        compiler_params=pltpu.CompilerParams(
            dimension_semantics=("parallel", "parallel")),
    )(x, w)


# ----------------------------------------------------------------------------
# Encoder / decoder / upsample (layout glue + Pallas matmuls)
# ----------------------------------------------------------------------------
def encoder_conv(wav, w_enc, K, stride, padding):
    # wav: [B, 1, T], w_enc: [N, 1, K]   (Conv1d, no bias)
    B, _, T = wav.shape
    xp = jnp.pad(wav[:, 0, :], ((0, 0), (padding, padding)))
    Lout = (T + 2 * padding - K) // stride + 1
    # glue im2col: patches[b, k, t] = xp[b, t*stride + k]
    patches = jnp.stack(
        [xp[:, k:k + stride * (Lout - 1) + 1:stride] for k in range(K)], axis=1)
    return matmul_nobias(patches, w_enc[:, 0, :])


def decoder_convtranspose(x, w_dec, K, stride, padding, output_padding):
    # x: [B, Ci, L], w_dec: [Ci, Co, K]  (ConvTranspose1d layout, no bias)
    # TODO(synk): a polyphase decomposition (one matmul per output phase) would
    # skip the ~1/stride structurally-zero rows of this im2col matrix.
    B, Ci, L = x.shape
    _, Co, _ = w_dec.shape
    Lup = (L - 1) * stride + 1
    x_up = jnp.zeros((B, Ci, Lup), jnp.float32).at[:, :, ::stride].set(x)
    pad_l = K - 1 - padding
    pad_r = K - 1 - padding + output_padding
    xp = jnp.pad(x_up, ((0, 0), (0, 0), (pad_l, pad_r)))
    Lout = (L - 1) * stride - 2 * padding + K + output_padding
    patches = jnp.stack([xp[:, :, k:k + Lout] for k in range(K)],
                        axis=2).reshape(B, Ci * K, Lout)
    w_flip = jnp.flip(w_dec, axis=2)                 # correlate w/ flipped kernel
    w_mat = jnp.transpose(w_flip, (1, 0, 2)).reshape(Co, Ci * K)
    return matmul_nobias(patches, w_mat)


def upsample_nearest(x, target_len):
    """F.interpolate(mode='nearest'); integer ratios (the only case here when
    the input length is lcm-padded) use a cheap repeat instead of a gather."""
    L_in = x.shape[-1]
    if target_len == L_in:
        return x
    if target_len % L_in == 0:
        return jnp.repeat(x, target_len // L_in, axis=-1)
    idx = (jnp.arange(target_len) * L_in) // target_len     # fallback gather
    return jnp.take(x, idx, axis=-1)


# ----------------------------------------------------------------------------
# Model forward (composition of fused Pallas kernels)
# ----------------------------------------------------------------------------
def afrcnn_block_forward(p, x, states):
    """AFRCNN_Block.forward; x: [B, out_channels, L]."""
    residual = x
    f = p["first"]
    out1 = conv_gln_prelu(x, f["w"], f["b"], f["gln"]["gamma"],
                          f["gln"]["beta"], f["alpha"])
    outputs = []
    cur = out1
    for k in range(states):
        stride = 1 if k == 0 else 2
        bu = p["bottom_up"][k]
        cur = dw_gln(cur, bu["w"], bu["b"], bu["gln"]["gamma"],
                     bu["gln"]["beta"], stride=stride, padding=2)
        outputs.append(cur)

    depth = states  # TODO(synk): self.depth is never defined in the PyTorch code; assume depth == states.
    top_down_f = []
    for i in range(states):
        Li = outputs[i].shape[-1]
        terms = []
        if i - 1 >= 0:
            fd = p["fuse_down"][i - 1]
            terms.append(dw_gln(outputs[i - 1], fd["w"], fd["b"],
                                fd["gln"]["gamma"], fd["gln"]["beta"],
                                stride=2, padding=2))
        terms.append(outputs[i])
        if i + 1 < depth:
            terms.append(upsample_nearest(outputs[i + 1], Li))
        td = p["top_down"][i]
        top_down_f.append(sum_gln_prelu(terms, td["gln"]["gamma"],
                                        td["gln"]["beta"], td["alpha"]))

    L0 = top_down_f[0].shape[-1]
    tds = [top_down_f[0]] + [upsample_nearest(t, L0) for t in top_down_f[1:]]
    sk = p["skip"]
    concat_out = concat_conv_gln_prelu(tds, sk["w"], sk["b"],
                                       sk["gln"]["gamma"], sk["gln"]["beta"],
                                       sk["alpha"])
    return conv_bias_residual(concat_out, p["res"]["w"], p["res"]["b"], residual)


def recurrent_forward(p, x, states, num_iter):
    """Recurrent.forward, mode='SC'."""
    mixture = x
    cur = x
    for i in range(num_iter):
        if i == 0:
            cur = afrcnn_block_forward(p["block"], cur, states)
        else:
            cb = p["concat_block"]
            z = add_scale_prelu(mixture, cur, cb["w"], cb["b"], cb["alpha"])
            cur = afrcnn_block_forward(p["block"], z, states)
    return cur


def afrcnn_forward(params, cfg, input_wav):
    """AFRCNN.forward; input_wav: [T], [B, T] or [B, 1, T]."""
    was_one_d = input_wav.ndim == 1
    if was_one_d:
        input_wav = input_wav[None]
    if input_wav.ndim == 2:
        input_wav = input_wav[:, None, :]
    T = input_wav.shape[-1]
    x = input_wav
    rem = T % cfg["lcm"]
    if rem:
        x = jnp.pad(x, ((0, 0), (0, 0), (0, cfg["lcm"] - rem)))  # pad_to_appropriate_length

    ek = cfg["enc_kernel_size"]
    x_enc = encoder_conv(x, params["encoder_w"], ek, ek // 2, ek // 2)
    w = x_enc                                                    # w = x.clone()
    # TODO(synk): select_norm is not provided in the PyTorch source; standard
    # Conv-TasNet style gLN (mean/var over channel+time, eps=1e-8) is used.
    xb = gln_conv(x_enc, params["ln"]["gamma"], params["ln"]["beta"],
                  params["bottleneck"]["w"], params["bottleneck"]["b"])
    xs = recurrent_forward(params["sm"], xb, cfg["states"], cfg["num_blocks"])
    mn = params["mask_net"]
    masked = mask_head(xs, mn["w"], mn["b"], mn["alpha"], w,
                       cfg["num_sources"], cfg["enc_num_basis"])
    est = decoder_convtranspose(masked, params["decoder_w"],
                                ek, ek // 2, ek // 2, ek // 2 - 1)
    est = est[..., :T]                                           # remove_trailing_zeros
    if was_one_d:
        est = est[0]
    return est


# ----------------------------------------------------------------------------
# Deterministic parameter initialization (synthetic weights)
# ----------------------------------------------------------------------------
def init_params(key, cfg):
    N = cfg["in_channels"]
    Bc = cfg["out_channels"]
    S = cfg["states"]
    Eb = cfg["enc_num_basis"]
    K = cfg["enc_kernel_size"]
    Ns = cfg["num_sources"]
    keys = iter(jax.random.split(key, 64))

    def rnd(shape, scale=0.1):
        return jax.random.normal(next(keys), shape, jnp.float32) * scale

    def gln_p(c):
        return {"gamma": jnp.ones((c,), jnp.float32),
                "beta": jnp.zeros((c,), jnp.float32)}

    # nn.PReLU() default: single shared parameter 0.25
    alpha = jnp.full((1,), 0.25, jnp.float32)

    block = {
        "first": {"w": rnd((N, Bc)), "b": rnd((N,), 0.05),
                  "gln": gln_p(N), "alpha": alpha},
        "bottom_up": [{"w": rnd((N, 5)), "b": rnd((N,), 0.05), "gln": gln_p(N)}
                      for _ in range(S)],
        "fuse_down": [{"w": rnd((N, 5)), "b": rnd((N,), 0.05), "gln": gln_p(N)}
                      for _ in range(S - 1)],
        "top_down": [{"gln": gln_p(N), "alpha": alpha} for _ in range(S)],
        "skip": {"w": rnd((N, N * S)), "b": rnd((N,), 0.05),
                 "gln": gln_p(N), "alpha": alpha},
        "res": {"w": rnd((Bc, N)), "b": rnd((Bc,), 0.05)},
    }
    return {
        "encoder_w": rnd((Eb, 1, K)),
        "ln": gln_p(Eb),
        "bottleneck": {"w": rnd((Bc, Eb)), "b": rnd((Bc,), 0.05)},
        "sm": {"block": block,
               "concat_block": {"w": rnd((Bc, 1)), "b": rnd((Bc,), 0.05),
                                "alpha": alpha}},
        "mask_net": {"alpha": alpha, "w": rnd((Ns * Eb, Bc)),
                     "b": rnd((Ns * Eb,), 0.05)},
        "decoder_w": rnd((Ns * Eb, Ns, K)),
    }


if __name__ == "__main__":
    # Small synthetic config consistent with the module's constructor semantics.
    cfg = dict(out_channels=16, in_channels=32, num_blocks=2, states=2,
               enc_kernel_size=5, enc_num_basis=32, num_sources=2)
    cfg["lcm"] = abs(cfg["enc_kernel_size"] // 2 * 2 ** cfg["states"]) // math.gcd(
        cfg["enc_kernel_size"] // 2, 2 ** cfg["states"])

    key = jax.random.PRNGKey(0)
    pkey, xkey = jax.random.split(key)
    params = init_params(pkey, cfg)
    input_wav = jax.random.normal(xkey, (2, 64), jnp.float32)   # [B, T]

    fwd = jax.jit(lambda p, w: afrcnn_forward(p, cfg, w))
    out = fwd(params, input_wav)
    out = jax.block_until_ready(out)
    assert out.shape == (2, cfg["num_sources"], 64), out.shape
    assert bool(jnp.all(jnp.isfinite(out)))
    print("KERNEL_OK")
</pallas_src>

<mosaic_0001>
module attributes {stable_mosaic.version = 11 : i64} {
  func.func @_matmul_kernel(%arg0: i32, %arg1: i32, %arg2: memref<1x5x32xf32, #tpu.memory_space<vmem>>, %arg3: memref<32x5xf32, #tpu.memory_space<vmem>>, %arg4: memref<1x32x32xf32, #tpu.memory_space<vmem>>) attributes {dimension_semantics = [#tpu.dimension_semantics<parallel>, #tpu.dimension_semantics<parallel>], iteration_bounds = array<i64: 2, 1>, scalar_prefetch = 0 : i64, scratch_operands = 0 : i64, tpu.core_type = #tpu.core_type<tc>, window_params = [{transform_indices = @transform_0, window_bounds = array<i64: 1, 5, 32>}, {pipeline_mode = #tpu.pipeline_mode<synchronous>, transform_indices = @transform_1, window_bounds = array<i64: 32, 5>}, {transform_indices = @transform_2, window_bounds = array<i64: 1, 32, 32>}]} {
    %c0 = arith.constant 0 : index
    %c0_0 = arith.constant 0 : index
    %0 = vector.load %arg3[%c0, %c0_0] : memref<32x5xf32, #tpu.memory_space<vmem>>, vector<32x5xf32>
    %c0_1 = arith.constant 0 : index
    %c0_2 = arith.constant 0 : index
    %c0_3 = arith.constant 0 : index
    %1 = vector.load %arg2[%c0_1, %c0_2, %c0_3] : memref<1x5x32xf32, #tpu.memory_space<vmem>>, vector<1x5x32xf32>
    %2 = vector.shape_cast %1 : vector<1x5x32xf32> to vector<5x32xf32>
    %cst = arith.constant dense<0.000000e+00> : vector<32x32xf32>
    %3 = tpu.matmul %0, %2, %cst {dimension_numbers = #tpu.dot_dimension_numbers<[1], [0], [0], [1], [0, 0, 1, 1], [], []>} : vector<32x5xf32>, vector<5x32xf32>, vector<32x32xf32> -> vector<32x32xf32>
    %c0_4 = arith.constant 0 : index
    %c0_5 = arith.constant 0 : index
    %c0_6 = arith.constant 0 : index
    %4 = vector.load %arg4[%c0_4, %c0_5, %c0_6] : memref<1x32x32xf32, #tpu.memory_space<vmem>>, vector<1x32x32xf32>
    %5 = vector.shape_cast %4 : vector<1x32x32xf32> to vector<32x32xf32>
    %6 = vector.shape_cast %3 : vector<32x32xf32> to vector<1x32x32xf32>
    tpu.vector_store %arg4[%c0_4, %c0_5, %c0_6], %6 {strides = array<i32>} : memref<1x32x32xf32, #tpu.memory_space<vmem>>, vector<1x32x32xf32>,
    return
  }
  func.func @transform_0(%arg0: i32, %arg1: i32) -> (i32, i32, i32) {
    %c0_i32 = arith.constant 0 : i32
    %c0_i32_0 = arith.constant 0 : i32
    return %arg0, %c0_i32, %arg1 : i32, i32, i32
  }
  func.func @transform_1(%arg0: i32, %arg1: i32) -> (i32, i32) {
    %c0_i32 = arith.constant 0 : i32
    %c0_i32_0 = arith.constant 0 : i32
    %c0_i32_1 = arith.constant 0 : i32
    return %c0_i32, %c0_i32_0 : i32, i32
  }
  func.func @transform_2(%arg0: i32, %arg1: i32) -> (i32, i32, i32) {
    %c0_i32 = arith.constant 0 : i32
    %c0_i32_0 = arith.constant 0 : i32
    return %arg0, %c0_i32, %arg1 : i32, i32, i32
  }
}

module attributes {stable_mosaic.version = 11 : i64} {
  func.func @_conv_gln_prelu_kernel(%arg0: i32, %arg1: memref<1x16x32xf32, #tpu.memory_space<vmem>>, %arg2: memref<32x16xf32, #tpu.memory_space<vmem>>, %arg3: memref<32x1xf32, #tpu.memory_space<vmem>>, %arg4: memref<32x1xf32, #tpu.memory_space<vmem>>, %arg5: memref<32x1xf32, #tpu.memory_space<vmem>>, %arg6: memref<1xf32, #tpu.memory_space<smem>>, %arg7: memref<1x32x32xf32, #tpu.memory_space<vmem>>) attributes {dimension_semantics = [#tpu.dimension_semantics<parallel>], iteration_bounds = array<i64: 2>, scalar_prefetch = 0 : i64, scratch_operands = 0 : i64, tpu.core_type = #tpu.core_type<tc>, window_params = [{transform_indices = @transform_0, window_bounds = array<i64: 1, 16, 32>}, {pipeline_mode = #tpu.pipeline_mode<synchronous>, transform_indices = @transform_1, window_bounds = array<i64: 32, 16>}, {pipeline_mode = #tpu.pipeline_mode<synchronous>, transform_indices = @transform_2, window_bounds = array<i64: 32, 1>}, {pipeline_mode = #tpu.pipeline_mode<synchronous>, transform_indices = @transform_3, window_bounds = array<i64: 32, 1>}, {pipeline_mode = #tpu.pipeline_mode<synchronous>, transform_indices = @transform_4, window_bounds = array<i64: 32, 1>}, {transform_indices = @transform_5, window_bounds = array<i64: 1>}, {transform_indices = @transform_6, window_bounds = array<i64: 1, 32, 32>}]} {
    %c0 = arith.constant 0 : index
    %c0_0 = arith.constant 0 : index
    %0 = vector.load %arg2[%c0, %c0_0] : memref<32x16xf32, #tpu.memory_space<vmem>>, vector<32x16xf32>
    %c0_1 = arith.constant 0 : index
    %c0_2 = arith.constant 0 : index
    %c0_3 = arith.constant 0 : index
    %1 = vector.load %arg1[%c0_1, %c0_2, %c0_3] : memref<1x16x32xf32, #tpu.memory_space<vmem>>, vector<1x16x32xf32>
    %2 = vector.shape_cast %1 : vector<1x16x32xf32> to vector<16x32xf32>
    %cst = arith.constant dense<0.000000e+00> : vector<32x32xf32>
    %3 = tpu.matmul %0, %2, %cst {dimension_numbers = #tpu.dot_dimension_numbers<[1], [0], [0], [1], [0, 0, 1, 1], [], []>} : vector<32x16xf32>, vector<16x32xf32>, vector<32x32xf32> -> vector<32x32xf32>
    %c0_4 = arith.constant 0 : index
    %c0_5 = arith.constant 0 : index
    %4 = vector.load %arg3[%c0_4, %c0_5] : memref<32x1xf32, #tpu.memory_space<vmem>>, vector<32x1xf32>
    %5 = vector.broadcast %4 : vector<32x1xf32> to vector<32x32xf32>
    %6 = arith.addf %3, %5 : vector<32x32xf32>
    %7 = vector.shape_cast %6 : vector<32x32xf32> to vector<1x32x32xf32>
    %cst_6 = arith.constant dense<0.000000e+00> : vector<1xf32>
    %8 = vector.multi_reduction <add>, %7, %cst_6 [1, 2] : vector<1x32x32xf32> to vector<1xf32>
    %9 = vector.shape_cast %8 : vector<1xf32> to vector<1x1x1xf32>
    %10 = vector.extract %9[0, 0, 0] : f32 from vector<1x1x1xf32>
    %cst_7 = arith.constant 1.024000e+03 : f32
    %11 = arith.divf %10, %cst_7 : f32
    %12 = arith.mulf %6, %6 : vector<32x32xf32>
    %13 = vector.shape_cast %12 : vector<32x32xf32> to vector<1x32x32xf32>
    %cst_8 = arith.constant dense<0.000000e+00> : vector<1xf32>
    %14 = vector.multi_reduction <add>, %13, %cst_8 [1, 2] : vector<1x32x32xf32> to vector<1xf32>
    %15 = vector.shape_cast %14 : vector<1xf32> to vector<1x1x1xf32>
    %16 = vector.extract %15[0, 0, 0] : f32 from vector<1x1x1xf32>
    %cst_9 = arith.constant 1.024000e+03 : f32
    %17 = arith.divf %16, %cst_9 : f32
    %18 = arith.mulf %11, %11 : f32
    %19 = arith.subf %17, %18 : f32
    %cst_10 = arith.constant 0.000000e+00 : f32
    %20 = arith.maximumf %19, %cst_10 : f32
    %cst_11 = arith.constant 9.99999993E-9 : f32
    %21 = arith.addf %20, %cst_11 : f32
    %22 = math.rsqrt %21 : f32
    %c0_12 = arith.constant 0 : index
    %c0_13 = arith.constant 0 : index
    %23 = vector.load %arg4[%c0_12, %c0_13] : memref<32x1xf32, #tpu.memory_space<vmem>>, vector<32x1xf32>
    %24 = vector.broadcast %11 : f32 to vector<32x32xf32>
    %25 = arith.subf %6, %24 : vector<32x32xf32>
    %26 = vector.broadcast %23 : vector<32x1xf32> to vector<32x32xf32>
    %27 = arith.mulf %26, %25 : vector<32x32xf32>
    %28 = vector.broadcast %22 : f32 to vector<32x32xf32>
    %29 = arith.mulf %27, %28 : vector<32x32xf32>
    %c0_14 = arith.constant 0 : index
    %c0_15 = arith.constant 0 : index
    %30 = vector.load %arg5[%c0_14, %c0_15] : memref<32x1xf32, #tpu.memory_space<vmem>>, vector<32x1xf32>
    %31 = vector.broadcast %30 : vector<32x1xf32> to vector<32x32xf32>
    %32 = arith.addf %29, %31 : vector<32x32xf32>
    %c0_16 = arith.constant 0 : index
    %33 = memref.load %arg6[%c0_16] : memref<1xf32, #tpu.memory_space<smem>>
    %cst_17 = arith.constant 0.000000e+00 : f32
    %34 = vector.broadcast %cst_17 : f32 to vector<32x32xf32>
    %35 = arith.cmpf oge, %32, %34 : vector<32x32xf32>
    %36 = vector.broadcast %33 : f32 to vector<32x32xf32>
    %37 = arith.mulf %36, %32 : vector<32x32xf32>
    %38 = arith.select %35, %32, %37 : vector<32x32xi1>, vector<32x32xf32>
    %c0_18 = arith.constant 0 : index
    %c0_19 = arith.constant 0 : index
    %c0_20 = arith.constant 0 : index
    %39 = vector.load %arg7[%c0_18, %c0_19, %c0_20] : memref<1x32x32xf32, #tpu.memory_space<vmem>>, vector<1x32x32xf32>
    %40 = vector.shape_cast %39 : vector<1x32x32xf32> to vector<32x32xf32>
    %41 = vector.shape_cast %38 : vector<32x32xf32> to vector<1x32x32xf32>
    tpu.vector_store %arg7[%c0_18, %c0_19, %c0_20], %41 {strides = array<i32>} : memref<1x32x32xf32, #tpu.memory_space<vmem>>, vector<1x32x32xf32>,
    return
  }
  func.func @transform_0(%arg0: i32) -> (i32, i32, i32) {
    %c0_i32 = arith.constant 0 : i32
    %c0_i32_0 = arith.constant 0 : i32
    %c0_i32_1 = arith.constant 0 : i32
    return %arg0, %c0_i32, %c0_i32_0 : i32, i32, i32
  }
  func.func @transform_1(%arg0: i32) -> (i32, i32) {
    %c0_i32 = arith.constant 0 : i32
    %c0_i32_0 = arith.constant 0 : i32
    %c0_i32_1 = arith.constant 0 : i32
    return %c0_i32, %c0_i32_0 : i32, i32
  }
  func.func @transform_2(%arg0: i32) -> (i32, i32) {
    %c0_i32 = arith.constant 0 : i32
    %c0_i32_0 = arith.constant 0 : i32
    %c0_i32_1 = arith.constant 0 : i32
    return %c0_i32, %c0_i32_0 : i32, i32
  }
  func.func @transform_3(%arg0: i32) -> (i32, i32) {
    %c0_i32 = arith.constant 0 : i32
    %c0_i32_0 = arith.constant 0 : i32
    %c0_i32_1 = arith.constant 0 : i32
    return %c0_i32, %c0_i32_0 : i32, i32
  }
  func.func @transform_4(%arg0: i32) -> (i32, i32) {
    %c0_i32 = arith.constant 0 : i32
    %c0_i32_0 = arith.constant 0 : i32
    %c0_i32_1 = arith.constant 0 : i32
    return %c0_i32, %c0_i32_0 : i32, i32
  }
  func.func @transform_5(%arg0: i32) -> i32 {
    %c0_i32 = arith.constant 0 : i32
    %c0_i32_0 = arith.constant 0 : i32
    return %c0_i32 : i32
  }
  func.func @transform_6(%arg0: i32) -> (i32, i32, i32) {
    %c0_i32 = arith.constant 0 : i32
    %c0_i32_0 = arith.constant 0 : i32
    %c0_i32_1 = arith.constant 0 : i32
    return %arg0, %c0_i32, %c0_i32_0 : i32, i32, i32
  }
}

module attributes {stable_mosaic.version = 11 : i64} {
  func.func @_gln_conv_kernel(%arg0: i32, %arg1: memref<1x32x32xf32, #tpu.memory_space<vmem>>, %arg2: memref<32x1xf32, #tpu.memory_space<vmem>>, %arg3: memref<32x1xf32, #tpu.memory_space<vmem>>, %arg4: memref<16x32xf32, #tpu.memory_space<vmem>>, %arg5: memref<16x1xf32, #tpu.memory_space<vmem>>, %arg6: memref<1x16x32xf32, #tpu.memory_space<vmem>>) attributes {dimension_semantics = [#tpu.dimension_semantics<parallel>], iteration_bounds = array<i64: 2>, scalar_prefetch = 0 : i64, scratch_operands = 0 : i64, tpu.core_type = #tpu.core_type<tc>, window_params = [{transform_indices = @transform_0, window_bounds = array<i64: 1, 32, 32>}, {pipeline_mode = #tpu.pipeline_mode<synchronous>, transform_indices = @transform_1, window_bounds = array<i64: 32, 1>}, {pipeline_mode = #tpu.pipeline_mode<synchronous>, transform_indices = @transform_2, window_bounds = array<i64: 32, 1>}, {pipeline_mode = #tpu.pipeline_mode<synchronous>, transform_indices = @transform_3, window_bounds = array<i64: 16, 32>}, {pipeline_mode = #tpu.pipeline_mode<synchronous>, transform_indices = @transform_4, window_bounds = array<i64: 16, 1>}, {transform_indices = @transform_5, window_bounds = array<i64: 1, 16, 32>}]} {
    %c0 = arith.constant 0 : index
    %c0_0 = arith.constant 0 : index
    %c0_1 = arith.constant 0 : index
    %0 = vector.load %arg1[%c0, %c0_0, %c0_1] : memref<1x32x32xf32, #tpu.memory_space<vmem>>, vector<1x32x32xf32>
    %1 = vector.shape_cast %0 : vector<1x32x32xf32> to vector<32x32xf32>
    %2 = vector.shape_cast %1 : vector<32x32xf32> to vector<1x32x32xf32>
    %cst = arith.constant dense<0.000000e+00> : vector<1xf32>
    %3 = vector.multi_reduction <add>, %2, %cst [1, 2] : vector<1x32x32xf32> to vector<1xf32>
    %4 = vector.shape_cast %3 : vector<1xf32> to vector<1x1x1xf32>
    %5 = vector.extract %4[0, 0, 0] : f32 from vector<1x1x1xf32>
    %cst_2 = arith.constant 1.024000e+03 : f32
    %6 = arith.divf %5, %cst_2 : f32
    %7 = arith.mulf %1, %1 : vector<32x32xf32>
    %8 = vector.shape_cast %7 : vector<32x32xf32> to vector<1x32x32xf32>
    %cst_3 = arith.constant dense<0.000000e+00> : vector<1xf32>
    %9 = vector.multi_reduction <add>, %8, %cst_3 [1, 2] : vector<1x32x32xf32> to vector<1xf32>
    %10 = vector.shape_cast %9 : vector<1xf32> to vector<1x1x1xf32>
    %11 = vector.extract %10[0, 0, 0] : f32 from vector<1x1x1xf32>
    %cst_4 = arith.constant 1.024000e+03 : f32
    %12 = arith.divf %11, %cst_4 : f32
    %13 = arith.mulf %6, %6 : f32
    %14 = arith.subf %12, %13 : f32
    %cst_5 = arith.constant 0.000000e+00 : f32
    %15 = arith.maximumf %14, %cst_5 : f32
    %cst_6 = arith.constant 9.99999993E-9 : f32
    %16 = arith.addf %15, %cst_6 : f32
    %17 = math.rsqrt %16 : f32
    %c0_7 = arith.constant 0 : index
    %c0_8 = arith.constant 0 : index
    %18 = vector.load %arg2[%c0_7, %c0_8] : memref<32x1xf32, #tpu.memory_space<vmem>>, vector<32x1xf32>
    %19 = vector.broadcast %6 : f32 to vector<32x32xf32>
    %20 = arith.subf %1, %19 : vector<32x32xf32>
    %21 = vector.broadcast %18 : vector<32x1xf32> to vector<32x32xf32>
    %22 = arith.mulf %21, %20 : vector<32x32xf32>
    %23 = vector.broadcast %17 : f32 to vector<32x32xf32>
    %24 = arith.mulf %22, %23 : vector<32x32xf32>
    %c0_9 = arith.constant 0 : index
    %c0_10 = arith.constant 0 : index
    %25 = vector.load %arg3[%c0_9, %c0_10] : memref<32x1xf32, #tpu.memory_space<vmem>>, vector<32x1xf32>
    %26 = vector.broadcast %25 : vector<32x1xf32> to vector<32x32xf32>
    %27 = arith.addf %24, %26 : vector<32x32xf32>
    %c0_11 = arith.constant 0 : index
    %c0_12 = arith.constant 0 : index
    %28 = vector.load %arg4[%c0_11, %c0_12] : memref<16x32xf32, #tpu.memory_space<vmem>>, vector<16x32xf32>
    %cst_13 = arith.constant dense<0.000000e+00> : vector<16x32xf32>
    %29 = tpu.matmul %28, %27, %cst_13 {dimension_numbers = #tpu.dot_dimension_numbers<[1], [0], [0], [1], [0, 0, 1, 1], [], []>} : vector<16x32xf32>, vector<32x32xf32>, vector<16x32xf32> -> vector<16x32xf32>
    %c0_14 = arith.constant 0 : index
    %c0_15 = arith.constant 0 : index
    %30 = vector.load %arg5[%c0_14, %c0_15] : memref<16x1xf32, #tpu.memory_space<vmem>>, vector<16x1xf32>
    %31 = vector.broadcast %30 : vector<16x1xf32> to vector<16x32xf32>
    %32 = arith.addf %29, %31 : vector<16x32xf32>
    %c0_16 = arith.constant 0 : index
    %c0_17 = arith.constant 0 : index
    %c0_18 = arith.constant 0 : index
    %33 = vector.load %arg6[%c0_16, %c0_17, %c0_18] : memref<1x16x32xf32, #tpu.memory_space<vmem>>, vector<1x16x32xf32>
    %34 = vector.shape_cast %33 : vector<1x16x32xf32> to vector<16x32xf32>
    %35 = vector.shape_cast %32 : vector<16x32xf32> to vector<1x16x32xf32>
    tpu.vector_store %arg6[%c0_16, %c0_17, %c0_18], %35 {strides = array<i32>} : memref<1x16x32xf32, #tpu.memory_space<vmem>>, vector<1x16x32xf32>,
    return
  }
  func.func @transform_0(%arg0: i32) -> (i32, i32, i32) {
    %c0_i32 = arith.constant 0 : i32
    %c0_i32_0 = arith.constant 0 : i32
    %c0_i32_1 = arith.constant 0 : i32
    return %arg0, %c0_i32, %c0_i32_0 : i32, i32, i32
  }
  func.func @transform_1(%arg0: i32) -> (i32, i32) {
    %c0_i32 = arith.constant 0 : i32
    %c0_i32_0 = arith.constant 0 : i32
    %c0_i32_1 = arith.constant 0 : i32
    return %c0_i32, %c0_i32_0 : i32, i32
  }
  func.func @transform_2(%arg0: i32) -> (i32, i32) {
    %c0_i32 = arith.constant 0 : i32
    %c0_i32_0 = arith.constant 0 : i32
    %c0_i32_1 = arith.constant 0 : i32
    return %c0_i32, %c0_i32_0 : i32, i32
  }
  func.func @transform_3(%arg0: i32) -> (i32, i32) {
    %c0_i32 = arith.constant 0 : i32
    %c0_i32_0 = arith.constant 0 : i32
    %c0_i32_1 = arith.constant 0 : i32
    return %c0_i32, %c0_i32_0 : i32, i32
  }
  func.func @transform_4(%arg0: i32) -> (i32, i32) {
    %c0_i32 = arith.constant 0 : i32
    %c0_i32_0 = arith.constant 0 : i32
    %c0_i32_1 = arith.constant 0 : i32
    return %c0_i32, %c0_i32_0 : i32, i32
  }
  func.func @transform_5(%arg0: i32) -> (i32, i32, i32) {
    %c0_i32 = arith.constant 0 : i32
    %c0_i32_0 = arith.constant 0 : i32
    %c0_i32_1 = arith.constant 0 : i32
    return %arg0, %c0_i32, %c0_i32_0 : i32, i32, i32
  }
}

module attributes {stable_mosaic.version = 11 : i64} {
  func.func @_dw_gln_kernel(%arg0: i32, %arg1: memref<1x1x32x36xf32, #tpu.memory_space<vmem>>, %arg2: memref<32x5xf32, #tpu.memory_space<vmem>>, %arg3: memref<32x1xf32, #tpu.memory_space<vmem>>, %arg4: memref<32x1xf32, #tpu.memory_space<vmem>>, %arg5: memref<32x1xf32, #tpu.memory_space<vmem>>, %arg6: memref<1x32x32xf32, #tpu.memory_space<vmem>>) attributes {dimension_semantics = [#tpu.dimension_semantics<parallel>], iteration_bounds = array<i64: 2>, scalar_prefetch = 0 : i64, scratch_operands = 0 : i64, tpu.core_type = #tpu.core_type<tc>, window_params = [{transform_indices = @transform_0, window_bounds = array<i64: 1, 1, 32, 36>}, {pipeline_mode = #tpu.pipeline_mode<synchronous>, transform_indices = @transform_1, window_bounds = array<i64: 32, 5>}, {pipeline_mode = #tpu.pipeline_mode<synchronous>, transform_indices = @transform_2, window_bounds = array<i64: 32, 1>}, {pipeline_mode = #tpu.pipeline_mode<synchronous>, transform_indices = @transform_3, window_bounds = array<i64: 32, 1>}, {pipeline_mode = #tpu.pipeline_mode<synchronous>, transform_indices = @transform_4, window_bounds = array<i64: 32, 1>}, {transform_indices = @transform_5, window_bounds = array<i64: 1, 32, 32>}]} {
    %c0 = arith.constant 0 : index
    %c0_0 = arith.constant 0 : index
    %c0_1 = arith.constant 0 : index
    %c0_2 = arith.constant 0 : index
    %0 = vector.load %arg1[%c0, %c0_0, %c0_1, %c0_2] : memref<1x1x32x36xf32, #tpu.memory_space<vmem>>, vector<1x1x32x36xf32>
    %1 = vector.shape_cast %0 : vector<1x1x32x36xf32> to vector<1x32x36xf32>
    %cst = arith.constant 0.000000e+00 : f32
    %2 = vector.broadcast %cst : f32 to vector<32x32xf32>
    %c0_3 = arith.constant 0 : index
    %c0_4 = arith.constant 0 : index
    %3 = vector.load %arg2[%c0_3, %c0_4] : memref<32x5xf32, #tpu.memory_space<vmem>>, vector<32x1xf32>
    %4 = vector.extract_strided_slice %1 {offsets = [0, 0, 0], sizes = [1, 32, 32], strides = [1, 1, 1]} : vector<1x32x36xf32> to vector<1x32x32xf32>
    %5 = vector.shape_cast %4 : vector<1x32x32xf32> to vector<32x32xf32>
    %6 = vector.broadcast %3 : vector<32x1xf32> to vector<32x32xf32>
    %7 = arith.mulf %6, %5 : vector<32x32xf32>
    %8 = arith.addf %2, %7 : vector<32x32xf32>
    %c0_5 = arith.constant 0 : index
    %c1 = arith.constant 1 : index
    %9 = vector.load %arg2[%c0_5, %c1] : memref<32x5xf32, #tpu.memory_space<vmem>>, vector<32x1xf32>
    %10 = vector.extract_strided_slice %1 {offsets = [0, 0, 1], sizes = [1, 32, 32], strides = [1, 1, 1]} : vector<1x32x36xf32> to vector<1x32x32xf32>
    %11 = vector.shape_cast %10 : vector<1x32x32xf32> to vector<32x32xf32>
    %12 = vector.broadcast %9 : vector<32x1xf32> to vector<32x32xf32>
    %13 = arith.mulf %12, %11 : vector<32x32xf32>
    %14 = arith.addf %8, %13 : vector<32x32xf32>
    %c0_6 = arith.constant 0 : index
    %c2 = arith.constant 2 : index
    %15 = vector.load %arg2[%c0_6, %c2] : memref<32x5xf32, #tpu.memory_space<vmem>>, vector<32x1xf32>
    %16 = vector.extract_strided_slice %1 {offsets = [0, 0, 2], sizes = [1, 32, 32], strides = [1, 1, 1]} : vector<1x32x36xf32> to vector<1x32x32xf32>
    %17 = vector.shape_cast %16 : vector<1x32x32xf32> to vector<32x32xf32>
    %18 = vector.broadcast %15 : vector<32x1xf32> to vector<32x32xf32>
    %19 = arith.mulf %18, %17 : vector<32x32xf32>
    %20 = arith.addf %14, %19 : vector<32x32xf32>
    %c0_7 = arith.constant 0 : index
    %c3 = arith.constant 3 : index
    %21 = vector.load %arg2[%c0_7, %c3] : memref<32x5xf32, #tpu.memory_space<vmem>>, vector<32x1xf32>
    %22 = vector.extract_strided_slice %1 {offsets = [0, 0, 3], sizes = [1, 32, 32], strides = [1, 1, 1]} : vector<1x32x36xf32> to vector<1x32x32xf32>
    %23 = vector.shape_cast %22 : vector<1x32x32xf32> to vector<32x32xf32>
    %24 = vector.broadcast %21 : vector<32x1xf32> to vector<32x32xf32>
    %25 = arith.mulf %24, %23 : vector<32x32xf32>
    %26 = arith.addf %20, %25 : vector<32x32xf32>
    %c0_8 = arith.constant 0 : index
    %c4 = arith.constant 4 : index
    %27 = vector.load %arg2[%c0_8, %c4] : memref<32x5xf32, #tpu.memory_space<vmem>>, vector<32x1xf32>
    %28 = vector.extract_strided_slice %1 {offsets = [0, 0, 4], sizes = [1, 32, 32], strides = [1, 1, 1]} : vector<1x32x36xf32> to vector<1x32x32xf32>
    %29 = vector.shape_cast %28 : vector<1x32x32xf32> to vector<32x32xf32>
    %30 = vector.broadcast %27 : vector<32x1xf32> to vector<32x32xf32>
    %31 = arith.mulf %30, %29 : vector<32x32xf32>
    %32 = arith.addf %26, %31 : vector<32x32xf32>
    %c0_9 = arith.constant 0 : index
    %c0_10 = arith.constant 0 : index
    %33 = vector.load %arg3[%c0_9, %c0_10] : memref<32x1xf32, #tpu.memory_space<vmem>>, vector<32x1xf32>
    %34 = vector.broadcast %33 : vector<32x1xf32> to vector<32x32xf32>
    %35 = arith.addf %32, %34 : vector<32x32xf32>
    %36 = vector.shape_cast %35 : vector<32x32xf32> to vector<1x32x32xf32>
    %cst_11 = arith.constant dense<0.000000e+00> : vector<1xf32>
    %37 = vector.multi_reduction <add>, %36, %cst_11 [1, 2] : vector<1x32x32xf32> to vector<1xf32>
    %38 = vector.shape_cast %37 : vector<1xf32> to vector<1x1x1xf32>
    %39 = vector.extract %38[0, 0, 0] : f32 from vector<1x1x1xf32>
    %cst_12 = arith.constant 1.024000e+03 : f32
    %40 = arith.divf %39, %cst_12 : f32
    %41 = arith.mulf %35, %35 : vector<32x32xf32>
    %42 = vector.shape_cast %41 : vector<32x32xf32> to vector<1x32x32xf32>
    %cst_13 = arith.constant dense<0.000000e+00> : vector<1xf32>
    %43 = vector.multi_reduction <add>, %42, %cst_13 [1, 2] : vector<1x32x32xf32> to vector<1xf32>
    %44 = vector.shape_cast %43 : vector<1xf32> to vector<1x1x1xf32>
    %45 = vector.extract %44[0, 0, 0] : f32 from vector<1x1x1xf32>
    %cst_14 = arith.constant 1.024000e+03 : f32
    %46 = arith.divf %45, %cst_14 : f32
    %47 = arith.mulf %40, %40 : f32
    %48 = arith.subf %46, %47 : f32
    %cst_15 = arith.constant 0.000000e+00 : f32
    %49 = arith.maximumf %48, %cst_15 : f32
    %cst_16 = arith.constant 9.99999993E-9 : f32
    %50 = arith.addf %49, %cst_16 : f32
    %51 = math.rsqrt %50 : f32
    %c0_17 = arith.constant 0 : index
    %c0_18 = arith.constant 0 : index
    %52 = vector.load %arg4[%c0_17, %c0_18] : memref<32x1xf32, #tpu.memory_space<vmem>>, vector<32x1xf32>
    %53 = vector.broadcast %40 : f32 to vector<32x32xf32>
    %54 = arith.subf %35, %53 : vector<32x32xf32>
    %55 = vector.broadcast %52 : vector<32x1xf32> to vector<32x32xf32>
    %56 = arith.mulf %55, %54 : vector<32x32xf32>
    %57 = vector.broadcast %51 : f32 to vector<32x32xf32>
    %58 = arith.mulf %56, %57 : vector<32x32xf32>
    %c0_19 = arith.constant 0 : index
    %c0_20 = arith.constant 0 : index
    %59 = vector.load %arg5[%c0_19, %c0_20] : memref<32x1xf32, #tpu.memory_space<vmem>>, vector<32x1xf32>
    %60 = vector.broadcast %59 : vector<32x1xf32> to vector<32x32xf32>
    %61 = arith.addf %58, %60 : vector<32x32xf32>
    %c0_21 = arith.constant 0 : index
    %c0_22 = arith.constant 0 : index
    %c0_23 = arith.constant 0 : index
    %62 = vector.load %arg6[%c0_21, %c0_22, %c0_23] : memref<1x32x32xf32, #tpu.memory_space<vmem>>, vector<1x32x32xf32>
    %63 = vector.shape_cast %62 : vector<1x32x32xf32> to vector<32x32xf32>
    %64 = vector.shape_cast %61 : vector<32x32xf32> to vector<1x32x32xf32>
    tpu.vector_store %arg6[%c0_21, %c0_22, %c0_23], %64 {strides = array<i32>} : memref<1x32x32xf32, #tpu.memory_space<vmem>>, vector<1x32x32xf32>,
    return
  }
  func.func @transform_0(%arg0: i32) -> (i32, i32, i32, i32) {
    %c0_i32 = arith.constant 0 : i32
    %c0_i32_0 = arith.constant 0 : i32
    %c0_i32_1 = arith.constant 0 : i32
    %c0_i32_2 = arith.constant 0 : i32
    return %arg0, %c0_i32, %c0_i32_0, %c0_i32_1 : i32, i32, i32, i32
  }
  func.func @transform_1(%arg0: i32) -> (i32, i32) {
    %c0_i32 = arith.constant 0 : i32
    %c0_i32_0 = arith.constant 0 : i32
    %c0_i32_1 = arith.constant 0 : i32
    return %c0_i32, %c0_i32_0 : i32, i32
  }
  func.func @transform_2(%arg0: i32) -> (i32, i32) {
    %c0_i32 = arith.constant 0 : i32
    %c0_i32_0 = arith.constant 0 : i32
    %c0_i32_1 = arith.constant 0 : i32
    return %c0_i32, %c0_i32_0 : i32, i32
  }
  func.func @transform_3(%arg0: i32) -> (i32, i32) {
    %c0_i32 = arith.constant 0 : i32
    %c0_i32_0 = arith.constant 0 : i32
    %c0_i32_1 = arith.constant 0 : i32
    return %c0_i32, %c0_i32_0 : i32, i32
  }
  func.func @transform_4(%arg0: i32) -> (i32, i32) {
    %c0_i32 = arith.constant 0 : i32
    %c0_i32_0 = arith.constant 0 : i32
    %c0_i32_1 = arith.constant 0 : i32
    return %c0_i32, %c0_i32_0 : i32, i32
  }
  func.func @transform_5(%arg0: i32) -> (i32, i32, i32) {
    %c0_i32 = arith.constant 0 : i32
    %c0_i32_0 = arith.constant 0 : i32
    %c0_i32_1 = arith.constant 0 : i32
    return %arg0, %c0_i32, %c0_i32_0 : i32, i32, i32
  }
}

module attributes {stable_mosaic.version = 11 : i64} {
  func.func @_dw_gln_kernel(%arg0: i32, %arg1: memref<1x2x32x18xf32, #tpu.memory_space<vmem>>, %arg2: memref<32x5xf32, #tpu.memory_space<vmem>>, %arg3: memref<32x1xf32, #tpu.memory_space<vmem>>, %arg4: memref<32x1xf32, #tpu.memory_space<vmem>>, %arg5: memref<32x1xf32, #tpu.memory_space<vmem>>, %arg6: memref<1x32x16xf32, #tpu.memory_space<vmem>>) attributes {dimension_semantics = [#tpu.dimension_semantics<parallel>], iteration_bounds = array<i64: 2>, scalar_prefetch = 0 : i64, scratch_operands = 0 : i64, tpu.core_type = #tpu.core_type<tc>, window_params = [{transform_indices = @transform_0, window_bounds = array<i64: 1, 2, 32, 18>}, {pipeline_mode = #tpu.pipeline_mode<synchronous>, transform_indices = @transform_1, window_bounds = array<i64: 32, 5>}, {pipeline_mode = #tpu.pipeline_mode<synchronous>, transform_indices = @transform_2, window_bounds = array<i64: 32, 1>}, {pipeline_mode = #tpu.pipeline_mode<synchronous>, transform_indices = @transform_3, window_bounds = array<i64: 32, 1>}, {pipeline_mode = #tpu.pipeline_mode<synchronous>, transform_indices = @transform_4, window_bounds = array<i64: 32, 1>}, {transform_indices = @transform_5, window_bounds = array<i64: 1, 32, 16>}]} {
    %c0 = arith.constant 0 : index
    %c0_0 = arith.constant 0 : index
    %c0_1 = arith.constant 0 : index
    %c0_2 = arith.constant 0 : index
    %0 = vector.load %arg1[%c0, %c0_0, %c0_1, %c0_2] : memref<1x2x32x18xf32, #tpu.memory_space<vmem>>, vector<1x2x32x18xf32>
    %1 = vector.shape_cast %0 : vector<1x2x32x18xf32> to vector<2x32x18xf32>
    %cst = arith.constant 0.000000e+00 : f32
    %2 = vector.broadcast %cst : f32 to vector<32x16xf32>
    %c0_3 = arith.constant 0 : index
    %c0_4 = arith.constant 0 : index
    %3 = vector.load %arg2[%c0_3, %c0_4] : memref<32x5xf32, #tpu.memory_space<vmem>>, vector<32x1xf32>
    %4 = vector.extract_strided_slice %1 {offsets = [0, 0, 0], sizes = [1, 32, 16], strides = [1, 1, 1]} : vector<2x32x18xf32> to vector<1x32x16xf32>
    %5 = vector.shape_cast %4 : vector<1x32x16xf32> to vector<32x16xf32>
    %6 = vector.broadcast %3 : vector<32x1xf32> to vector<32x16xf32>
    %7 = arith.mulf %6, %5 : vector<32x16xf32>
    %8 = arith.addf %2, %7 : vector<32x16xf32>
    %c0_5 = arith.constant 0 : index
    %c1 = arith.constant 1 : index
    %9 = vector.load %arg2[%c0_5, %c1] : memref<32x5xf32, #tpu.memory_space<vmem>>, vector<32x1xf32>
    %10 = vector.extract_strided_slice %1 {offsets = [1, 0, 0], sizes = [1, 32, 16], strides = [1, 1, 1]} : vector<2x32x18xf32> to vector<1x32x16xf32>
    %11 = vector.shape_cast %10 : vector<1x32x16xf32> to vector<32x16xf32>
    %12 = vector.broadcast %9 : vector<32x1xf32> to vector<32x16xf32>
    %13 = arith.mulf %12, %11 : vector<32x16xf32>
    %14 = arith.addf %8, %13 : vector<32x16xf32>
    %c0_6 = arith.constant 0 : index
    %c2 = arith.constant 2 : index
    %15 = vector.load %arg2[%c0_6, %c2] : memref<32x5xf32, #tpu.memory_space<vmem>>, vector<32x1xf32>
    %16 = vector.extract_strided_slice %1 {offsets = [0, 0, 1], sizes = [1, 32, 16], strides = [1, 1, 1]} : vector<2x32x18xf32> to vector<1x32x16xf32>
    %17 = vector.shape_cast %16 : vector<1x32x16xf32> to vector<32x16xf32>
    %18 = vector.broadcast %15 : vector<32x1xf32> to vector<32x16xf32>
    %19 = arith.mulf %18, %17 : vector<32x16xf32>
    %20 = arith.addf %14, %19 : vector<32x16xf32>
    %c0_7 = arith.constant 0 : index
    %c3 = arith.constant 3 : index
    %21 = vector.load %arg2[%c0_7, %c3] : memref<32x5xf32, #tpu.memory_space<vmem>>, vector<32x1xf32>
    %22 = vector.extract_strided_slice %1 {offsets = [1, 0, 1], sizes = [1, 32, 16], strides = [1, 1, 1]} : vector<2x32x18xf32> to vector<1x32x16xf32>
    %23 = vector.shape_cast %22 : vector<1x32x16xf32> to vector<32x16xf32>
    %24 = vector.broadcast %21 : vector<32x1xf32> to vector<32x16xf32>
    %25 = arith.mulf %24, %23 : vector<32x16xf32>
    %26 = arith.addf %20, %25 : vector<32x16xf32>
    %c0_8 = arith.constant 0 : index
    %c4 = arith.constant 4 : index
    %27 = vector.load %arg2[%c0_8, %c4] : memref<32x5xf32, #tpu.memory_space<vmem>>, vector<32x1xf32>
    %28 = vector.extract_strided_slice %1 {offsets = [0, 0, 2], sizes = [1, 32, 16], strides = [1, 1, 1]} : vector<2x32x18xf32> to vector<1x32x16xf32>
    %29 = vector.shape_cast %28 : vector<1x32x16xf32> to vector<32x16xf32>
    %30 = vector.broadcast %27 : vector<32x1xf32> to vector<32x16xf32>
    %31 = arith.mulf %30, %29 : vector<32x16xf32>
    %32 = arith.addf %26, %31 : vector<32x16xf32>
    %c0_9 = arith.constant 0 : index
    %c0_10 = arith.constant 0 : index
    %33 = vector.load %arg3[%c0_9, %c0_10] : memref<32x1xf32, #tpu.memory_space<vmem>>, vector<32x1xf32>
    %34 = vector.broadcast %33 : vector<32x1xf32> to vector<32x16xf32>
    %35 = arith.addf %32, %34 : vector<32x16xf32>
    %36 = vector.shape_cast %35 : vector<32x16xf32> to vector<1x32x16xf32>
    %cst_11 = arith.constant dense<0.000000e+00> : vector<1xf32>
    %37 = vector.multi_reduction <add>, %36, %cst_11 [1, 2] : vector<1x32x16xf32> to vector<1xf32>
    %38 = vector.shape_cast %37 : vector<1xf32> to vector<1x1x1xf32>
    %39 = vector.extract %38[0, 0, 0] : f32 from vector<1x1x1xf32>
    %cst_12 = arith.constant 5.120000e+02 : f32
    %40 = arith.divf %39, %cst_12 : f32
    %41 = arith.mulf %35, %35 : vector<32x16xf32>
    %42 = vector.shape_cast %41 : vector<32x16xf32> to vector<1x32x16xf32>
    %cst_13 = arith.constant dense<0.000000e+00> : vector<1xf32>
    %43 = vector.multi_reduction <add>, %42, %cst_13 [1, 2] : vector<1x32x16xf32> to vector<1xf32>
    %44 = vector.shape_cast %43 : vector<1xf32> to vector<1x1x1xf32>
    %45 = vector.extract %44[0, 0, 0] : f32 from vector<1x1x1xf32>
    %cst_14 = arith.constant 5.120000e+02 : f32
    %46 = arith.divf %45, %cst_14 : f32
    %47 = arith.mulf %40, %40 : f32
    %48 = arith.subf %46, %47 : f32
    %cst_15 = arith.constant 0.000000e+00 : f32
    %49 = arith.maximumf %48, %cst_15 : f32
    %cst_16 = arith.constant 9.99999993E-9 : f32
    %50 = arith.addf %49, %cst_16 : f32
    %51 = math.rsqrt %50 : f32
    %c0_17 = arith.constant 0 : index
    %c0_18 = arith.constant 0 : index
    %52 = vector.load %arg4[%c0_17, %c0_18] : memref<32x1xf32, #tpu.memory_space<vmem>>, vector<32x1xf32>
    %53 = vector.broadcast %40 : f32 to vector<32x16xf32>
    %54 = arith.subf %35, %53 : vector<32x16xf32>
    %55 = vector.broadcast %52 : vector<32x1xf32> to vector<32x16xf32>
    %56 = arith.mulf %55, %54 : vector<32x16xf32>
    %57 = vector.broadcast %51 : f32 to vector<32x16xf32>
    %58 = arith.mulf %56, %57 : vector<32x16xf32>
    %c0_19 = arith.constant 0 : index
    %c0_20 = arith.constant 0 : index
    %59 = vector.load %arg5[%c0_19, %c0_20] : memref<32x1xf32, #tpu.memory_space<vmem>>, vector<32x1xf32>
    %60 = vector.broadcast %59 : vector<32x1xf32> to vector<32x16xf32>
    %61 = arith.addf %58, %60 : vector<32x16xf32>
    %c0_21 = arith.constant 0 : index
    %c0_22 = arith.constant 0 : index
    %c0_23 = arith.constant 0 : index
    %62 = vector.load %arg6[%c0_21, %c0_22, %c0_23] : memref<1x32x16xf32, #tpu.memory_space<vmem>>, vector<1x32x16xf32>
    %63 = vector.shape_cast %62 : vector<1x32x16xf32> to vector<32x16xf32>
    %64 = vector.shape_cast %61 : vector<32x16xf32> to vector<1x32x16xf32>
    tpu.vector_store %arg6[%c0_21, %c0_22, %c0_23], %64 {strides = array<i32>} : memref<1x32x16xf32, #tpu.memory_space<vmem>>, vector<1x32x16xf32>,
    return
  }
  func.func @transform_0(%arg0: i32) -> (i32, i32, i32, i32) {
    %c0_i32 = arith.constant 0 : i32
    %c0_i32_0 = arith.constant 0 : i32
    %c0_i32_1 = arith.constant 0 : i32
    %c0_i32_2 = arith.constant 0 : i32
    return %arg0, %c0_i32, %c0_i32_0, %c0_i32_1 : i32, i32, i32, i32
  }
  func.func @transform_1(%arg0: i32) -> (i32, i32) {
    %c0_i32 = arith.constant 0 : i32
    %c0_i32_0 = arith.constant 0 : i32
    %c0_i32_1 = arith.constant 0 : i32
    return %c0_i32, %c0_i32_0 : i32, i32
  }
  func.func @transform_2(%arg0: i32) -> (i32, i32) {
    %c0_i32 = arith.constant 0 : i32
    %c0_i32_0 = arith.constant 0 : i32
    %c0_i32_1 = arith.constant 0 : i32
    return %c0_i32, %c0_i32_0 : i32, i32
  }
  func.func @transform_3(%arg0: i32) -> (i32, i32) {
    %c0_i32 = arith.constant 0 : i32
    %c0_i32_0 = arith.constant 0 : i32
    %c0_i32_1 = arith.constant 0 : i32
    return %c0_i32, %c0_i32_0 : i32, i32
  }
  func.func @transform_4(%arg0: i32) -> (i32, i32) {
    %c0_i32 = arith.constant 0 : i32
    %c0_i32_0 = arith.constant 0 : i32
    %c0_i32_1 = arith.constant 0 : i32
    return %c0_i32, %c0_i32_0 : i32, i32
  }
  func.func @transform_5(%arg0: i32) -> (i32, i32, i32) {
    %c0_i32 = arith.constant 0 : i32
    %c0_i32_0 = arith.constant 0 : i32
    %c0_i32_1 = arith.constant 0 : i32
    return %arg0, %c0_i32, %c0_i32_0 : i32, i32, i32
  }
}

module attributes {stable_mosaic.version = 11 : i64} {
  func.func @_sum_gln_prelu_kernel(%arg0: i32, %arg1: memref<1x32x32xf32, #tpu.memory_space<vmem>>, %arg2: memref<1x32x32xf32, #tpu.memory_space<vmem>>, %arg3: memref<32x1xf32, #tpu.memory_space<vmem>>, %arg4: memref<32x1xf32, #tpu.memory_space<vmem>>, %arg5: memref<1xf32, #tpu.memory_space<smem>>, %arg6: memref<1x32x32xf32, #tpu.memory_space<vmem>>) attributes {dimension_semantics = [#tpu.dimension_semantics<parallel>], iteration_bounds = array<i64: 2>, scalar_prefetch = 0 : i64, scratch_operands = 0 : i64, tpu.core_type = #tpu.core_type<tc>, window_params = [{transform_indices = @transform_0, window_bounds = array<i64: 1, 32, 32>}, {transform_indices = @transform_1, window_bounds = array<i64: 1, 32, 32>}, {pipeline_mode = #tpu.pipeline_mode<synchronous>, transform_indices = @transform_2, window_bounds = array<i64: 32, 1>}, {pipeline_mode = #tpu.pipeline_mode<synchronous>, transform_indices = @transform_3, window_bounds = array<i64: 32, 1>}, {transform_indices = @transform_4, window_bounds = array<i64: 1>}, {transform_indices = @transform_5, window_bounds = array<i64: 1, 32, 32>}]} {
    %c0 = arith.constant 0 : index
    %c0_0 = arith.constant 0 : index
    %c0_1 = arith.constant 0 : index
    %0 = vector.load %arg1[%c0, %c0_0, %c0_1] : memref<1x32x32xf32, #tpu.memory_space<vmem>>, vector<1x32x32xf32>
    %1 = vector.shape_cast %0 : vector<1x32x32xf32> to vector<32x32xf32>
    %c0_2 = arith.constant 0 : index
    %c0_3 = arith.constant 0 : index
    %c0_4 = arith.constant 0 : index
    %2 = vector.load %arg2[%c0_2, %c0_3, %c0_4] : memref<1x32x32xf32, #tpu.memory_space<vmem>>, vector<1x32x32xf32>
    %3 = vector.shape_cast %2 : vector<1x32x32xf32> to vector<32x32xf32>
    %4 = arith.addf %1, %3 : vector<32x32xf32>
    %5 = vector.shape_cast %4 : vector<32x32xf32> to vector<1x32x32xf32>
    %cst = arith.constant dense<0.000000e+00> : vector<1xf32>
    %6 = vector.multi_reduction <add>, %5, %cst [1, 2] : vector<1x32x32xf32> to vector<1xf32>
    %7 = vector.shape_cast %6 : vector<1xf32> to vector<1x1x1xf32>
    %8 = vector.extract %7[0, 0, 0] : f32 from vector<1x1x1xf32>
    %cst_5 = arith.constant 1.024000e+03 : f32
    %9 = arith.divf %8, %cst_5 : f32
    %10 = arith.mulf %4, %4 : vector<32x32xf32>
    %11 = vector.shape_cast %10 : vector<32x32xf32> to vector<1x32x32xf32>
    %cst_6 = arith.constant dense<0.000000e+00> : vector<1xf32>
    %12 = vector.multi_reduction <add>, %11, %cst_6 [1, 2] : vector<1x32x32xf32> to vector<1xf32>
    %13 = vector.shape_cast %12 : vector<1xf32> to vector<1x1x1xf32>
    %14 = vector.extract %13[0, 0, 0] : f32 from vector<1x1x1xf32>
    %cst_7 = arith.constant 1.024000e+03 : f32
    %15 = arith.divf %14, %cst_7 : f32
    %16 = arith.mulf %9, %9 : f32
    %17 = arith.subf %15, %16 : f32
    %cst_8 = arith.constant 0.000000e+00 : f32
    %18 = arith.maximumf %17, %cst_8 : f32
    %cst_9 = arith.constant 9.99999993E-9 : f32
    %19 = arith.addf %18, %cst_9 : f32
    %20 = math.rsqrt %19 : f32
    %c0_10 = arith.constant 0 : index
    %c0_11 = arith.constant 0 : index
    %21 = vector.load %arg3[%c0_10, %c0_11] : memref<32x1xf32, #tpu.memory_space<vmem>>, vector<32x1xf32>
    %22 = vector.broadcast %9 : f32 to vector<32x32xf32>
    %23 = arith.subf %4, %22 : vector<32x32xf32>
    %24 = vector.broadcast %21 : vector<32x1xf32> to vector<32x32xf32>
    %25 = arith.mulf %24, %23 : vector<32x32xf32>
    %26 = vector.broadcast %20 : f32 to vector<32x32xf32>
    %27 = arith.mulf %25, %26 : vector<32x32xf32>
    %c0_12 = arith.constant 0 : index
    %c0_13 = arith.constant 0 : index
    %28 = vector.load %arg4[%c0_12, %c0_13] : memref<32x1xf32, #tpu.memory_space<vmem>>, vector<32x1xf32>
    %29 = vector.broadcast %28 : vector<32x1xf32> to vector<32x32xf32>
    %30 = arith.addf %27, %29 : vector<32x32xf32>
    %c0_14 = arith.constant 0 : index
    %31 = memref.load %arg5[%c0_14] : memref<1xf32, #tpu.memory_space<smem>>
    %cst_15 = arith.constant 0.000000e+00 : f32
    %32 = vector.broadcast %cst_15 : f32 to vector<32x32xf32>
    %33 = arith.cmpf oge, %30, %32 : vector<32x32xf32>
    %34 = vector.broadcast %31 : f32 to vector<32x32xf32>
    %35 = arith.mulf %34, %30 : vector<32x32xf32>
    %36 = arith.select %33, %30, %35 : vector<32x32xi1>, vector<32x32xf32>
    %c0_16 = arith.constant 0 : index
    %c0_17 = arith.constant 0 : index
    %c0_18 = arith.constant 0 : index
    %37 = vector.load %arg6[%c0_16, %c0_17, %c0_18] : memref<1x32x32xf32, #tpu.memory_space<vmem>>, vector<1x32x32xf32>
    %38 = vector.shape_cast %37 : vector<1x32x32xf32> to vector<32x32xf32>
    %39 = vector.shape_cast %36 : vector<32x32xf32> to vector<1x32x32xf32>
    tpu.vector_store %arg6[%c0_16, %c0_17, %c0_18], %39 {strides = array<i32>} : memref<1x32x32xf32, #tpu.memory_space<vmem>>, vector<1x32x32xf32>,
    return
  }
  func.func @transform_0(%arg0: i32) -> (i32, i32, i32) {
    %c0_i32 = arith.constant 0 : i32
    %c0_i32_0 = arith.constant 0 : i32
    %c0_i32_1 = arith.constant 0 : i32
    return %arg0, %c0_i32, %c0_i32_0 : i32, i32, i32
  }
  func.func @transform_1(%arg0: i32) -> (i32, i32, i32) {
    %c0_i32 = arith.constant 0 : i32
    %c0_i32_0 = arith.constant 0 : i32
    %c0_i32_1 = arith.constant 0 : i32
    return %arg0, %c0_i32, %c0_i32_0 : i32, i32, i32
  }
  func.func @transform_2(%arg0: i32) -> (i32, i32) {
    %c0_i32 = arith.constant 0 : i32
    %c0_i32_0 = arith.constant 0 : i32
    %c0_i32_1 = arith.constant 0 : i32
    return %c0_i32, %c0_i32_0 : i32, i32
  }
  func.func @transform_3(%arg0: i32) -> (i32, i32) {
    %c0_i32 = arith.constant 0 : i32
    %c0_i32_0 = arith.constant 0 : i32
    %c0_i32_1 = arith.constant 0 : i32
    return %c0_i32, %c0_i32_0 : i32, i32
  }
  func.func @transform_4(%arg0: i32) -> i32 {
    %c0_i32 = arith.constant 0 : i32
    %c0_i32_0 = arith.constant 0 : i32
    return %c0_i32 : i32
  }
  func.func @transform_5(%arg0: i32) -> (i32, i32, i32) {
    %c0_i32 = arith.constant 0 : i32
    %c0_i32_0 = arith.constant 0 : i32
    %c0_i32_1 = arith.constant 0 : i32
    return %arg0, %c0_i32, %c0_i32_0 : i32, i32, i32
  }
}

module attributes {stable_mosaic.version = 11 : i64} {
  func.func @_concat_conv_gln_prelu_kernel(%arg0: i32, %arg1: memref<1x32x32xf32, #tpu.memory_space<vmem>>, %arg2: memref<1x32x32xf32, #tpu.memory_space<vmem>>, %arg3: memref<32x64xf32, #tpu.memory_space<vmem>>, %arg4: memref<32x1xf32, #tpu.memory_space<vmem>>, %arg5: memref<32x1xf32, #tpu.memory_space<vmem>>, %arg6: memref<32x1xf32, #tpu.memory_space<vmem>>, %arg7: memref<1xf32, #tpu.memory_space<smem>>, %arg8: memref<1x32x32xf32, #tpu.memory_space<vmem>>) attributes {dimension_semantics = [#tpu.dimension_semantics<parallel>], iteration_bounds = array<i64: 2>, scalar_prefetch = 0 : i64, scratch_operands = 0 : i64, tpu.core_type = #tpu.core_type<tc>, window_params = [{transform_indices = @transform_0, window_bounds = array<i64: 1, 32, 32>}, {transform_indices = @transform_1, window_bounds = array<i64: 1, 32, 32>}, {pipeline_mode = #tpu.pipeline_mode<synchronous>, transform_indices = @transform_2, window_bounds = array<i64: 32, 64>}, {pipeline_mode = #tpu.pipeline_mode<synchronous>, transform_indices = @transform_3, window_bounds = array<i64: 32, 1>}, {pipeline_mode = #tpu.pipeline_mode<synchronous>, transform_indices = @transform_4, window_bounds = array<i64: 32, 1>}, {pipeline_mode = #tpu.pipeline_mode<synchronous>, transform_indices = @transform_5, window_bounds = array<i64: 32, 1>}, {transform_indices = @transform_6, window_bounds = array<i64: 1>}, {transform_indices = @transform_7, window_bounds = array<i64: 1, 32, 32>}]} {
    %c0 = arith.constant 0 : index
    %c0_0 = arith.constant 0 : index
    %c0_1 = arith.constant 0 : index
    %0 = vector.load %arg1[%c0, %c0_0, %c0_1] : memref<1x32x32xf32, #tpu.memory_space<vmem>>, vector<1x32x32xf32>
    %1 = vector.shape_cast %0 : vector<1x32x32xf32> to vector<32x32xf32>
    %c0_2 = arith.constant 0 : index
    %c0_3 = arith.constant 0 : index
    %c0_4 = arith.constant 0 : index
    %2 = vector.load %arg2[%c0_2, %c0_3, %c0_4] : memref<1x32x32xf32, #tpu.memory_space<vmem>>, vector<1x32x32xf32>
    %3 = vector.shape_cast %2 : vector<1x32x32xf32> to vector<32x32xf32>
    %4 = tpu.concatenate %1, %3 in 0 : vector<32x32xf32>, vector<32x32xf32> -> vector<64x32xf32>
    %c0_5 = arith.constant 0 : index
    %c0_6 = arith.constant 0 : index
    %5 = vector.load %arg3[%c0_5, %c0_6] : memref<32x64xf32, #tpu.memory_space<vmem>>, vector<32x64xf32>
    %cst = arith.constant dense<0.000000e+00> : vector<32x32xf32>
    %6 = tpu.matmul %5, %4, %cst {dimension_numbers = #tpu.dot_dimension_numbers<[1], [0], [0], [1], [0, 0, 1, 1], [], []>} : vector<32x64xf32>, vector<64x32xf32>, vector<32x32xf32> -> vector<32x32xf32>
    %c0_7 = arith.constant 0 : index
    %c0_8 = arith.constant 0 : index
    %7 = vector.load %arg4[%c0_7, %c0_8] : memref<32x1xf32, #tpu.memory_space<vmem>>, vector<32x1xf32>
    %8 = vector.broadcast %7 : vector<32x1xf32> to vector<32x32xf32>
    %9 = arith.addf %6, %8 : vector<32x32xf32>
    %10 = vector.shape_cast %9 : vector<32x32xf32> to vector<1x32x32xf32>
    %cst_9 = arith.constant dense<0.000000e+00> : vector<1xf32>
    %11 = vector.multi_reduction <add>, %10, %cst_9 [1, 2] : vector<1x32x32xf32> to vector<1xf32>
    %12 = vector.shape_cast %11 : vector<1xf32> to vector<1x1x1xf32>
    %13 = vector.extract %12[0, 0, 0] : f32 from vector<1x1x1xf32>
    %cst_10 = arith.constant 1.024000e+03 : f32
    %14 = arith.divf %13, %cst_10 : f32
    %15 = arith.mulf %9, %9 : vector<32x32xf32>
    %16 = vector.shape_cast %15 : vector<32x32xf32> to vector<1x32x32xf32>
    %cst_11 = arith.constant dense<0.000000e+00> : vector<1xf32>
    %17 = vector.multi_reduction <add>, %16, %cst_11 [1, 2] : vector<1x32x32xf32> to vector<1xf32>
    %18 = vector.shape_cast %17 : vector<1xf32> to vector<1x1x1xf32>
    %19 = vector.extract %18[0, 0, 0] : f32 from vector<1x1x1xf32>
    %cst_12 = arith.constant 1.024000e+03 : f32
    %20 = arith.divf %19, %cst_12 : f32
    %21 = arith.mulf %14, %14 : f32
    %22 = arith.subf %20, %21 : f32
    %cst_13 = arith.constant 0.000000e+00 : f32
    %23 = arith.maximumf %22, %cst_13 : f32
    %cst_14 = arith.constant 9.99999993E-9 : f32
    %24 = arith.addf %23, %cst_14 : f32
    %25 = math.rsqrt %24 : f32
    %c0_15 = arith.constant 0 : index
    %c0_16 = arith.constant 0 : index
    %26 = vector.load %arg5[%c0_15, %c0_16] : memref<32x1xf32, #tpu.memory_space<vmem>>, vector<32x1xf32>
    %27 = vector.broadcast %14 : f32 to vector<32x32xf32>
    %28 = arith.subf %9, %27 : vector<32x32xf32>
    %29 = vector.broadcast %26 : vector<32x1xf32> to vector<32x32xf32>
    %30 = arith.mulf %29, %28 : vector<32x32xf32>
    %31 = vector.broadcast %25 : f32 to vector<32x32xf32>
    %32 = arith.mulf %30, %31 : vector<32x32xf32>
    %c0_17 = arith.constant 0 : index
    %c0_18 = arith.constant 0 : index
    %33 = vector.load %arg6[%c0_17, %c0_18] : memref<32x1xf32, #tpu.memory_space<vmem>>, vector<32x1xf32>
    %34 = vector.broadcast %33 : vector<32x1xf32> to vector<32x32xf32>
    %35 = arith.addf %32, %34 : vector<32x32xf32>
    %c0_19 = arith.constant 0 : index
    %36 = memref.load %arg7[%c0_19] : memref<1xf32, #tpu.memory_space<smem>>
    %cst_20 = arith.constant 0.000000e+00 : f32
    %37 = vector.broadcast %cst_20 : f32 to vector<32x32xf32>
    %38 = arith.cmpf oge, %35, %37 : vector<32x32xf32>
    %39 = vector.broadcast %36 : f32 to vector<32x32xf32>
    %40 = arith.mulf %39, %35 : vector<32x32xf32>
    %41 = arith.select %38, %35, %40 : vector<32x32xi1>, vector<32x32xf32>
    %c0_21 = arith.constant 0 : index
    %c0_22 = arith.constant 0 : index
    %c0_23 = arith.constant 0 : index
    %42 = vector.load %arg8[%c0_21, %c0_22, %c0_23] : memref<1x32x32xf32, #tpu.memory_space<vmem>>, vector<1x32x32xf32>
    %43 = vector.shape_cast %42 : vector<1x32x32xf32> to vector<32x32xf32>
    %44 = vector.shape_cast %41 : vector<32x32xf32> to vector<1x32x32xf32>
    tpu.vector_store %arg8[%c0_21, %c0_22, %c0_23], %44 {strides = array<i32>} : memref<1x32x32xf32, #tpu.memory_space<vmem>>, vector<1x32x32xf32>,
    return
  }
  func.func @transform_0(%arg0: i32) -> (i32, i32, i32) {
    %c0_i32 = arith.constant 0 : i32
    %c0_i32_0 = arith.constant 0 : i32
    %c0_i32_1 = arith.constant 0 : i32
    return %arg0, %c0_i32, %c0_i32_0 : i32, i32, i32
  }
  func.func @transform_1(%arg0: i32) -> (i32, i32, i32) {
    %c0_i32 = arith.constant 0 : i32
    %c0_i32_0 = arith.constant 0 : i32
    %c0_i32_1 = arith.constant 0 : i32
    return %arg0, %c0_i32, %c0_i32_0 : i32, i32, i32
  }
  func.func @transform_2(%arg0: i32) -> (i32, i32) {
    %c0_i32 = arith.constant 0 : i32
    %c0_i32_0 = arith.constant 0 : i32
    %c0_i32_1 = arith.constant 0 : i32
    return %c0_i32, %c0_i32_0 : i32, i32
  }
  func.func @transform_3(%arg0: i32) -> (i32, i32) {
    %c0_i32 = arith.constant 0 : i32
    %c0_i32_0 = arith.constant 0 : i32
    %c0_i32_1 = arith.constant 0 : i32
    return %c0_i32, %c0_i32_0 : i32, i32
  }
  func.func @transform_4(%arg0: i32) -> (i32, i32) {
    %c0_i32 = arith.constant 0 : i32
    %c0_i32_0 = arith.constant 0 : i32
    %c0_i32_1 = arith.constant 0 : i32
    return %c0_i32, %c0_i32_0 : i32, i32
  }
  func.func @transform_5(%arg0: i32) -> (i32, i32) {
    %c0_i32 = arith.constant 0 : i32
    %c0_i32_0 = arith.constant 0 : i32
    %c0_i32_1 = arith.constant 0 : i32
    return %c0_i32, %c0_i32_0 : i32, i32
  }
  func.func @transform_6(%arg0: i32) -> i32 {
    %c0_i32 = arith.constant 0 : i32
    %c0_i32_0 = arith.constant 0 : i32
    return %c0_i32 : i32
  }
  func.func @transform_7(%arg0: i32) -> (i32, i32, i32) {
    %c0_i32 = arith.constant 0 : i32
    %c0_i32_0 = arith.constant 0 : i32
    %c0_i32_1 = arith.constant 0 : i32
    return %arg0, %c0_i32, %c0_i32_0 : i32, i32, i32
  }
}

module attributes {stable_mosaic.version = 11 : i64} {
  func.func @_sum_gln_prelu_kernel(%arg0: i32, %arg1: memref<1x32x16xf32, #tpu.memory_space<vmem>>, %arg2: memref<1x32x16xf32, #tpu.memory_space<vmem>>, %arg3: memref<32x1xf32, #tpu.memory_space<vmem>>, %arg4: memref<32x1xf32, #tpu.memory_space<vmem>>, %arg5: memref<1xf32, #tpu.memory_space<smem>>, %arg6: memref<1x32x16xf32, #tpu.memory_space<vmem>>) attributes {dimension_semantics = [#tpu.dimension_semantics<parallel>], iteration_bounds = array<i64: 2>, scalar_prefetch = 0 : i64, scratch_operands = 0 : i64, tpu.core_type = #tpu.core_type<tc>, window_params = [{transform_indices = @transform_0, window_bounds = array<i64: 1, 32, 16>}, {transform_indices = @transform_1, window_bounds = array<i64: 1, 32, 16>}, {pipeline_mode = #tpu.pipeline_mode<synchronous>, transform_indices = @transform_2, window_bounds = array<i64: 32, 1>}, {pipeline_mode = #tpu.pipeline_mode<synchronous>, transform_indices = @transform_3, window_bounds = array<i64: 32, 1>}, {transform_indices = @transform_4, window_bounds = array<i64: 1>}, {transform_indices = @transform_5, window_bounds = array<i64: 1, 32, 16>}]} {
    %c0 = arith.constant 0 : index
    %c0_0 = arith.constant 0 : index
    %c0_1 = arith.constant 0 : index
    %0 = vector.load %arg1[%c0, %c0_0, %c0_1] : memref<1x32x16xf32, #tpu.memory_space<vmem>>, vector<1x32x16xf32>
    %1 = vector.shape_cast %0 : vector<1x32x16xf32> to vector<32x16xf32>
    %c0_2 = arith.constant 0 : index
    %c0_3 = arith.constant 0 : index
    %c0_4 = arith.constant 0 : index
    %2 = vector.load %arg2[%c0_2, %c0_3, %c0_4] : memref<1x32x16xf32, #tpu.memory_space<vmem>>, vector<1x32x16xf32>
    %3 = vector.shape_cast %2 : vector<1x32x16xf32> to vector<32x16xf32>
    %4 = arith.addf %1, %3 : vector<32x16xf32>
    %5 = vector.shape_cast %4 : vector<32x16xf32> to vector<1x32x16xf32>
    %cst = arith.constant dense<0.000000e+00> : vector<1xf32>
    %6 = vector.multi_reduction <add>, %5, %cst [1, 2] : vector<1x32x16xf32> to vector<1xf32>
    %7 = vector.shape_cast %6 : vector<1xf32> to vector<1x1x1xf32>
    %8 = vector.extract %7[0, 0, 0] : f32 from vector<1x1x1xf32>
    %cst_5 = arith.constant 5.120000e+02 : f32
    %9 = arith.divf %8, %cst_5 : f32
    %10 = arith.mulf %4, %4 : vector<32x16xf32>
    %11 = vector.shape_cast %10 : vector<32x16xf32> to vector<1x32x16xf32>
    %cst_6 = arith.constant dense<0.000000e+00> : vector<1xf32>
    %12 = vector.multi_reduction <add>, %11, %cst_6 [1, 2] : vector<1x32x16xf32> to vector<1xf32>
    %13 = vector.shape_cast %12 : vector<1xf32> to vector<1x1x1xf32>
    %14 = vector.extract %13[0, 0, 0] : f32 from vector<1x1x1xf32>
    %cst_7 = arith.constant 5.120000e+02 : f32
    %15 = arith.divf %14, %cst_7 : f32
    %16 = arith.mulf %9, %9 : f32
    %17 = arith.subf %15, %16 : f32
    %cst_8 = arith.constant 0.000000e+00 : f32
    %18 = arith.maximumf %17, %cst_8 : f32
    %cst_9 = arith.constant 9.99999993E-9 : f32
    %19 = arith.addf %18, %cst_9 : f32
    %20 = math.rsqrt %19 : f32
    %c0_10 = arith.constant 0 : index
    %c0_11 = arith.constant 0 : index
    %21 = vector.load %arg3[%c0_10, %c0_11] : memref<32x1xf32, #tpu.memory_space<vmem>>, vector<32x1xf32>
    %22 = vector.broadcast %9 : f32 to vector<32x16xf32>
    %23 = arith.subf %4, %22 : vector<32x16xf32>
    %24 = vector.broadcast %21 : vector<32x1xf32> to vector<32x16xf32>
    %25 = arith.mulf %24, %23 : vector<32x16xf32>
    %26 = vector.broadcast %20 : f32 to vector<32x16xf32>
    %27 = arith.mulf %25, %26 : vector<32x16xf32>
    %c0_12 = arith.constant 0 : index
    %c0_13 = arith.constant 0 : index
    %28 = vector.load %arg4[%c0_12, %c0_13] : memref<32x1xf32, #tpu.memory_space<vmem>>, vector<32x1xf32>
    %29 = vector.broadcast %28 : vector<32x1xf32> to vector<32x16xf32>
    %30 = arith.addf %27, %29 : vector<32x16xf32>
    %c0_14 = arith.constant 0 : index
    %31 = memref.load %arg5[%c0_14] : memref<1xf32, #tpu.memory_space<smem>>
    %cst_15 = arith.constant 0.000000e+00 : f32
    %32 = vector.broadcast %cst_15 : f32 to vector<32x16xf32>
    %33 = arith.cmpf oge, %30, %32 : vector<32x16xf32>
    %34 = vector.broadcast %31 : f32 to vector<32x16xf32>
    %35 = arith.mulf %34, %30 : vector<32x16xf32>
    %36 = arith.select %33, %30, %35 : vector<32x16xi1>, vector<32x16xf32>
    %c0_16 = arith.constant 0 : index
    %c0_17 = arith.constant 0 : index
    %c0_18 = arith.constant 0 : index
    %37 = vector.load %arg6[%c0_16, %c0_17, %c0_18] : memref<1x32x16xf32, #tpu.memory_space<vmem>>, vector<1x32x16xf32>
    %38 = vector.shape_cast %37 : vector<1x32x16xf32> to vector<32x16xf32>
    %39 = vector.shape_cast %36 : vector<32x16xf32> to vector<1x32x16xf32>
    tpu.vector_store %arg6[%c0_16, %c0_17, %c0_18], %39 {strides = array<i32>} : memref<1x32x16xf32, #tpu.memory_space<vmem>>, vector<1x32x16xf32>,
    return
  }
  func.func @transform_0(%arg0: i32) -> (i32, i32, i32) {
    %c0_i32 = arith.constant 0 : i32
    %c0_i32_0 = arith.constant 0 : i32
    %c0_i32_1 = arith.constant 0 : i32
    return %arg0, %c0_i32, %c0_i32_0 : i32, i32, i32
  }
  func.func @transform_1(%arg0: i32) -> (i32, i32, i32) {
    %c0_i32 = arith.constant 0 : i32
    %c0_i32_0 = arith.constant 0 : i32
    %c0_i32_1 = arith.constant 0 : i32
    return %arg0, %c0_i32, %c0_i32_0 : i32, i32, i32
  }
  func.func @transform_2(%arg0: i32) -> (i32, i32) {
    %c0_i32 = arith.constant 0 : i32
    %c0_i32_0 = arith.constant 0 : i32
    %c0_i32_1 = arith.constant 0 : i32
    return %c0_i32, %c0_i32_0 : i32, i32
  }
  func.func @transform_3(%arg0: i32) -> (i32, i32) {
    %c0_i32 = arith.constant 0 : i32
    %c0_i32_0 = arith.constant 0 : i32
    %c0_i32_1 = arith.constant 0 : i32
    return %c0_i32, %c0_i32_0 : i32, i32
  }
  func.func @transform_4(%arg0: i32) -> i32 {
    %c0_i32 = arith.constant 0 : i32
    %c0_i32_0 = arith.constant 0 : i32
    return %c0_i32 : i32
  }
  func.func @transform_5(%arg0: i32) -> (i32, i32, i32) {
    %c0_i32 = arith.constant 0 : i32
    %c0_i32_0 = arith.constant 0 : i32
    %c0_i32_1 = arith.constant 0 : i32
    return %arg0, %c0_i32, %c0_i32_0 : i32, i32, i32
  }
}

module attributes {stable_mosaic.version = 11 : i64} {
  func.func @_conv_bias_residual_kernel(%arg0: i32, %arg1: memref<1x32x32xf32, #tpu.memory_space<vmem>>, %arg2: memref<16x32xf32, #tpu.memory_space<vmem>>, %arg3: memref<16x1xf32, #tpu.memory_space<vmem>>, %arg4: memref<1x16x32xf32, #tpu.memory_space<vmem>>, %arg5: memref<1x16x32xf32, #tpu.memory_space<vmem>>) attributes {dimension_semantics = [#tpu.dimension_semantics<parallel>], iteration_bounds = array<i64: 2>, scalar_prefetch = 0 : i64, scratch_operands = 0 : i64, tpu.core_type = #tpu.core_type<tc>, window_params = [{transform_indices = @transform_0, window_bounds = array<i64: 1, 32, 32>}, {pipeline_mode = #tpu.pipeline_mode<synchronous>, transform_indices = @transform_1, window_bounds = array<i64: 16, 32>}, {pipeline_mode = #tpu.pipeline_mode<synchronous>, transform_indices = @transform_2, window_bounds = array<i64: 16, 1>}, {transform_indices = @transform_3, window_bounds = array<i64: 1, 16, 32>}, {transform_indices = @transform_4, window_bounds = array<i64: 1, 16, 32>}]} {
    %c0 = arith.constant 0 : index
    %c0_0 = arith.constant 0 : index
    %0 = vector.load %arg2[%c0, %c0_0] : memref<16x32xf32, #tpu.memory_space<vmem>>, vector<16x32xf32>
    %c0_1 = arith.constant 0 : index
    %c0_2 = arith.constant 0 : index
    %c0_3 = arith.constant 0 : index
    %1 = vector.load %arg1[%c0_1, %c0_2, %c0_3] : memref<1x32x32xf32, #tpu.memory_space<vmem>>, vector<1x32x32xf32>
    %2 = vector.shape_cast %1 : vector<1x32x32xf32> to vector<32x32xf32>
    %cst = arith.constant dense<0.000000e+00> : vector<16x32xf32>
    %3 = tpu.matmul %0, %2, %cst {dimension_numbers = #tpu.dot_dimension_numbers<[1], [0], [0], [1], [0, 0, 1, 1], [], []>} : vector<16x32xf32>, vector<32x32xf32>, vector<16x32xf32> -> vector<16x32xf32>
    %c0_4 = arith.constant 0 : index
    %c0_5 = arith.constant 0 : index
    %4 = vector.load %arg3[%c0_4, %c0_5] : memref<16x1xf32, #tpu.memory_space<vmem>>, vector<16x1xf32>
    %5 = vector.broadcast %4 : vector<16x1xf32> to vector<16x32xf32>
    %6 = arith.addf %3, %5 : vector<16x32xf32>
    %c0_6 = arith.constant 0 : index
    %c0_7 = arith.constant 0 : index
    %c0_8 = arith.constant 0 : index
    %7 = vector.load %arg4[%c0_6, %c0_7, %c0_8] : memref<1x16x32xf32, #tpu.memory_space<vmem>>, vector<1x16x32xf32>
    %8 = vector.shape_cast %7 : vector<1x16x32xf32> to vector<16x32xf32>
    %9 = arith.addf %6, %8 : vector<16x32xf32>
    %c0_9 = arith.constant 0 : index
    %c0_10 = arith.constant 0 : index
    %c0_11 = arith.constant 0 : index
    %10 = vector.load %arg5[%c0_9, %c0_10, %c0_11] : memref<1x16x32xf32, #tpu.memory_space<vmem>>, vector<1x16x32xf32>
    %11 = vector.shape_cast %10 : vector<1x16x32xf32> to vector<16x32xf32>
    %12 = vector.shape_cast %9 : vector<16x32xf32> to vector<1x16x32xf32>
    tpu.vector_store %arg5[%c0_9, %c0_10, %c0_11], %12 {strides = array<i32>} : memref<1x16x32xf32, #tpu.memory_space<vmem>>, vector<1x16x32xf32>,
    return
  }
  func.func @transform_0(%arg0: i32) -> (i32, i32, i32) {
    %c0_i32 = arith.constant 0 : i32
    %c0_i32_0 = arith.constant 0 : i32
    %c0_i32_1 = arith.constant 0 : i32
    return %arg0, %c0_i32, %c0_i32_0 : i32, i32, i32
  }
  func.func @transform_1(%arg0: i32) -> (i32, i32) {
    %c0_i32 = arith.constant 0 : i32
    %c0_i32_0 = arith.constant 0 : i32
    %c0_i32_1 = arith.constant 0 : i32
    return %c0_i32, %c0_i32_0 : i32, i32
  }
  func.func @transform_2(%arg0: i32) -> (i32, i32) {
    %c0_i32 = arith.constant 0 : i32
    %c0_i32_0 = arith.constant 0 : i32
    %c0_i32_1 = arith.constant 0 : i32
    return %c0_i32, %c0_i32_0 : i32, i32
  }
  func.func @transform_3(%arg0: i32) -> (i32, i32, i32) {
    %c0_i32 = arith.constant 0 : i32
    %c0_i32_0 = arith.constant 0 : i32
    %c0_i32_1 = arith.constant 0 : i32
    return %arg0, %c0_i32, %c0_i32_0 : i32, i32, i32
  }
  func.func @transform_4(%arg0: i32) -> (i32, i32, i32) {
    %c0_i32 = arith.constant 0 : i32
    %c0_i32_0 = arith.constant 0 : i32
    %c0_i32_1 = arith.constant 0 : i32
    return %arg0, %c0_i32, %c0_i32_0 : i32, i32, i32
  }
}

module attributes {stable_mosaic.version = 11 : i64} {
  func.func @_add_scale_prelu_kernel(%arg0: i32, %arg1: memref<1x16x32xf32, #tpu.memory_space<vmem>>, %arg2: memref<1x16x32xf32, #tpu.memory_space<vmem>>, %arg3: memref<16x1xf32, #tpu.memory_space<vmem>>, %arg4: memref<16x1xf32, #tpu.memory_space<vmem>>, %arg5: memref<1xf32, #tpu.memory_space<smem>>, %arg6: memref<1x16x32xf32, #tpu.memory_space<vmem>>) attributes {dimension_semantics = [#tpu.dimension_semantics<parallel>], iteration_bounds = array<i64: 2>, scalar_prefetch = 0 : i64, scratch_operands = 0 : i64, tpu.core_type = #tpu.core_type<tc>, window_params = [{transform_indices = @transform_0, window_bounds = array<i64: 1, 16, 32>}, {transform_indices = @transform_1, window_bounds = array<i64: 1, 16, 32>}, {pipeline_mode = #tpu.pipeline_mode<synchronous>, transform_indices = @transform_2, window_bounds = array<i64: 16, 1>}, {pipeline_mode = #tpu.pipeline_mode<synchronous>, transform_indices = @transform_3, window_bounds = array<i64: 16, 1>}, {transform_indices = @transform_4, window_bounds = array<i64: 1>}, {transform_indices = @transform_5, window_bounds = array<i64: 1, 16, 32>}]} {
    %c0 = arith.constant 0 : index
    %c0_0 = arith.constant 0 : index
    %c0_1 = arith.constant 0 : index
    %0 = vector.load %arg1[%c0, %c0_0, %c0_1] : memref<1x16x32xf32, #tpu.memory_space<vmem>>, vector<1x16x32xf32>
    %1 = vector.shape_cast %0 : vector<1x16x32xf32> to vector<16x32xf32>
    %c0_2 = arith.constant 0 : index
    %c0_3 = arith.constant 0 : index
    %c0_4 = arith.constant 0 : index
    %2 = vector.load %arg2[%c0_2, %c0_3, %c0_4] : memref<1x16x32xf32, #tpu.memory_space<vmem>>, vector<1x16x32xf32>
    %3 = vector.shape_cast %2 : vector<1x16x32xf32> to vector<16x32xf32>
    %4 = arith.addf %1, %3 : vector<16x32xf32>
    %c0_5 = arith.constant 0 : index
    %c0_6 = arith.constant 0 : index
    %5 = vector.load %arg3[%c0_5, %c0_6] : memref<16x1xf32, #tpu.memory_space<vmem>>, vector<16x1xf32>
    %6 = vector.broadcast %5 : vector<16x1xf32> to vector<16x32xf32>
    %7 = arith.mulf %4, %6 : vector<16x32xf32>
    %c0_7 = arith.constant 0 : index
    %c0_8 = arith.constant 0 : index
    %8 = vector.load %arg4[%c0_7, %c0_8] : memref<16x1xf32, #tpu.memory_space<vmem>>, vector<16x1xf32>
    %9 = vector.broadcast %8 : vector<16x1xf32> to vector<16x32xf32>
    %10 = arith.addf %7, %9 : vector<16x32xf32>
    %c0_9 = arith.constant 0 : index
    %11 = memref.load %arg5[%c0_9] : memref<1xf32, #tpu.memory_space<smem>>
    %cst = arith.constant 0.000000e+00 : f32
    %12 = vector.broadcast %cst : f32 to vector<16x32xf32>
    %13 = arith.cmpf oge, %10, %12 : vector<16x32xf32>
    %14 = vector.broadcast %11 : f32 to vector<16x32xf32>
    %15 = arith.mulf %14, %10 : vector<16x32xf32>
    %16 = arith.select %13, %10, %15 : vector<16x32xi1>, vector<16x32xf32>
    %c0_10 = arith.constant 0 : index
    %c0_11 = arith.constant 0 : index
    %c0_12 = arith.constant 0 : index
    %17 = vector.load %arg6[%c0_10, %c0_11, %c0_12] : memref<1x16x32xf32, #tpu.memory_space<vmem>>, vector<1x16x32xf32>
    %18 = vector.shape_cast %17 : vector<1x16x32xf32> to vector<16x32xf32>
    %19 = vector.shape_cast %16 : vector<16x32xf32> to vector<1x16x32xf32>
    tpu.vector_store %arg6[%c0_10, %c0_11, %c0_12], %19 {strides = array<i32>} : memref<1x16x32xf32, #tpu.memory_space<vmem>>, vector<1x16x32xf32>,
    return
  }
  func.func @transform_0(%arg0: i32) -> (i32, i32, i32) {
    %c0_i32 = arith.constant 0 : i32
    %c0_i32_0 = arith.constant 0 : i32
    %c0_i32_1 = arith.constant 0 : i32
    return %arg0, %c0_i32, %c0_i32_0 : i32, i32, i32
  }
  func.func @transform_1(%arg0: i32) -> (i32, i32, i32) {
    %c0_i32 = arith.constant 0 : i32
    %c0_i32_0 = arith.constant 0 : i32
    %c0_i32_1 = arith.constant 0 : i32
    return %arg0, %c0_i32, %c0_i32_0 : i32, i32, i32
  }
  func.func @transform_2(%arg0: i32) -> (i32, i32) {
    %c0_i32 = arith.constant 0 : i32
    %c0_i32_0 = arith.constant 0 : i32
    %c0_i32_1 = arith.constant 0 : i32
    return %c0_i32, %c0_i32_0 : i32, i32
  }
  func.func @transform_3(%arg0: i32) -> (i32, i32) {
    %c0_i32 = arith.constant 0 : i32
    %c0_i32_0 = arith.constant 0 : i32
    %c0_i32_1 = arith.constant 0 : i32
    return %c0_i32, %c0_i32_0 : i32, i32
  }
  func.func @transform_4(%arg0: i32) -> i32 {
    %c0_i32 = arith.constant 0 : i32
    %c0_i32_0 = arith.constant 0 : i32
    return %c0_i32 : i32
  }
  func.func @transform_5(%arg0: i32) -> (i32, i32, i32) {
    %c0_i32 = arith.constant 0 : i32
    %c0_i32_0 = arith.constant 0 : i32
    %c0_i32_1 = arith.constant 0 : i32
    return %arg0, %c0_i32, %c0_i32_0 : i32, i32, i32
  }
}

module attributes {stable_mosaic.version = 11 : i64} {
  func.func @_mask_head_kernel(%arg0: i32, %arg1: memref<1x16x32xf32, #tpu.memory_space<vmem>>, %arg2: memref<64x16xf32, #tpu.memory_space<vmem>>, %arg3: memref<64x1xf32, #tpu.memory_space<vmem>>, %arg4: memref<1xf32, #tpu.memory_space<smem>>, %arg5: memref<1x32x32xf32, #tpu.memory_space<vmem>>, %arg6: memref<1x64x32xf32, #tpu.memory_space<vmem>>) attributes {dimension_semantics = [#tpu.dimension_semantics<parallel>], iteration_bounds = array<i64: 2>, scalar_prefetch = 0 : i64, scratch_operands = 0 : i64, tpu.core_type = #tpu.core_type<tc>, window_params = [{transform_indices = @transform_0, window_bounds = array<i64: 1, 16, 32>}, {pipeline_mode = #tpu.pipeline_mode<synchronous>, transform_indices = @transform_1, window_bounds = array<i64: 64, 16>}, {pipeline_mode = #tpu.pipeline_mode<synchronous>, transform_indices = @transform_2, window_bounds = array<i64: 64, 1>}, {transform_indices = @transform_3, window_bounds = array<i64: 1>}, {transform_indices = @transform_4, window_bounds = array<i64: 1, 32, 32>}, {transform_indices = @transform_5, window_bounds = array<i64: 1, 64, 32>}]} {
    %c0 = arith.constant 0 : index
    %c0_0 = arith.constant 0 : index
    %c0_1 = arith.constant 0 : index
    %0 = vector.load %arg1[%c0, %c0_0, %c0_1] : memref<1x16x32xf32, #tpu.memory_space<vmem>>, vector<1x16x32xf32>
    %1 = vector.shape_cast %0 : vector<1x16x32xf32> to vector<16x32xf32>
    %c0_2 = arith.constant 0 : index
    %2 = memref.load %arg4[%c0_2] : memref<1xf32, #tpu.memory_space<smem>>
    %cst = arith.constant 0.000000e+00 : f32
    %3 = vector.broadcast %cst : f32 to vector<16x32xf32>
    %4 = arith.cmpf oge, %1, %3 : vector<16x32xf32>
    %5 = vector.broadcast %2 : f32 to vector<16x32xf32>
    %6 = arith.mulf %5, %1 : vector<16x32xf32>
    %7 = arith.select %4, %1, %6 : vector<16x32xi1>, vector<16x32xf32>
    %c0_3 = arith.constant 0 : index
    %c0_4 = arith.constant 0 : index
    %8 = vector.load %arg2[%c0_3, %c0_4] : memref<64x16xf32, #tpu.memory_space<vmem>>, vector<64x16xf32>
    %cst_5 = arith.constant dense<0.000000e+00> : vector<64x32xf32>
    %9 = tpu.matmul %8, %7, %cst_5 {dimension_numbers = #tpu.dot_dimension_numbers<[1], [0], [0], [1], [0, 0, 1, 1], [], []>} : vector<64x16xf32>, vector<16x32xf32>, vector<64x32xf32> -> vector<64x32xf32>
    %c0_6 = arith.constant 0 : index
    %c0_7 = arith.constant 0 : index
    %10 = vector.load %arg3[%c0_6, %c0_7] : memref<64x1xf32, #tpu.memory_space<vmem>>, vector<64x1xf32>
    %11 = vector.broadcast %10 : vector<64x1xf32> to vector<64x32xf32>
    %12 = arith.addf %9, %11 : vector<64x32xf32>
    %cst_8 = arith.constant 0.000000e+00 : f32
    %13 = vector.broadcast %cst_8 : f32 to vector<64x32xf32>
    %14 = arith.maximumf %12, %13 : vector<64x32xf32>
    %c0_9 = arith.constant 0 : index
    %c0_10 = arith.constant 0 : index
    %c0_11 = arith.constant 0 : index
    %15 = vector.load %arg5[%c0_9, %c0_10, %c0_11] : memref<1x32x32xf32, #tpu.memory_space<vmem>>, vector<1x32x32xf32>
    %16 = vector.shape_cast %15 : vector<1x32x32xf32> to vector<32x32xf32>
    %17 = vector.extract_strided_slice %14 {offsets = [0, 0], sizes = [32, 32], strides = [1, 1]} : vector<64x32xf32> to vector<32x32xf32>
    %18 = arith.mulf %17, %16 : vector<32x32xf32>
    %19 = vector.extract_strided_slice %14 {offsets = [32, 0], sizes = [32, 32], strides = [1, 1]} : vector<64x32xf32> to vector<32x32xf32>
    %20 = arith.mulf %19, %16 : vector<32x32xf32>
    %21 = tpu.concatenate %18, %20 in 0 : vector<32x32xf32>, vector<32x32xf32> -> vector<64x32xf32>
    %c0_12 = arith.constant 0 : index
    %c0_13 = arith.constant 0 : index
    %c0_14 = arith.constant 0 : index
    %22 = vector.load %arg6[%c0_12, %c0_13, %c0_14] : memref<1x64x32xf32, #tpu.memory_space<vmem>>, vector<1x64x32xf32>
    %23 = vector.shape_cast %22 : vector<1x64x32xf32> to vector<64x32xf32>
    %24 = vector.shape_cast %21 : vector<64x32xf32> to vector<1x64x32xf32>
    tpu.vector_store %arg6[%c0_12, %c0_13, %c0_14], %24 {strides = array<i32>} : memref<1x64x32xf32, #tpu.memory_space<vmem>>, vector<1x64x32xf32>,
    return
  }
  func.func @transform_0(%arg0: i32) -> (i32, i32, i32) {
    %c0_i32 = arith.constant 0 : i32
    %c0_i32_0 = arith.constant 0 : i32
    %c0_i32_1 = arith.constant 0 : i32
    return %arg0, %c0_i32, %c0_i32_0 : i32, i32, i32
  }
  func.func @transform_1(%arg0: i32) -> (i32, i32) {
    %c0_i32 = arith.constant 0 : i32
    %c0_i32_0 = arith.constant 0 : i32
    %c0_i32_1 = arith.constant 0 : i32
    return %c0_i32, %c0_i32_0 : i32, i32
  }
  func.func @transform_2(%arg0: i32) -> (i32, i32) {
    %c0_i32 = arith.constant 0 : i32
    %c0_i32_0 = arith.constant 0 : i32
    %c0_i32_1 = arith.constant 0 : i32
    return %c0_i32, %c0_i32_0 : i32, i32
  }
  func.func @transform_3(%arg0: i32) -> i32 {
    %c0_i32 = arith.constant 0 : i32
    %c0_i32_0 = arith.constant 0 : i32
    return %c0_i32 : i32
  }
  func.func @transform_4(%arg0: i32) -> (i32, i32, i32) {
    %c0_i32 = arith.constant 0 : i32
    %c0_i32_0 = arith.constant 0 : i32
    %c0_i32_1 = arith.constant 0 : i32
    return %arg0, %c0_i32, %c0_i32_0 : i32, i32, i32
  }
  func.func @transform_5(%arg0: i32) -> (i32, i32, i32) {
    %c0_i32 = arith.constant 0 : i32
    %c0_i32_0 = arith.constant 0 : i32
    %c0_i32_1 = arith.constant 0 : i32
    return %arg0, %c0_i32, %c0_i32_0 : i32, i32, i32
  }
}

module attributes {stable_mosaic.version = 11 : i64} {
  func.func @_matmul_kernel(%arg0: i32, %arg1: i32, %arg2: memref<1x320x64xf32, #tpu.memory_space<vmem>>, %arg3: memref<2x320xf32, #tpu.memory_space<vmem>>, %arg4: memref<1x2x64xf32, #tpu.memory_space<vmem>>) attributes {dimension_semantics = [#tpu.dimension_semantics<parallel>, #tpu.dimension_semantics<parallel>], iteration_bounds = array<i64: 2, 1>, scalar_prefetch = 0 : i64, scratch_operands = 0 : i64, tpu.core_type = #tpu.core_type<tc>, window_params = [{transform_indices = @transform_0, window_bounds = array<i64: 1, 320, 64>}, {pipeline_mode = #tpu.pipeline_mode<synchronous>, transform_indices = @transform_1, window_bounds = array<i64: 2, 320>}, {transform_indices = @transform_2, window_bounds = array<i64: 1, 2, 64>}]} {
    %c0 = arith.constant 0 : index
    %c0_0 = arith.constant 0 : index
    %0 = vector.load %arg3[%c0, %c0_0] : memref<2x320xf32, #tpu.memory_space<vmem>>, vector<2x320xf32>
    %c0_1 = arith.constant 0 : index
    %c0_2 = arith.constant 0 : index
    %c0_3 = arith.constant 0 : index
    %1 = vector.load %arg2[%c0_1, %c0_2, %c0_3] : memref<1x320x64xf32, #tpu.memory_space<vmem>>, vector<1x320x64xf32>
    %2 = vector.shape_cast %1 : vector<1x320x64xf32> to vector<320x64xf32>
    %cst = arith.constant dense<0.000000e+00> : vector<2x64xf32>
    %3 = tpu.matmul %0, %2, %cst {dimension_numbers = #tpu.dot_dimension_numbers<[1], [0], [0], [1], [0, 0, 1, 1], [], []>} : vector<2x320xf32>, vector<320x64xf32>, vector<2x64xf32> -> vector<2x64xf32>
    %c0_4 = arith.constant 0 : index
    %c0_5 = arith.constant 0 : index
    %c0_6 = arith.constant 0 : index
    %4 = vector.load %arg4[%c0_4, %c0_5, %c0_6] : memref<1x2x64xf32, #tpu.memory_space<vmem>>, vector<1x2x64xf32>
    %5 = vector.shape_cast %4 : vector<1x2x64xf32> to vector<2x64xf32>
    %6 = vector.shape_cast %3 : vector<2x64xf32> to vector<1x2x64xf32>
    tpu.vector_store %arg4[%c0_4, %c0_5, %c0_6], %6 {strides = array<i32>} : memref<1x2x64xf32, #tpu.memory_space<vmem>>, vector<1x2x64xf32>,
    return
  }
  func.func @transform_0(%arg0: i32, %arg1: i32) -> (i32, i32, i32) {
    %c0_i32 = arith.constant 0 : i32
    %c0_i32_0 = arith.constant 0 : i32
    return %arg0, %c0_i32, %arg1 : i32, i32, i32
  }
  func.func @transform_1(%arg0: i32, %arg1: i32) -> (i32, i32) {
    %c0_i32 = arith.constant 0 : i32
    %c0_i32_0 = arith.constant 0 : i32
    %c0_i32_1 = arith.constant 0 : i32
    return %c0_i32, %c0_i32_0 : i32, i32
  }
  func.func @transform_2(%arg0: i32, %arg1: i32) -> (i32, i32, i32) {
    %c0_i32 = arith.constant 0 : i32
    %c0_i32_0 = arith.constant 0 : i32
    return %arg0, %c0_i32, %arg1 : i32, i32, i32
  }
}

</mosaic_0001>

<bundles_post_ra>
// kernel: _lambda_.22
= control target key start
LH: loop header
LB: loop body
LE: loop exit
PB: predicated region body
PF: predicated region fallthrough
CT: control target
= control target key end

     0   :  { %s597_s18 = smov 0   ;;  %s690_s0 = inlined_call_operand.vmem [shape: f32[2,32,32], index: 0, kind: input, shape index: {}]   ;;  %s691_s1 = inlined_call_operand.vmem [shape: f32[32,1], index: 1, kind: input, shape index: {}]   ;;  %s692_s2 = inlined_call_operand.vmem [shape: f32[32,1], index: 2, kind: input, shape index: {}]   ;;  %s693_s3 = inlined_call_operand.vmem [shape: f32[16,32], index: 3, kind: input, shape index: {}]   ;;  %s694_s4 = inlined_call_operand.vmem [shape: f32[16,1], index: 4, kind: input, shape index: {}]   ;;  %s695_s5 = inlined_call_operand.vmem [shape: f32[2,16,32], index: 5, kind: output, shape index: {}]  }
   0x1 LB: > { %s497_s19 = sadd.s32 4294967295, %s563_s18   ;;  %p501_p0 = scmp.ge.s32.totalorder %s563_s18, 1  ;;  %s563_s18 = sphi %s597_s18, %s15_s18  }
   0x2   : > { %p187_p1 = scmp.lt.s32.totalorder %s563_s18, 3 }
   0x4   : > { %p188_p2 = pnand %p501_p0, %p187_p1 }
   0x5   : > { %p215_p3 = scmp.lt.s32.totalorder (!%p188_p2), %s497_s19, 1  ;;  %v279_v0 = vld [vmem:[%s691_s1] sm:$0xff] (!%p188_p2)  ;;  %v565_v1 = vmov (!%p188_p2), 0   ;;  %v280_v2 = vld [vmem:[%s691_s1 + $0x8] sm:$0xff] (!%p188_p2)  ;;  %vm229_vm0 = vcmask (!%p188_p2), 261120   ;;  %v282_v11 = vld [vmem:[%s691_s1 + $0x18] sm:$0xff] (!%p188_p2) }
   0x6   : > { %191 = sbr.rel (%p188_p2) target bundleno = 532 (0x214), region = 40  ;;  %553 = vset.pattern.permute.xlu1 (!%p188_p2), %v565_v1  ;;  %554 = vset.pattern.permute.xlu0 (!%p188_p2), %v565_v1  ;;  %v317_v22 = vld [vmem:[%s692_s2] sm:$0xff] (!%p188_p2)  ;;  %v318_v27 = vld [vmem:[%s692_s2 + $0x8] sm:$0xff] (!%p188_p2)  ;;  %v319_v28 = vld [vmem:[%s692_s2 + $0x10] sm:$0xff] (!%p188_p2)  ;;  %s566_s29 = smov (!%p188_p2), 0.0  }
   0x7   : > { %290 = vperm.xlu1 (!%p188_p2), %553, %v279_v0   ;;  %v320_v29 = vld [vmem:[%s692_s2 + $0x18] sm:$0xff] (!%p188_p2)  ;;  %v347_v30 = vld [vmem:[%s694_s4] sm:$0xff] (!%p188_p2)  ;;  %v348_v31 = vld [vmem:[%s694_s4 + $0x8] sm:$0xff] (!%p188_p2) }
   0x8   : > { %v281_v32 = vld [vmem:[%s691_s1 + $0x10] sm:$0xff] (!%p188_p2)  ;;  %v345_v47 = vld [vmem:[%s693_s3] sm:$0xff] (!%p188_p2) }
   0x9   : > { %526 = vmatprep.mubr.msk.f32.mxu0 (!%p188_p2), %vm229_vm0, %v345_v47 }
   0xb   : > { %295 = vperm.xlu1 (!%p188_p2), %553, %v280_v2  }
   0xd   : > { %s697_s19 = smov (!%p215_p3, %s497_s19), 1 }
   0xe   : > { %s510_s24 = sshll.u32 %s697_s19, 5  ;;  %s511_s10 = sshll.u32 %s697_s19, 4 }
   0xf   : > { %s219_s27 = scalar_lea.vmem %s690_s0, %s510_s24  ;;  %305 = vperm.xlu1 %553, %v282_v11   ;;  %s224_s13 = scalar_lea.vmem %s695_s5, %s511_s10 }
  0x10   : > { %v617_v3 = vld [vmem:[%s219_s27] sm:$0xff]  ;;  %v619_v4 = vld [vmem:[%s219_s27 + $0x8] sm:$0xff]  ;;  %v621_v5 = vld [vmem:[%s219_s27 + $0x10] sm:$0xff] }
  0x11   : > { %v623_v6 = vld [vmem:[%s219_s27 + $0x18] sm:$0xff]  ;;  %v230_v7 = vsel %vm229_vm0, %v617_v3, 0.0  ;;  %v231_v8 = vsel %vm229_vm0, %v619_v4, 0.0  ;;  %v233_v9 = vsel %vm229_vm0, %v621_v5, 0.0  ;;  %v249_v10 = vmul.f32 %v617_v3, %v617_v3 }
  0x12   : > { %v232_v12 = vadd.f32 %v231_v8, %v230_v7  ;;  %v250_v13 = vmul.f32 %v619_v4, %v619_v4  ;;  %v251_v14 = vmul.f32 %v621_v5, %v621_v5  ;;  %v235_v15 = vsel %vm229_vm0, %v623_v6, 0.0 }
  0x13   : > { %v252_v16 = vmul.f32 %v623_v6, %v623_v6  ;;  %v253_v17 = vsel %vm229_vm0, %v249_v10, 0.0  ;;  %323 = vperm.xlu1 %553, %v317_v22  }
  0x14   : > { %v234_v18 = vadd.f32 %v233_v9, %v232_v12  ;;  %v254_v19 = vsel %vm229_vm0, %v250_v13, 0.0  ;;  %v256_v20 = vsel %vm229_vm0, %v251_v14, 0.0  ;;  %v346_v14 = vld [vmem:[%s693_s3 + $0x8] sm:$0xff] }
  0x15   : > { %v255_v21 = vadd.f32 %v254_v19, %v253_v17  ;;  %v258_v24 = vsel %vm229_vm0, %v252_v16, 0.0 }
  0x16   : > { %v236_v23 = vadd.f32 %v235_v15, %v234_v18 }
  0x17   : > { %v257_v25 = vadd.f32 %v256_v20, %v255_v21  ;;  %328 = vperm.xlu1 %553, %v318_v27  }
  0x18   : > { %237 = vadd.xlane.f32.xlu0 %v236_v23 }
  0x19   : > { %v259_v26 = vadd.f32 %v258_v24, %v257_v25 }
  0x1b   : > { %333 = vperm.xlu1 %553, %v319_v28  }
  0x1c   : > { %260 = vadd.xlane.f32.xlu0 %v259_v26 }
  0x1f   : > { %338 = vperm.xlu1 %553, %v320_v29  }
  0x23   : > { %351 = vperm.xlu1 %553, %v347_v30  }
  0x27   : > { %356 = vperm.xlu1 %553, %v348_v31  }
  0x32   : > { %300 = vperm.xlu0 %554, %v281_v32  }
  0x86   : > { %v291_v50 = vpop.permute.xlu1 %290 }
  0x8a   : > { %v296_v51 = vpop.permute.xlu1 %295 }
  0x8e   : > { %v306_v52 = vpop.permute.xlu1 %305 }
  0x92   : > { %v324_v53 = vpop.permute.xlu1 %323 }
  0x96   : > { %v329_v54 = vpop.permute.xlu1 %328 }
  0x9a   : > { %v334_v61 = vpop.permute.xlu1 %333 }
  0xa5   : > { %v238_v33 = vpop.xlane.xlu0 %237 }
  0xa6   : > { %v239_v34 = vrot.slane %v238_v33, 4 }
  0xa8   : > { %v240_v35 = vadd.f32 %v239_v34, %v238_v33 }
  0xa9   : > { %v261_v36 = vpop.xlane.xlu0 %260 }
  0xaa   : > { %v241_v37 = vrot.slane %v240_v35, 2  ;;  %v262_v38 = vrot.slane %v261_v36, 4 }
  0xac   : > { %v263_v39 = vadd.f32 %v262_v38, %v261_v36  ;;  %v242_v40 = vadd.f32 %v241_v37, %v240_v35 }
  0xae   : > { %v264_v41 = vrot.slane %v263_v39, 2  ;;  %v243_v42 = vrot.slane %v242_v40, 1 }
  0xb0   : > { %v244_v43 = vadd.f32 %v243_v42, %v242_v40  ;;  %v265_v44 = vadd.f32 %v264_v41, %v263_v39 }
  0xb1   : > { %v301_v60 = vpop.permute.xlu0 %300 }
  0xb2   : > { %537 = vpush %v244_v43  ;;  %v266_v45 = vrot.slane %v265_v44, 1 }
  0xb4   : > { %v267_v46 = vadd.f32 %v266_v45, %v265_v44 }
  0xb6   : > { %539 = vpush %v267_v46 }
  0xe3   : > { %s538_s23 = spop %537 }
  0xe4   : > { %s248_s24 = smul.f32 0.0009765625, %s538_s23 }
  0xe6   : > { %s272_s25 = smul.f32 %s248_s24, %s248_s24  ;;  %v283_v55 = vstv %s248_s24 }
  0xe7   : > { %s540_s26 = spop %539  ;;  %v284_v56 = vsub.f32 %v617_v3, %v283_v55  ;;  %v285_v57 = vsub.f32 %v619_v4, %v283_v55  ;;  %v287_v58 = vsub.f32 %v623_v6, %v283_v55  ;;  %v286_v59 = vsub.f32 %v621_v5, %v283_v55  ;;  %v339_v3 = vpop.permute.xlu1 %338 }
  0xe8   : > { %s271_s27 = smul.f32 0.0009765625, %s540_s26 }
  0xe9   : > { %v309_v62 = vmul.f32 %v296_v51, %v285_v57  ;;  %v311_v63 = vmul.f32 %v306_v52, %v287_v58  ;;  %v310_v0 = vmul.f32 %v301_v60, %v286_v59  ;;  %v308_v1 = vmul.f32 %v291_v50, %v284_v56 }
  0xea   : > { %s273_s28 = ssub.f32 %s271_s27, %s272_s25 }
  0xeb   : > { %v352_v15 = vpop.permute.xlu1 %351 }
  0xec   : > { %s274_s30 = smax.f32 %s566_s29, %s273_s28 }
  0xed   : > { %s275_s6 = sadd.f32 1e-08, %s274_s30 }
  0xef   : > { %v276_v48 = vstv %s275_s6  ;;  %v357_v16 = vpop.permute.xlu1 %356 }
  0xf0   : > { %555 = vrsqrt.f32 %v276_v48 }
  0xfa   : > { %v556_v49 = vpop.eup %555 }
  0xfb   : > { %541 = vpush %v556_v49 }
 0x12c   : > { %s542_s7 = spop %541 }
 0x12d   : > { %v312_v2 = vstv %s542_s7 }
 0x12e   : > { %v313_v7 = vmul.f32 %v312_v2, %v308_v1  ;;  %v314_v8 = vmul.f32 %v312_v2, %v309_v62  ;;  %v315_v9 = vmul.f32 %v312_v2, %v310_v0  ;;  %v316_v10 = vmul.f32 %v312_v2, %v311_v63 }
 0x130   : > { %v343_v11 = vadd.f32 %v334_v61, %v315_v9  ;;  %v344_v4 = vadd.f32 %v339_v3, %v316_v10  ;;  %v341_v12 = vadd.f32 %v324_v53, %v313_v7  ;;  %v342_v6 = vadd.f32 %v329_v54, %v314_v8 }
 0x132   : > { %v529_v13 = vpack.c.bf16 %v342_v6, %v341_v12  ;;  %v533_v5 = vpack.c.bf16 %v344_v4, %v343_v11 }
 0x134   : > { %530 = vmatprep.subr.bf16.mxu0 %v529_v13 }
 0x135   : > { %532 = vmatpush3.bf16.msra.mxu0 %v529_v13 }
 0x136   : > { %534 = vmatprep.subr.bf16.mxu0 %v533_v5 }
 0x139   : > { %536 = vmatpush3.bf16.msra.mxu0 %v533_v5 }
 0x13c   : > { %527 = vmatmul.mubr.msk.f32.vlgmr.msra.gmra.mrb[0].mxu0 %vm229_vm0, %v346_v14 }
 0x20f   : > { %v528_v17 = vpop.f32.mrb[0].mxu0 }
 0x210   : > { %v437_v18 = vadd.f32 %v528_v17, %v357_v16  ;;  %v431_v19 = vpop.f32.mrb[1].mxu0 }
 0x211   : > { %v432_v20 = vadd.f32 %v431_v19, %v352_v15 }
 0x212   : > { %441 = vst.msk [vmem:[%s224_s13 + $0x8] sm:$0xff] %vm229_vm0, %v437_v18 }
 0x213   : > { %440 = vst.msk [vmem:[%s224_s13] sm:$0xff] %vm229_vm0, %v432_v20 }
 0x214 PF: > { %s15_s18 = sadd.s32 1, %s563_s18  }
 0x215   : > { %p12_p4 = scmp.ge.s32.totalorder %s15_s18, 4  }
 0x217   :  { %14 = sbr.rel (!%p12_p4) target bundleno = 1 (0x1), region = 70 }

// kernel: _lambda_.23
= control target key start
LH: loop header
LB: loop body
LE: loop exit
PB: predicated region body
PF: predicated region fallthrough
CT: control target
= control target key end

     0   :  { %s677_s23 = smov 0   ;;  %s786_s0 = inlined_call_operand.vmem [shape: f32[2,16,32], index: 0, kind: input, shape index: {}]   ;;  %s787_s1 = inlined_call_operand.vmem [shape: f32[32,16], index: 1, kind: input, shape index: {}]   ;;  %s788_s2 = inlined_call_operand.vmem [shape: f32[32,1], index: 2, kind: input, shape index: {}]   ;;  %s789_s3 = inlined_call_operand.vmem [shape: f32[32,1], index: 3, kind: input, shape index: {}]   ;;  %s790_s4 = inlined_call_operand.vmem [shape: f32[32,1], index: 4, kind: input, shape index: {}]   ;;  %s791_s5 = inlined_call_operand.<no memory space> [shape: f32[1], index: 5, kind: input, shape index: {}]   ;;  %s792_s6 = inlined_call_operand.vmem [shape: f32[2,32,32], index: 6, kind: output, shape index: {}]  }
   0x1   :  { %11 = sst [smem:[#allocation2]] %s791_s5 }
   0x2 LB: > { %s570_s24 = sadd.s32 4294967295, %s635_s23   ;;  %p574_p0 = scmp.ge.s32.totalorder %s635_s23, 1  ;;  %s635_s23 = sphi %s677_s23, %s17_s23  }
   0x3   : > { %p213_p1 = scmp.lt.s32.totalorder %s635_s23, 3 }
   0x5   : > { %p214_p2 = pnand %p574_p0, %p213_p1 }
   0x6   : > { %p243_p3 = scmp.lt.s32.totalorder (!%p214_p2), %s570_s24, 1  ;;  %v253_v0 = vld [vmem:[%s787_s1] sm:$0xff] (!%p214_p2)  ;;  %vm283_vm0 = vcmask (!%p214_p2), 130048   ;;  %v255_v1 = vld [vmem:[%s787_s1 + $0x10] sm:$0xff] (!%p214_p2)  ;;  %v637_v4 = vmov (!%p214_p2), 0   ;;  %v260_v5 = vld [vmem:[%s788_s2 + $0x8] sm:$0xff] (!%p214_p2) }
   0x7   : > { %217 = sbr.rel (%p214_p2) target bundleno = 533 (0x215), region = 44  ;;  %597 = vmatprep.mubr.msk.f32.mxu0 (!%p214_p2), %vm283_vm0, %v253_v0  ;;  %600 = vmatprep.mubr.msk.f32.mxu1 (!%p214_p2), %vm283_vm0, %v255_v1  ;;  %v259_v2 = vld [vmem:[%s788_s2] sm:$0xff] (!%p214_p2)  ;;  %v261_v3 = vld [vmem:[%s788_s2 + $0x10] sm:$0xff] (!%p214_p2)  ;;  %v262_v6 = vld [vmem:[%s788_s2 + $0x18] sm:$0xff] (!%p214_p2)  ;;  %vm381_vm1 = vcmask (!%p214_p2), 261120   ;;  %s638_s19 = smov (!%p214_p2), 0.0  }
   0x8   : > { %625 = vset.pattern.permute.xlu0 (!%p214_p2), %v637_v4  ;;  %626 = vset.pattern.permute.xlu1 (!%p214_p2), %v637_v4  ;;  %v254_v10 = vld [vmem:[%s787_s1 + $0x8] sm:$0xff] (!%p214_p2)  ;;  %v256_v11 = vld [vmem:[%s787_s1 + $0x18] sm:$0xff] (!%p214_p2)  ;;  %v431_v43 = vld [vmem:[%s789_s3] sm:$0xff] (!%p214_p2)  ;;  %s497_s22 = sld [smem:[#allocation2]] (!%p214_p2) }
   0x9   : > { %265 = vperm.xlu0 (!%p214_p2), %625, %v259_v2   ;;  %275 = vperm.xlu1 (!%p214_p2), %626, %v261_v3   ;;  %v432_v42 = vld [vmem:[%s789_s3 + $0x8] sm:$0xff] (!%p214_p2)  ;;  %v434_v44 = vld [vmem:[%s789_s3 + $0x18] sm:$0xff] (!%p214_p2)  ;;  %v433_v45 = vld [vmem:[%s789_s3 + $0x10] sm:$0xff] (!%p214_p2) }
   0xa   : > { %v470_v46 = vld [vmem:[%s790_s4 + $0x8] sm:$0xff] (!%p214_p2)  ;;  %v469_v47 = vld [vmem:[%s790_s4] sm:$0xff] (!%p214_p2)  ;;  %v472_v48 = vld [vmem:[%s790_s4 + $0x18] sm:$0xff] (!%p214_p2) }
   0xb   : > { %v471_v49 = vld [vmem:[%s790_s4 + $0x10] sm:$0xff] (!%p214_p2) }
   0xd   : > { %270 = vperm.xlu0 (!%p214_p2), %625, %v260_v5   ;;  %280 = vperm.xlu1 (!%p214_p2), %626, %v262_v6  }
   0xe   : > { %s794_s24 = smov (!%p243_p3, %s570_s24), 1 }
   0xf   : > { %s585_s8 = sshll.u32 %s794_s24, 4  ;;  %s586_s26 = sshll.u32 %s794_s24, 5 }
  0x10   : > { %s247_s15 = scalar_lea.vmem %s786_s0, %s585_s8  ;;  %s252_s28 = scalar_lea.vmem %s792_s6, %s586_s26 }
  0x11   : > { %v257_v7 = vld [vmem:[%s247_s15] sm:$0xff]  ;;  %v258_v8 = vld [vmem:[%s247_s15 + $0x8] sm:$0xff] }
  0x12   : > { %v603_v9 = vpack.c.bf16 %v258_v8, %v257_v7 }
  0x14   : > { %604 = vmatprep.subr.bf16.mxu0 %v603_v9  ;;  %607 = vmatprep.subr.bf16.mxu1 %v603_v9 }
  0x15   : > { %606 = vmatpush3.bf16.msra.mxu0 %v603_v9  ;;  %608 = vmatpush3.bf16.msra.mxu1 %v603_v9 }
  0x18   : > { %598 = vmatmul.mubr.msk.f32.vlgmr.msra.gmra.mrb[0].mxu0 %vm283_vm0, %v254_v10  ;;  %601 = vmatmul.mubr.msk.f32.vlgmr.msra.gmra.mrb[0].mxu1 %vm283_vm0, %v256_v11 }
  0x88   : > { %v266_v12 = vpop.permute.xlu0 %265  ;;  %v276_v13 = vpop.permute.xlu1 %275 }
  0x8c   : > { %v271_v14 = vpop.permute.xlu0 %270  ;;  %v281_v15 = vpop.permute.xlu1 %280 }
  0xeb   : > { %v599_v16 = vpop.f32.mrb[0].mxu0  ;;  %v602_v17 = vpop.f32.mrb[0].mxu1 }
  0xec   : > { %v719_v18 = vadd.f32 %v599_v16, %v271_v14  ;;  %v362_v19 = vpop.f32.mrb[1].mxu0  ;;  %v372_v20 = vpop.f32.mrb[1].mxu1  ;;  %v721_v21 = vadd.f32 %v602_v17, %v281_v15 }
  0xed   : > { %v723_v22 = vadd.f32 %v362_v19, %v266_v12  ;;  %v725_v23 = vadd.f32 %v372_v20, %v276_v13 }
  0xee   : > { %v383_v24 = vsel %vm381_vm1, %v719_v18, 0.0  ;;  %v402_v25 = vmul.f32 %v719_v18, %v719_v18  ;;  %v404_v32 = vmul.f32 %v721_v21, %v721_v21  ;;  %v387_v36 = vsel %vm381_vm1, %v721_v21, 0.0 }
  0xef   : > { %v382_v26 = vsel %vm381_vm1, %v723_v22, 0.0  ;;  %v401_v27 = vmul.f32 %v723_v22, %v723_v22  ;;  %v403_v28 = vmul.f32 %v725_v23, %v725_v23  ;;  %v385_v31 = vsel %vm381_vm1, %v725_v23, 0.0 }
  0xf0   : > { %v384_v29 = vadd.f32 %v383_v24, %v382_v26  ;;  %v406_v30 = vsel %vm381_vm1, %v402_v25, 0.0  ;;  %v410_v40 = vsel %vm381_vm1, %v404_v32, 0.0 }
  0xf1   : > { %v405_v33 = vsel %vm381_vm1, %v401_v27, 0.0  ;;  %v408_v37 = vsel %vm381_vm1, %v403_v28, 0.0 }
  0xf2   : > { %v386_v34 = vadd.f32 %v385_v31, %v384_v29  ;;  %v407_v35 = vadd.f32 %v406_v30, %v405_v33 }
  0xf4   : > { %v388_v38 = vadd.f32 %v387_v36, %v386_v34  ;;  %v409_v39 = vadd.f32 %v408_v37, %v407_v35 }
  0xf6   : > { %389 = vadd.xlane.f32.xlu0 %v388_v38  ;;  %v411_v41 = vadd.f32 %v410_v40, %v409_v39 }
  0xf8   : > { %412 = vadd.xlane.f32.xlu1 %v411_v41 }
 0x109   : > { %447 = vperm.xlu1 %626, %v432_v42  }
 0x10c   : > { %442 = vperm.xlu0 %625, %v431_v43  }
 0x10d   : > { %457 = vperm.xlu1 %626, %v434_v44  }
 0x110   : > { %452 = vperm.xlu0 %625, %v433_v45  }
 0x111   : > { %480 = vperm.xlu1 %626, %v470_v46  }
 0x114   : > { %475 = vperm.xlu0 %625, %v469_v47  }
 0x115   : > { %490 = vperm.xlu1 %626, %v472_v48  }
 0x118   : > { %485 = vperm.xlu0 %625, %v471_v49  }
 0x183   : > { %v390_v50 = vpop.xlane.xlu0 %389 }
 0x184   : > { %v391_v51 = vrot.slane %v390_v50, 4 }
 0x185   : > { %v413_v52 = vpop.xlane.xlu1 %412 }
 0x186   : > { %v392_v53 = vadd.f32 %v391_v51, %v390_v50  ;;  %v414_v54 = vrot.slane %v413_v52, 4 }
 0x188   : > { %v393_v55 = vrot.slane %v392_v53, 2  ;;  %v415_v56 = vadd.f32 %v414_v54, %v413_v52 }
 0x189   : > { %v448_v2 = vpop.permute.xlu1 %447 }
 0x18a   : > { %v416_v57 = vrot.slane %v415_v56, 2  ;;  %v394_v58 = vadd.f32 %v393_v55, %v392_v53 }
 0x18b   : > { %v443_v3 = vpop.permute.xlu0 %442 }
 0x18c   : > { %v395_v59 = vrot.slane %v394_v58, 1  ;;  %v417_v60 = vadd.f32 %v416_v57, %v415_v56 }
 0x18d   : > { %v458_v4 = vpop.permute.xlu1 %457 }
 0x18e   : > { %v396_v61 = vadd.f32 %v395_v59, %v394_v58  ;;  %v418_v62 = vrot.slane %v417_v60, 1 }
 0x18f   : > { %v453_v5 = vpop.permute.xlu0 %452 }
 0x190   : > { %609 = vpush %v396_v61  ;;  %v419_v63 = vadd.f32 %v418_v62, %v417_v60 }
 0x191   : > { %v481_v11 = vpop.permute.xlu1 %480 }
 0x192   : > { %611 = vpush %v419_v63 }
 0x193   : > { %v476_v12 = vpop.permute.xlu0 %475 }
 0x197   : > { %v486_v26 = vpop.permute.xlu0 %485 }
 0x1c1   : > { %s610_s13 = spop %609 }
 0x1c2   : > { %s400_s14 = smul.f32 0.0009765625, %s610_s13 }
 0x1c3   : > { %s612_s15 = spop %611 }
 0x1c4   : > { %s424_s16 = smul.f32 %s400_s14, %s400_s14  ;;  %v435_v6 = vstv %s400_s14 }
 0x1c5   : > { %s423_s17 = smul.f32 0.0009765625, %s612_s15  ;;  %v436_v7 = vsub.f32 %v723_v22, %v435_v6  ;;  %v437_v8 = vsub.f32 %v719_v18, %v435_v6  ;;  %v438_v9 = vsub.f32 %v725_v23, %v435_v6  ;;  %v439_v10 = vsub.f32 %v721_v21, %v435_v6  ;;  %v491_v22 = vpop.permute.xlu1 %490 }
 0x1c6   : > { %v502_v18 = vstv %s497_s22 }
 0x1c7   : > { %s425_s18 = ssub.f32 %s423_s17, %s424_s16  ;;  %v460_v13 = vmul.f32 %v443_v3, %v436_v7  ;;  %v461_v14 = vmul.f32 %v448_v2, %v437_v8  ;;  %v462_v15 = vmul.f32 %v453_v5, %v438_v9  ;;  %v463_v16 = vmul.f32 %v458_v4, %v439_v10 }
 0x1c9   : > { %s426_s20 = smax.f32 %s638_s19, %s425_s18 }
 0x1ca   : > { %s427_s21 = sadd.f32 1e-08, %s426_s20 }
 0x1cc   : > { %v428_v0 = vstv %s427_s21 }
 0x1cd   : > { %627 = vrsqrt.f32 %v428_v0 }
 0x1d7   : > { %v628_v1 = vpop.eup %627 }
 0x1d8   : > { %613 = vpush %v628_v1 }
 0x209   : > { %s614_s25 = spop %613 }
 0x20a   : > { %v464_v17 = vstv %s614_s25 }
 0x20b   : > { %v465_v19 = vmul.f32 %v464_v17, %v460_v13  ;;  %v466_v20 = vmul.f32 %v464_v17, %v461_v14  ;;  %v467_v24 = vmul.f32 %v464_v17, %v462_v15  ;;  %v468_v25 = vmul.f32 %v464_v17, %v463_v16 }
 0x20d   : > { %v493_v23 = vadd.f32 %v476_v12, %v465_v19  ;;  %v494_v27 = vadd.f32 %v481_v11, %v466_v20  ;;  %v495_v21 = vadd.f32 %v486_v26, %v467_v24  ;;  %v496_v28 = vadd.f32 %v491_v22, %v468_v25 }
 0x20f   : > { %vm498_vm2 = vcmp.ge.f32.partialorder %v493_v23, 0.0  ;;  %vm499_vm3 = vcmp.ge.f32.partialorder %v494_v27, 0.0  ;;  %vm500_vm4 = vcmp.ge.f32.partialorder %v495_v21, 0.0  ;;  %vm501_vm5 = vcmp.ge.f32.partialorder %v496_v28, 0.0 }
 0x210   : > { %v503_v29 = vmul.f32 %v502_v18, %v493_v23  ;;  %v504_v30 = vmul.f32 %v502_v18, %v494_v27  ;;  %v505_v31 = vmul.f32 %v502_v18, %v495_v21  ;;  %v506_v32 = vmul.f32 %v502_v18, %v496_v28 }
 0x212   : > { %v507_v33 = vsel %vm498_vm2, %v493_v23, %v503_v29  ;;  %v508_v34 = vsel %vm499_vm3, %v494_v27, %v504_v30  ;;  %v509_v35 = vsel %vm500_vm4, %v495_v21, %v505_v31  ;;  %v510_v36 = vsel %vm501_vm5, %v496_v28, %v506_v32 }
 0x213   : > { %511 = vst.msk [vmem:[%s252_s28] sm:$0xff] %vm381_vm1, %v507_v33  ;;  %512 = vst.msk [vmem:[%s252_s28 + $0x8] sm:$0xff] %vm381_vm1, %v508_v34 }
 0x214   : > { %513 = vst.msk [vmem:[%s252_s28 + $0x10] sm:$0xff] %vm381_vm1, %v509_v35  ;;  %514 = vst.msk [vmem:[%s252_s28 + $0x18] sm:$0xff] %vm381_vm1, %v510_v36 }
 0x215 PF: > { %s17_s23 = sadd.s32 1, %s635_s23  }
 0x216   : > { %p14_p4 = scmp.ge.s32.totalorder %s17_s23, 4  }
 0x218   :  { %16 = sbr.rel (!%p14_p4) target bundleno = 2 (0x2), region = 74 }

// kernel: _lambda_.21
= control target key start
LH: loop header
LB: loop body
LE: loop exit
PB: predicated region body
PF: predicated region fallthrough
CT: control target
= control target key end

     0   :  { %s458_s9 = smov 0   ;;  %s460_s10 = smov 0   ;;  %s507_s0 = inlined_call_operand.vmem [shape: f32[2,5,32], index: 0, kind: input, shape index: {}]   ;;  %s508_s1 = inlined_call_operand.vmem [shape: f32[32,5], index: 1, kind: input, shape index: {}]   ;;  %s509_s2 = inlined_call_operand.vmem [shape: f32[2,32,32], index: 2, kind: output, shape index: {}]  }
   0x1   :  { %s462_s11 = smov 0  }
   0x2 LB: > { %s24_s12 = sadd.s32 1, %s437_s10  ;;  %p368_p0 = scmp.ge.s32.totalorder %s441_s11, 1  ;;  %s441_s11 = sphi %s462_s11, %s12_s11   ;;  %s437_s10 = sphi %s460_s10, %s511_s10   ;;  %s433_s9 = sphi %s458_s9, %s510_s9  }
   0x3   : > { %p26_p1 = scmp.ge.s32.totalorder %s24_s12, 2  ;;  %p130_p2 = scmp.lt.s32.totalorder %s441_s11, 3 }
   0x5   : > { %s513_s12 = smov (%p26_p1, %s24_s12), 0  ;;  %p131_p3 = pnand %p368_p0, %p130_p2 }
   0x6   : > { %p157_p4 = scmp.lt.s32.totalorder (!%p131_p3), %s433_s9, 1  ;;  %v172_v0 = vld [vmem:[%s508_s1] sm:$0xff] (!%p131_p3)  ;;  %vm177_vm0 = vcmask (!%p131_p3), 39936   ;;  %v174_v1 = vld [vmem:[%s508_s1 + $0x10] sm:$0xff] (!%p131_p3)  ;;  %vm190_vm1 = vcmask (!%p131_p3), 1044480   ;;  %v173_v3 = vld [vmem:[%s508_s1 + $0x8] sm:$0xff] (!%p131_p3) }
   0x7   : > { %134 = sbr.rel (%p131_p3) target bundleno = 234 (0xea), region = 28  ;;  %387 = vmatprep.mubr.msk.f32.mxu0 (!%p131_p3), %vm177_vm0, %v172_v0  ;;  %390 = vmatprep.mubr.msk.f32.mxu1 (!%p131_p3), %vm177_vm0, %v174_v1  ;;  %v175_v4 = vld [vmem:[%s508_s1 + $0x18] sm:$0xff] (!%p131_p3)  ;;  %vm279_vm2 = vcmask (!%p131_p3), 261120  }
   0xe   : > { %s515_s9 = smov (!%p157_p4, %s433_s9), 1 }
   0xf   : > { %s369_s17 = sshll.u32 %s515_s9, 3  ;;  %s379_s25 = sshll.u32 %s515_s9, 5 }
  0x10   : > { %s163_s20 = scalar_lea.vmem %s507_s0, %s369_s17  ;;  %s171_s28 = scalar_lea.vmem %s509_s2, %s379_s25 }
  0x11   : > { %v176_v2 = vld [vmem:[%s163_s20] sm:$0x1f] }
  0x12   : > { %385 = vmatprep.subr.msk.mxu0 %vm190_vm1, %v176_v2  ;;  %393 = vmatprep.subr.msk.mxu1 %vm190_vm1, %v176_v2 }
  0x13   : > { %386 = vmatpush3.msk.msra.mxu0 %vm190_vm1, %v176_v2  ;;  %394 = vmatpush3.msk.msra.mxu1 %vm190_vm1, %v176_v2 }
  0x14   : > { %388 = vmatmul.mubr.msk.f32.vlgmr.msra.gmra.mrb[0].mxu0 %vm177_vm0, %v173_v3  ;;  %391 = vmatmul.mubr.msk.f32.vlgmr.msra.gmra.mrb[0].mxu1 %vm177_vm0, %v175_v4 }
  0xe7   : > { %v389_v5 = vpop.f32.mrb[0].mxu0  ;;  %v392_v6 = vpop.f32.mrb[0].mxu1 }
  0xe8   : > { %281 = vst.msk [vmem:[%s171_s28 + $0x8] sm:$0xff] %vm279_vm2, %v389_v5  ;;  %283 = vst.msk [vmem:[%s171_s28 + $0x18] sm:$0xff] %vm279_vm2, %v392_v6  ;;  %v260_v7 = vpop.f32.mrb[1].mxu0  ;;  %v270_v8 = vpop.f32.mrb[1].mxu1 }
  0xe9   : > { %280 = vst.msk [vmem:[%s171_s28] sm:$0xff] %vm279_vm2, %v260_v7  ;;  %282 = vst.msk [vmem:[%s171_s28 + $0x10] sm:$0xff] %vm279_vm2, %v270_v8 }
  0xea PF: > { %s12_s11 = sadd.s32 1, %s441_s11   ;;  %s510_s9 = smov %s437_s10 }
  0xeb   : > { %p9_p5 = scmp.ge.s32.totalorder %s12_s11, 4   ;;  %s511_s10 = smov %s513_s12 }
  0xed   :  { %11 = sbr.rel (!%p9_p5) target bundleno = 2 (0x2), region = 58 }

// kernel: _lambda_.24
= control target key start
LH: loop header
LB: loop body
LE: loop exit
PB: predicated region body
PF: predicated region fallthrough
CT: control target
= control target key end

     0   :  { %s726_s18 = smov 0   ;;  %s866_s0 = inlined_call_operand.vmem [shape: f32[2,1,32,36], index: 0, kind: input, shape index: {}]   ;;  %s867_s1 = inlined_call_operand.vmem [shape: f32[32,5], index: 1, kind: input, shape index: {}]   ;;  %s868_s2 = inlined_call_operand.vmem [shape: f32[32,1], index: 2, kind: input, shape index: {}]   ;;  %s869_s3 = inlined_call_operand.vmem [shape: f32[32,1], index: 3, kind: input, shape index: {}]   ;;  %s870_s4 = inlined_call_operand.vmem [shape: f32[32,1], index: 4, kind: input, shape index: {}]   ;;  %s871_s5 = inlined_call_operand.vmem [shape: f32[2,32,32], index: 5, kind: output, shape index: {}]  }
   0x1 LB: > { %s624_s19 = sadd.s32 4294967295, %s684_s18   ;;  %p628_p0 = scmp.ge.s32.totalorder %s684_s18, 1  ;;  %s684_s18 = sphi %s726_s18, %s15_s18  }
   0x2   : > { %p187_p1 = scmp.lt.s32.totalorder %s684_s18, 3 }
   0x4   : > { %p188_p2 = pnand %p628_p0, %p187_p1 }
   0x5   : > { %v231_v0 = vld [vmem:[%s867_s1 + $0x10] sm:$0xff] (!%p188_p2)  ;;  %v229_v1 = vld [vmem:[%s867_s1] sm:$0xff] (!%p188_p2)  ;;  %v686_v2 = vmov (!%p188_p2), 1   ;;  %v230_v3 = vld [vmem:[%s867_s1 + $0x8] sm:$0xff] (!%p188_p2)  ;;  %v687_v4 = vmov (!%p188_p2), 2   ;;  %v688_v6 = vmov (!%p188_p2), 3  }
   0x6   : > { %191 = sbr.rel (%p188_p2) target bundleno = 584 (0x248), region = 40  ;;  %662 = vset.pattern.permute.xlu1 (!%p188_p2), %v686_v2  ;;  %661 = vset.pattern.permute.xlu0 (!%p188_p2), %v686_v2  ;;  %v232_v5 = vld [vmem:[%s867_s1 + $0x18] sm:$0xff] (!%p188_p2)  ;;  %v689_v7 = vmov (!%p188_p2), 4   ;;  %v690_v8 = vmov (!%p188_p2), 0   ;;  %v421_v9 = vld [vmem:[%s868_s2] sm:$0xff] (!%p188_p2)  ;;  %v422_v11 = vld [vmem:[%s868_s2 + $0x8] sm:$0xff] (!%p188_p2) }
   0x7   : > { %270 = vperm.xlu1 (!%p188_p2), %662, %v231_v0   ;;  %262 = vperm.xlu0 (!%p188_p2), %661, %v229_v1   ;;  %v424_v10 = vld [vmem:[%s868_s2 + $0x18] sm:$0xff] (!%p188_p2)  ;;  %v423_v12 = vld [vmem:[%s868_s2 + $0x10] sm:$0xff] (!%p188_p2)  ;;  %p215_p3 = scmp.lt.s32.totalorder (!%p188_p2), %s624_s19, 1  ;;  %s691_s15 = smov (!%p188_p2), 127   ;;  %vm449_vm0 = vcmask (!%p188_p2), 261120  }
   0x8   : > { %s692_s16 = smov (!%p188_p2), 126   ;;  %s693_s17 = smov (!%p188_p2), 125  }
   0x9   : > { %s694_s20 = smov (!%p188_p2), 124   ;;  %s695_s21 = smov (!%p188_p2), 0.0  }
   0xb   : > { %663 = vset.pattern.permute.xlu1 (!%p188_p2), %v687_v4  ;;  %266 = vperm.xlu0 (!%p188_p2), %661, %v230_v3  }
   0xc   : > { %302 = vperm.xlu1 (!%p188_p2), %663, %v229_v1  }
   0xd   : > { %s873_s19 = smov (!%p215_p3, %s624_s19), 1 }
   0xe   : > { %s635_s11 = sshll.u32 %s873_s19, 5 }
   0xf   : > { %664 = vset.pattern.permute.xlu0 %v687_v4  ;;  %s219_s14 = scalar_lea.vmem %s866_s0, %s635_s11  ;;  %s224_s27 = scalar_lea.vmem %s871_s5, %s635_s11 }
  0x10   : > { %665 = vset.pattern.permute.xlu1 %v686_v2  ;;  %306 = vperm.xlu0 %664, %v230_v3   ;;  %v770_v13 = vld [vmem:[%s219_s14] sm:$0xff]  ;;  %v773_v17 = vld [vmem:[%s219_s14 + $0x10] sm:$0xff]  ;;  %v775_v18 = vld [vmem:[%s219_s14 + $0x8] sm:$0xff] }
  0x11   : > { %274 = vperm.xlu1 %665, %v232_v5   ;;  %v781_v27 = vld [vmem:[%s219_s14 + $0x18] sm:$0xff] }
  0x14   : > { %667 = vset.pattern.permute.xlu0 %v688_v6 }
  0x15   : > { %666 = vset.pattern.permute.xlu1 %v687_v4  ;;  %342 = vperm.xlu0 %667, %v229_v1  }
  0x16   : > { %310 = vperm.xlu1 %666, %v231_v0  }
  0x19   : > { %350 = vperm.xlu0 %667, %v231_v0  }
  0x1a   : > { %668 = vset.pattern.permute.xlu1 %v688_v6 }
  0x1b   : > { %346 = vperm.xlu1 %668, %v230_v3  }
  0x1d   : > { %671 = vset.pattern.permute.xlu0 %v689_v7 }
  0x1e   : > { %386 = vperm.xlu0 %671, %v230_v3  }
  0x1f   : > { %669 = vset.pattern.permute.xlu1 %v687_v4 }
  0x20   : > { %314 = vperm.xlu1 %669, %v232_v5  }
  0x22   : > { %394 = vperm.xlu0 %671, %v232_v5  }
  0x24   : > { %670 = vset.pattern.permute.xlu1 %v689_v7 }
  0x25   : > { %382 = vperm.xlu1 %670, %v229_v1  }
  0x26   : > { %675 = vset.pattern.permute.xlu0 %v690_v8 }
  0x27   : > { %240 = vperm.xlu0 %675, %v230_v3  }
  0x29   : > { %672 = vset.pattern.permute.xlu1 %v688_v6 }
  0x2a   : > { %354 = vperm.xlu1 %672, %v232_v5  }
  0x2b   : > { %427 = vperm.xlu0 %675, %v421_v9  }
  0x2e   : > { %673 = vset.pattern.permute.xlu1 %v689_v7 }
  0x2f   : > { %390 = vperm.xlu1 %673, %v231_v0   ;;  %442 = vperm.xlu0 %675, %v424_v10  }
  0x33   : > { %674 = vset.pattern.permute.xlu1 %v690_v8 }
  0x34   : > { %235 = vperm.xlu1 %674, %v229_v1  }
  0x38   : > { %245 = vperm.xlu1 %674, %v231_v0  }
  0x3c   : > { %250 = vperm.xlu1 %674, %v232_v5  }
  0x40   : > { %432 = vperm.xlu1 %674, %v422_v11  }
  0x44   : > { %437 = vperm.xlu1 %674, %v423_v12  }
  0x86   : > { %v271_v14 = vpop.permute.xlu1 %270  ;;  %v263_v15 = vpop.permute.xlu0 %262 }
  0x87   : > { %v277_v16 = vmul.f32 %v263_v15, %v770_v13  ;;  %v279_v20 = vmul.f32 %v271_v14, %v773_v17 }
  0x89   : > { %285 = vrot.lane.b32.xlu0 %v277_v16, %s691_s15 }
  0x8a   : > { %v267_v19 = vpop.permute.xlu0 %266 }
  0x8b   : > { %v278_v21 = vmul.f32 %v267_v19, %v775_v18  ;;  %v303_v22 = vpop.permute.xlu1 %302 }
  0x8c   : > { %v317_v23 = vmul.f32 %v303_v22, %v770_v13 }
  0x8d   : > { %287 = vrot.lane.b32.xlu1 %v278_v21, %s691_s15  ;;  %289 = vrot.lane.b32.xlu0 %v279_v20, %s691_s15 }
  0x8f   : > { %v307_v24 = vpop.permute.xlu0 %306 }
  0x90   : > { %v318_v25 = vmul.f32 %v307_v24, %v775_v18  ;;  %v275_v26 = vpop.permute.xlu1 %274 }
  0x91   : > { %325 = vrot.lane.b32.xlu1 %v317_v23, %s692_s16  ;;  %v280_v28 = vmul.f32 %v275_v26, %v781_v27 }
  0x92   : > { %327 = vrot.lane.b32.xlu0 %v318_v25, %s692_s16 }
  0x94   : > { %v343_v29 = vpop.permute.xlu0 %342 }
  0x95   : > { %v311_v30 = vpop.permute.xlu1 %310  ;;  %v357_v32 = vmul.f32 %v343_v29, %v770_v13 }
  0x96   : > { %v319_v31 = vmul.f32 %v311_v30, %v773_v17  ;;  %291 = vrot.lane.b32.xlu0 %v280_v28, %s691_s15 }
  0x98   : > { %329 = vrot.lane.b32.xlu1 %v319_v31, %s692_s16  ;;  %v351_v33 = vpop.permute.xlu0 %350 }
  0x99   : > { %v359_v35 = vmul.f32 %v351_v33, %v773_v17 }
  0x9a   : > { %v347_v34 = vpop.permute.xlu1 %346  ;;  %365 = vrot.lane.b32.xlu0 %v357_v32, %s693_s17 }
  0x9b   : > { %v358_v36 = vmul.f32 %v347_v34, %v775_v18 }
  0x9d   : > { %367 = vrot.lane.b32.xlu1 %v358_v36, %s693_s17  ;;  %v387_v37 = vpop.permute.xlu0 %386 }
  0x9e   : > { %369 = vrot.lane.b32.xlu0 %v359_v35, %s693_s17  ;;  %v398_v38 = vmul.f32 %v387_v37, %v775_v18 }
  0x9f   : > { %v315_v39 = vpop.permute.xlu1 %314 }
  0xa0   : > { %v320_v40 = vmul.f32 %v315_v39, %v781_v27 }
  0xa1   : > { %v395_v45 = vpop.permute.xlu0 %394 }
  0xa2   : > { %331 = vrot.lane.b32.xlu1 %v320_v40, %s692_s16  ;;  %407 = vrot.lane.b32.xlu0 %v398_v38, %s694_s20  ;;  %v400_v46 = vmul.f32 %v395_v45, %v781_v27 }
  0xa4   : > { %v383_v41 = vpop.permute.xlu1 %382 }
  0xa5   : > { %v397_v42 = vmul.f32 %v383_v41, %v770_v13 }
  0xa6   : > { %v241_v50 = vpop.permute.xlu0 %240 }
  0xa7   : > { %405 = vrot.lane.b32.xlu1 %v397_v42, %s694_s20  ;;  %v254_v4 = vmul.f32 %v241_v50, %v775_v18 }
  0xa9   : > { %v355_v43 = vpop.permute.xlu1 %354 }
  0xaa   : > { %v360_v44 = vmul.f32 %v355_v43, %v781_v27  ;;  %v428_v52 = vpop.permute.xlu0 %427 }
  0xac   : > { %371 = vrot.lane.b32.xlu1 %v360_v44, %s693_s17 }
  0xae   : > { %v391_v47 = vpop.permute.xlu1 %390  ;;  %v443_v54 = vpop.permute.xlu0 %442 }
  0xaf   : > { %v399_v48 = vmul.f32 %v391_v47, %v773_v17 }
  0xb0   : > { %411 = vrot.lane.b32.xlu1 %v400_v46, %s694_s20 }
  0xb1   : > { %409 = vrot.lane.b32.xlu0 %v399_v48, %s694_s20 }
  0xb3   : > { %v236_v49 = vpop.permute.xlu1 %235 }
  0xb4   : > { %v253_v2 = vmul.f32 %v236_v49, %v770_v13 }
  0xb7   : > { %v246_v51 = vpop.permute.xlu1 %245 }
  0xb8   : > { %v255_v19 = vmul.f32 %v246_v51, %v773_v17  ;;  %v500_v51 = vld [vmem:[%s869_s3 + $0x8] sm:$0xff] }
  0xbb   : > { %v251_v53 = vpop.permute.xlu1 %250 }
  0xbc   : > { %v256_v16 = vmul.f32 %v251_v53, %v781_v27  ;;  %v502_v53 = vld [vmem:[%s869_s3 + $0x18] sm:$0xff] }
  0xbf   : > { %v433_v55 = vpop.permute.xlu1 %432 }
  0xc3   : > { %v438_v57 = vpop.permute.xlu1 %437 }
  0xfb   : > { %v286_v56 = vpop.permute.xlu0 %285 }
  0xfc   : > { %v297_v5 = vadd.f32 %v286_v56, %v253_v2  ;;  %v537_v56 = vld [vmem:[%s870_s4] sm:$0xff] }
  0xff   : > { %v290_v58 = vpop.permute.xlu0 %289  ;;  %v288_v59 = vpop.permute.xlu1 %287 }
 0x100   : > { %v298_v7 = vadd.f32 %v288_v59, %v254_v4  ;;  %v299_v13 = vadd.f32 %v290_v58, %v255_v19  ;;  %v539_v58 = vld [vmem:[%s870_s4 + $0x10] sm:$0xff] }
 0x103   : > { %v326_v61 = vpop.permute.xlu1 %325 }
 0x104   : > { %v328_v60 = vpop.permute.xlu0 %327  ;;  %v337_v8 = vadd.f32 %v326_v61, %v297_v5 }
 0x105   : > { %v338_v9 = vadd.f32 %v328_v60, %v298_v7 }
 0x108   : > { %v292_v62 = vpop.permute.xlu0 %291 }
 0x109   : > { %v300_v21 = vadd.f32 %v292_v62, %v256_v16 }
 0x10a   : > { %v330_v63 = vpop.permute.xlu1 %329 }
 0x10b   : > { %v339_v24 = vadd.f32 %v330_v63, %v299_v13 }
 0x10c   : > { %v366_v0 = vpop.permute.xlu0 %365 }
 0x10d   : > { %v377_v10 = vadd.f32 %v366_v0, %v337_v8 }
 0x10f   : > { %v368_v1 = vpop.permute.xlu1 %367 }
 0x110   : > { %v370_v3 = vpop.permute.xlu0 %369  ;;  %v378_v14 = vadd.f32 %v368_v1, %v338_v9 }
 0x111   : > { %v379_v28 = vadd.f32 %v370_v3, %v339_v24 }
 0x114   : > { %v332_v6 = vpop.permute.xlu1 %331  ;;  %v408_v11 = vpop.permute.xlu0 %407 }
 0x115   : > { %v418_v20 = vadd.f32 %v408_v11, %v378_v14  ;;  %v340_v23 = vadd.f32 %v332_v6, %v300_v21 }
 0x117   : > { %v800_v25 = vadd.f32 %v433_v55, %v418_v20  ;;  %v538_v55 = vld [vmem:[%s870_s4 + $0x8] sm:$0xff] }
 0x119   : > { %v406_v12 = vpop.permute.xlu1 %405  ;;  %v470_v17 = vmul.f32 %v800_v25, %v800_v25  ;;  %v451_v36 = vsel %vm449_vm0, %v800_v25, 0.0 }
 0x11a   : > { %v417_v15 = vadd.f32 %v406_v12, %v377_v10 }
 0x11b   : > { %v474_v42 = vsel %vm449_vm0, %v470_v17, 0.0 }
 0x11c   : > { %v798_v22 = vadd.f32 %v428_v52, %v417_v15  ;;  %v499_v52 = vld [vmem:[%s869_s3] sm:$0xff] }
 0x11e   : > { %v372_v18 = vpop.permute.xlu1 %371  ;;  %v469_v29 = vmul.f32 %v798_v22, %v798_v22  ;;  %v450_v33 = vsel %vm449_vm0, %v798_v22, 0.0 }
 0x11f   : > { %v380_v26 = vadd.f32 %v372_v18, %v340_v23  ;;  %v452_v38 = vadd.f32 %v451_v36, %v450_v33 }
 0x120   : > { %v473_v37 = vsel %vm449_vm0, %v469_v29, 0.0 }
 0x121   : > { %v475_v44 = vadd.f32 %v474_v42, %v473_v37 }
 0x122   : > { %v412_v30 = vpop.permute.xlu1 %411 }
 0x123   : > { %v420_v31 = vadd.f32 %v412_v30, %v380_v26  ;;  %v410_v27 = vpop.permute.xlu0 %409 }
 0x124   : > { %v419_v32 = vadd.f32 %v410_v27, %v379_v28 }
 0x125   : > { %v808_v34 = vadd.f32 %v443_v54, %v420_v31  ;;  %v501_v54 = vld [vmem:[%s869_s3 + $0x10] sm:$0xff] }
 0x126   : > { %v810_v35 = vadd.f32 %v438_v57, %v419_v32  ;;  %v540_v57 = vld [vmem:[%s870_s4 + $0x18] sm:$0xff] }
 0x127   : > { %v472_v41 = vmul.f32 %v808_v34, %v808_v34  ;;  %v455_v45 = vsel %vm449_vm0, %v808_v34, 0.0 }
 0x128   : > { %v453_v39 = vsel %vm449_vm0, %v810_v35, 0.0  ;;  %v471_v40 = vmul.f32 %v810_v35, %v810_v35 }
 0x129   : > { %v454_v43 = vadd.f32 %v453_v39, %v452_v38  ;;  %v478_v49 = vsel %vm449_vm0, %v472_v41, 0.0 }
 0x12a   : > { %v476_v46 = vsel %vm449_vm0, %v471_v40, 0.0 }
 0x12b   : > { %v456_v47 = vadd.f32 %v455_v45, %v454_v43  ;;  %v477_v48 = vadd.f32 %v476_v46, %v475_v44 }
 0x12d   : > { %457 = vadd.xlane.f32.xlu0 %v456_v47  ;;  %v479_v50 = vadd.f32 %v478_v49, %v477_v48 }
 0x12f   : > { %480 = vadd.xlane.f32.xlu1 %v479_v50 }
 0x140   : > { %515 = vperm.xlu1 %674, %v500_v51  }
 0x143   : > { %510 = vperm.xlu0 %675, %v499_v52  }
 0x144   : > { %525 = vperm.xlu1 %674, %v502_v53  }
 0x147   : > { %520 = vperm.xlu0 %675, %v501_v54  }
 0x148   : > { %548 = vperm.xlu1 %674, %v538_v55  }
 0x14b   : > { %543 = vperm.xlu0 %675, %v537_v56  }
 0x14c   : > { %558 = vperm.xlu1 %674, %v540_v57  }
 0x14f   : > { %553 = vperm.xlu0 %675, %v539_v58  }
 0x1ba   : > { %v458_v59 = vpop.xlane.xlu0 %457 }
 0x1bb   : > { %v459_v60 = vrot.slane %v458_v59, 4 }
 0x1bc   : > { %v481_v61 = vpop.xlane.xlu1 %480 }
 0x1bd   : > { %v460_v62 = vadd.f32 %v459_v60, %v458_v59  ;;  %v482_v63 = vrot.slane %v481_v61, 4 }
 0x1bf   : > { %v461_v0 = vrot.slane %v460_v62, 2  ;;  %v483_v1 = vadd.f32 %v482_v63, %v481_v61 }
 0x1c0   : > { %v516_v11 = vpop.permute.xlu1 %515 }
 0x1c1   : > { %v484_v2 = vrot.slane %v483_v1, 2  ;;  %v462_v3 = vadd.f32 %v461_v0, %v460_v62 }
 0x1c2   : > { %v511_v12 = vpop.permute.xlu0 %510 }
 0x1c3   : > { %v463_v4 = vrot.slane %v462_v3, 1  ;;  %v485_v5 = vadd.f32 %v484_v2, %v483_v1 }
 0x1c4   : > { %v526_v14 = vpop.permute.xlu1 %525 }
 0x1c5   : > { %v464_v6 = vadd.f32 %v463_v4, %v462_v3  ;;  %v486_v7 = vrot.slane %v485_v5, 1 }
 0x1c6   : > { %v521_v15 = vpop.permute.xlu0 %520 }
 0x1c7   : > { %637 = vpush %v464_v6  ;;  %v487_v8 = vadd.f32 %v486_v7, %v485_v5 }
 0x1c8   : > { %v549_v18 = vpop.permute.xlu1 %548 }
 0x1c9   : > { %639 = vpush %v487_v8 }
 0x1ca   : > { %v544_v23 = vpop.permute.xlu0 %543 }
 0x1f8   : > { %s638_s13 = spop %637 }
 0x1f9   : > { %s468_s14 = smul.f32 0.0009765625, %s638_s13 }
 0x1fa   : > { %s640_s15 = spop %639 }
 0x1fb   : > { %s492_s16 = smul.f32 %s468_s14, %s468_s14  ;;  %v503_v16 = vstv %s468_s14 }
 0x1fc   : > { %s491_s17 = smul.f32 0.0009765625, %s640_s15  ;;  %v504_v19 = vsub.f32 %v798_v22, %v503_v16  ;;  %v505_v20 = vsub.f32 %v800_v25, %v503_v16  ;;  %v506_v21 = vsub.f32 %v810_v35, %v503_v16  ;;  %v507_v13 = vsub.f32 %v808_v34, %v503_v16  ;;  %v559_v22 = vpop.permute.xlu1 %558  ;;  %v554_v25 = vpop.permute.xlu0 %553 }
 0x1fe   : > { %s493_s20 = ssub.f32 %s491_s17, %s492_s16  ;;  %v528_v24 = vmul.f32 %v511_v12, %v504_v19  ;;  %v529_v26 = vmul.f32 %v516_v11, %v505_v20  ;;  %v530_v28 = vmul.f32 %v521_v15, %v506_v21  ;;  %v531_v29 = vmul.f32 %v526_v14, %v507_v13 }
 0x200   : > { %s494_s22 = smax.f32 %s695_s21, %s493_s20 }
 0x201   : > { %s495_s23 = sadd.f32 1e-08, %s494_s22 }
 0x203   : > { %v496_v9 = vstv %s495_s23 }
 0x204   : > { %676 = vrsqrt.f32 %v496_v9 }
 0x20e   : > { %v677_v10 = vpop.eup %676 }
 0x20f   : > { %641 = vpush %v677_v10 }
 0x240   : > { %s642_s24 = spop %641 }
 0x241   : > { %v532_v30 = vstv %s642_s24 }
 0x242   : > { %v533_v31 = vmul.f32 %v532_v30, %v528_v24  ;;  %v534_v27 = vmul.f32 %v532_v30, %v529_v26  ;;  %v535_v17 = vmul.f32 %v532_v30, %v530_v28  ;;  %v536_v32 = vmul.f32 %v532_v30, %v531_v29 }
 0x244   : > { %v561_v33 = vadd.f32 %v544_v23, %v533_v31  ;;  %v562_v34 = vadd.f32 %v549_v18, %v534_v27  ;;  %v563_v35 = vadd.f32 %v554_v25, %v535_v17  ;;  %v564_v36 = vadd.f32 %v559_v22, %v536_v32 }
 0x246   : > { %565 = vst.msk [vmem:[%s224_s27] sm:$0xff] %vm449_vm0, %v561_v33  ;;  %566 = vst.msk [vmem:[%s224_s27 + $0x8] sm:$0xff] %vm449_vm0, %v562_v34 }
 0x247   : > { %567 = vst.msk [vmem:[%s224_s27 + $0x10] sm:$0xff] %vm449_vm0, %v563_v35  ;;  %568 = vst.msk [vmem:[%s224_s27 + $0x18] sm:$0xff] %vm449_vm0, %v564_v36 }
 0x248 PF: > { %s15_s18 = sadd.s32 1, %s684_s18  }
 0x249   : > { %p12_p4 = scmp.ge.s32.totalorder %s15_s18, 4  }
 0x24b   :  { %14 = sbr.rel (!%p12_p4) target bundleno = 1 (0x1), region = 70 }

// kernel: _lambda_.25
= control target key start
LH: loop header
LB: loop body
LE: loop exit
PB: predicated region body
PF: predicated region fallthrough
CT: control target
= control target key end

     0   :  { %s712_s18 = smov 0   ;;  %s839_s0 = inlined_call_operand.vmem [shape: f32[2,2,32,18], index: 0, kind: input, shape index: {}]   ;;  %s840_s1 = inlined_call_operand.vmem [shape: f32[32,5], index: 1, kind: input, shape index: {}]   ;;  %s841_s2 = inlined_call_operand.vmem [shape: f32[32,1], index: 2, kind: input, shape index: {}]   ;;  %s842_s3 = inlined_call_operand.vmem [shape: f32[32,1], index: 3, kind: input, shape index: {}]   ;;  %s843_s4 = inlined_call_operand.vmem [shape: f32[32,1], index: 4, kind: input, shape index: {}]   ;;  %s844_s5 = inlined_call_operand.vmem [shape: f32[2,32,16], index: 5, kind: output, shape index: {}]  }
   0x1 LB: > { %s612_s19 = sadd.s32 4294967295, %s672_s18   ;;  %p616_p0 = scmp.ge.s32.totalorder %s672_s18, 1  ;;  %s672_s18 = sphi %s712_s18, %s15_s18  }
   0x2   : > { %p187_p1 = scmp.lt.s32.totalorder %s672_s18, 3 }
   0x4   : > { %p188_p2 = pnand %p616_p0, %p187_p1 }
   0x5   : > { %v235_v0 = vld [vmem:[%s840_s1 + $0x10] sm:$0xff] (!%p188_p2)  ;;  %v233_v1 = vld [vmem:[%s840_s1] sm:$0xff] (!%p188_p2)  ;;  %v674_v2 = vmov (!%p188_p2), 2   ;;  %v234_v3 = vld [vmem:[%s840_s1 + $0x8] sm:$0xff] (!%p188_p2)  ;;  %v675_v4 = vmov (!%p188_p2), 3   ;;  %v676_v6 = vmov (!%p188_p2), 4  }
   0x6   : > { %191 = sbr.rel (%p188_p2) target bundleno = 572 (0x23c), region = 40  ;;  %648 = vset.pattern.permute.xlu1 (!%p188_p2), %v674_v2  ;;  %647 = vset.pattern.permute.xlu0 (!%p188_p2), %v674_v2  ;;  %v236_v5 = vld [vmem:[%s840_s1 + $0x18] sm:$0xff] (!%p188_p2)  ;;  %v677_v7 = vmov (!%p188_p2), 1   ;;  %v678_v8 = vmov (!%p188_p2), 0   ;;  %v410_v9 = vld [vmem:[%s841_s2 + $0x8] sm:$0xff] (!%p188_p2)  ;;  %v409_v10 = vld [vmem:[%s841_s2] sm:$0xff] (!%p188_p2) }
   0x7   : > { %298 = vperm.xlu1 (!%p188_p2), %648, %v235_v0   ;;  %290 = vperm.xlu0 (!%p188_p2), %647, %v233_v1   ;;  %v411_v11 = vld [vmem:[%s841_s2 + $0x10] sm:$0xff] (!%p188_p2)  ;;  %v412_v12 = vld [vmem:[%s841_s2 + $0x18] sm:$0xff] (!%p188_p2)  ;;  %p215_p3 = scmp.lt.s32.totalorder (!%p188_p2), %s612_s19, 1  ;;  %s679_s15 = smov (!%p188_p2), 127   ;;  %vm437_vm0 = vcmask (!%p188_p2), 130048  }
   0x8   : > { %s680_s16 = smov (!%p188_p2), 126  }
   0xb   : > { %649 = vset.pattern.permute.xlu1 (!%p188_p2), %v675_v4  ;;  %294 = vperm.xlu0 (!%p188_p2), %647, %v234_v3  }
   0xc   : > { %330 = vperm.xlu1 (!%p188_p2), %649, %v233_v1  }
   0xd   : > { %s846_s19 = smov (!%p215_p3, %s612_s19), 1 }
   0xe   : > { %s623_s11 = sshll.u32 %s846_s19, 6  ;;  %s624_s21 = sshll.u32 %s846_s19, 5 }
   0xf   : > { %650 = vset.pattern.permute.xlu0 %v675_v4  ;;  %s754_s14 = scalar_lea.vmem %s839_s0, %s623_s11  ;;  %s224_s25 = scalar_lea.vmem %s844_s5, %s624_s21 }
  0x10   : > { %651 = vset.pattern.permute.xlu1 %v674_v2  ;;  %334 = vperm.xlu0 %650, %v234_v3   ;;  %v225_v13 = vld [vmem:[%s754_s14] sm:$0xff]  ;;  %v226_v17 = vld [vmem:[%s754_s14 + $0x8] sm:$0xff]  ;;  %v227_v22 = vld [vmem:[%s754_s14 + $0x10] sm:$0xff] }
  0x11   : > { %302 = vperm.xlu1 %651, %v236_v5   ;;  %v229_v18 = vld [vmem:[%s754_s14 + $0x20] sm:$0xff]  ;;  %v230_v24 = vld [vmem:[%s754_s14 + $0x28] sm:$0xff]  ;;  %v231_v29 = vld [vmem:[%s754_s14 + $0x30] sm:$0xff] }
  0x12   : > { %v228_v30 = vld [vmem:[%s754_s14 + $0x18] sm:$0xff] }
  0x13   : > { %v232_v39 = vld [vmem:[%s754_s14 + $0x38] sm:$0xff] }
  0x14   : > { %653 = vset.pattern.permute.xlu0 %v676_v6 }
  0x15   : > { %652 = vset.pattern.permute.xlu1 %v675_v4  ;;  %370 = vperm.xlu0 %653, %v233_v1  }
  0x16   : > { %338 = vperm.xlu1 %652, %v235_v0  }
  0x19   : > { %378 = vperm.xlu0 %653, %v235_v0  }
  0x1a   : > { %654 = vset.pattern.permute.xlu1 %v676_v6 }
  0x1b   : > { %374 = vperm.xlu1 %654, %v234_v3  }
  0x1d   : > { %659 = vset.pattern.permute.xlu0 %v677_v7 }
  0x1e   : > { %270 = vperm.xlu0 %659, %v234_v3  }
  0x1f   : > { %655 = vset.pattern.permute.xlu1 %v675_v4 }
  0x20   : > { %342 = vperm.xlu1 %655, %v236_v5  }
  0x22   : > { %660 = vset.pattern.permute.xlu0 %v678_v8 }
  0x23   : > { %239 = vperm.xlu0 %660, %v233_v1  }
  0x24   : > { %656 = vset.pattern.permute.xlu1 %v676_v6 }
  0x25   : > { %382 = vperm.xlu1 %656, %v236_v5  }
  0x27   : > { %254 = vperm.xlu0 %660, %v236_v5  }
  0x29   : > { %657 = vset.pattern.permute.xlu1 %v678_v8 }
  0x2a   : > { %244 = vperm.xlu1 %657, %v234_v3  }
  0x2b   : > { %420 = vperm.xlu0 %660, %v410_v9  }
  0x2e   : > { %658 = vset.pattern.permute.xlu1 %v677_v7 }
  0x2f   : > { %266 = vperm.xlu1 %658, %v233_v1  }
  0x33   : > { %661 = vset.pattern.permute.xlu1 %v678_v8 }
  0x34   : > { %249 = vperm.xlu1 %661, %v235_v0  }
  0x38   : > { %662 = vset.pattern.permute.xlu1 %v677_v7 }
  0x39   : > { %274 = vperm.xlu1 %662, %v235_v0  }
  0x3d   : > { %278 = vperm.xlu1 %662, %v236_v5  }
  0x41   : > { %663 = vset.pattern.permute.xlu1 %v678_v8 }
  0x42   : > { %415 = vperm.xlu1 %663, %v409_v10  }
  0x46   : > { %425 = vperm.xlu1 %663, %v411_v11  }
  0x4a   : > { %430 = vperm.xlu1 %663, %v412_v12  }
  0x86   : > { %v299_v14 = vpop.permute.xlu1 %298  ;;  %v291_v15 = vpop.permute.xlu0 %290 }
  0x87   : > { %v305_v16 = vmul.f32 %v291_v15, %v225_v13  ;;  %v307_v25 = vmul.f32 %v299_v14, %v227_v22 }
  0x89   : > { %313 = vrot.lane.b32.xlu1 %v305_v16, %s679_s15 }
  0x8a   : > { %v295_v19 = vpop.permute.xlu0 %294 }
  0x8b   : > { %v306_v20 = vmul.f32 %v295_v19, %v226_v17  ;;  %v331_v21 = vpop.permute.xlu1 %330 }
  0x8c   : > { %v345_v23 = vmul.f32 %v331_v21, %v229_v18 }
  0x8d   : > { %315 = vrot.lane.b32.xlu0 %v306_v20, %s679_s15 }
  0x8e   : > { %353 = vrot.lane.b32.xlu1 %v345_v23, %s679_s15 }
  0x8f   : > { %v335_v26 = vpop.permute.xlu0 %334 }
  0x90   : > { %v303_v27 = vpop.permute.xlu1 %302  ;;  %v346_v28 = vmul.f32 %v335_v26, %v230_v24 }
  0x91   : > { %317 = vrot.lane.b32.xlu0 %v307_v25, %s679_s15  ;;  %v308_v34 = vmul.f32 %v303_v27, %v228_v30 }
  0x94   : > { %v371_v33 = vpop.permute.xlu0 %370 }
  0x95   : > { %v339_v31 = vpop.permute.xlu1 %338  ;;  %355 = vrot.lane.b32.xlu0 %v346_v28, %s679_s15  ;;  %v385_v35 = vmul.f32 %v371_v33, %v225_v13 }
  0x96   : > { %v347_v32 = vmul.f32 %v339_v31, %v231_v29 }
  0x98   : > { %357 = vrot.lane.b32.xlu1 %v347_v32, %s679_s15  ;;  %v379_v38 = vpop.permute.xlu0 %378 }
  0x99   : > { %319 = vrot.lane.b32.xlu0 %v308_v34, %s679_s15  ;;  %v387_v40 = vmul.f32 %v379_v38, %v227_v22 }
  0x9a   : > { %v375_v36 = vpop.permute.xlu1 %374 }
  0x9b   : > { %v386_v37 = vmul.f32 %v375_v36, %v226_v17 }
  0x9d   : > { %393 = vrot.lane.b32.xlu0 %v385_v35, %s680_s16  ;;  %395 = vrot.lane.b32.xlu1 %v386_v37, %s680_s16  ;;  %v271_v44 = vpop.permute.xlu0 %270 }
  0x9e   : > { %v282_v46 = vmul.f32 %v271_v44, %v230_v24 }
  0x9f   : > { %v343_v41 = vpop.permute.xlu1 %342 }
  0xa0   : > { %v348_v42 = vmul.f32 %v343_v41, %v232_v39 }
  0xa1   : > { %397 = vrot.lane.b32.xlu1 %v387_v40, %s680_s16 }
  0xa2   : > { %359 = vrot.lane.b32.xlu0 %v348_v42, %s679_s15  ;;  %v240_v49 = vpop.permute.xlu0 %239 }
  0xa3   : > { %v257_v51 = vmul.f32 %v240_v49, %v225_v13 }
  0xa4   : > { %v383_v43 = vpop.permute.xlu1 %382 }
  0xa5   : > { %v388_v45 = vmul.f32 %v383_v43, %v228_v30 }
  0xa6   : > { %v255_v58 = vpop.permute.xlu0 %254 }
  0xa7   : > { %399 = vrot.lane.b32.xlu0 %v388_v45, %s680_s16  ;;  %v260_v60 = vmul.f32 %v255_v58, %v228_v30  ;;  %v528_v58 = vld [vmem:[%s843_s4 + $0x18] sm:$0xff]  ;;  %s681_s16 = smov 0.0  }
  0xa9   : > { %v245_v47 = vpop.permute.xlu1 %244 }
  0xaa   : > { %v258_v48 = vmul.f32 %v245_v47, %v226_v17  ;;  %v421_v4 = vpop.permute.xlu0 %420 }
  0xac   : > { %v286_v50 = vadd.f32 %v282_v46, %v258_v48 }
  0xae   : > { %v267_v52 = vpop.permute.xlu1 %266 }
  0xaf   : > { %v281_v53 = vmul.f32 %v267_v52, %v229_v18  ;;  %v489_v52 = vld [vmem:[%s842_s3 + $0x10] sm:$0xff] }
  0xb1   : > { %v285_v54 = vadd.f32 %v281_v53, %v257_v51  ;;  %v488_v51 = vld [vmem:[%s842_s3 + $0x8] sm:$0xff]  ;;  %v487_v53 = vld [vmem:[%s842_s3] sm:$0xff] }
  0xb3   : > { %v250_v55 = vpop.permute.xlu1 %249 }
  0xb4   : > { %v259_v56 = vmul.f32 %v250_v55, %v227_v22  ;;  %v490_v55 = vld [vmem:[%s842_s3 + $0x18] sm:$0xff] }
  0xb8   : > { %v275_v57 = vpop.permute.xlu1 %274 }
  0xb9   : > { %v283_v59 = vmul.f32 %v275_v57, %v231_v29  ;;  %v526_v57 = vld [vmem:[%s843_s4 + $0x8] sm:$0xff] }
  0xbb   : > { %v287_v61 = vadd.f32 %v283_v59, %v259_v56  ;;  %v527_v56 = vld [vmem:[%s843_s4 + $0x10] sm:$0xff] }
  0xbc   : > { %v279_v62 = vpop.permute.xlu1 %278 }
  0xbd   : > { %v284_v63 = vmul.f32 %v279_v62, %v232_v39 }
  0xbf   : > { %v288_v0 = vadd.f32 %v284_v63, %v260_v60 }
  0xc1   : > { %v416_v1 = vpop.permute.xlu1 %415 }
  0xc5   : > { %v426_v2 = vpop.permute.xlu1 %425 }
  0xc9   : > { %v431_v3 = vpop.permute.xlu1 %430 }
  0xfb   : > { %v314_v6 = vpop.permute.xlu1 %313 }
  0xfc   : > { %v325_v12 = vadd.f32 %v314_v6, %v285_v54  ;;  %v525_v54 = vld [vmem:[%s843_s4] sm:$0xff] }
  0xff   : > { %v316_v5 = vpop.permute.xlu0 %315 }
 0x100   : > { %v354_v8 = vpop.permute.xlu1 %353  ;;  %v326_v13 = vadd.f32 %v316_v5, %v286_v50 }
 0x101   : > { %v365_v14 = vadd.f32 %v354_v8, %v325_v12 }
 0x103   : > { %v318_v7 = vpop.permute.xlu0 %317 }
 0x104   : > { %v327_v18 = vadd.f32 %v318_v7, %v287_v61 }
 0x107   : > { %v356_v9 = vpop.permute.xlu0 %355 }
 0x108   : > { %v366_v15 = vadd.f32 %v356_v9, %v326_v13 }
 0x10a   : > { %v358_v10 = vpop.permute.xlu1 %357 }
 0x10b   : > { %v320_v11 = vpop.permute.xlu0 %319  ;;  %v367_v21 = vadd.f32 %v358_v10, %v327_v18 }
 0x10c   : > { %v328_v27 = vadd.f32 %v320_v11, %v288_v0 }
 0x10f   : > { %v394_v16 = vpop.permute.xlu0 %393  ;;  %v396_v17 = vpop.permute.xlu1 %395 }
 0x110   : > { %v405_v19 = vadd.f32 %v394_v16, %v365_v14  ;;  %v406_v20 = vadd.f32 %v396_v17, %v366_v15 }
 0x112   : > { %v772_v22 = vadd.f32 %v416_v1, %v405_v19  ;;  %v774_v23 = vadd.f32 %v421_v4, %v406_v20 }
 0x113   : > { %v398_v24 = vpop.permute.xlu1 %397 }
 0x114   : > { %v407_v25 = vadd.f32 %v398_v24, %v367_v21  ;;  %v360_v26 = vpop.permute.xlu0 %359  ;;  %v457_v28 = vmul.f32 %v772_v22, %v772_v22  ;;  %v458_v29 = vmul.f32 %v774_v23, %v774_v23  ;;  %v438_v32 = vsel %vm437_vm0, %v772_v22, 0.0 }
 0x115   : > { %v368_v31 = vadd.f32 %v360_v26, %v328_v27  ;;  %v439_v33 = vsel %vm437_vm0, %v774_v23, 0.0 }
 0x116   : > { %v780_v30 = vadd.f32 %v426_v2, %v407_v25  ;;  %v461_v38 = vsel %vm437_vm0, %v457_v28, 0.0  ;;  %v462_v39 = vsel %vm437_vm0, %v458_v29, 0.0  ;;  %v440_v40 = vadd.f32 %v439_v33, %v438_v32 }
 0x117   : > { %v463_v44 = vadd.f32 %v462_v39, %v461_v38 }
 0x118   : > { %v459_v34 = vmul.f32 %v780_v30, %v780_v30  ;;  %v441_v37 = vsel %vm437_vm0, %v780_v30, 0.0 }
 0x119   : > { %v400_v35 = vpop.permute.xlu0 %399  ;;  %v442_v43 = vadd.f32 %v441_v37, %v440_v40 }
 0x11a   : > { %v408_v36 = vadd.f32 %v400_v35, %v368_v31  ;;  %v464_v42 = vsel %vm437_vm0, %v459_v34, 0.0 }
 0x11b   : > { %v465_v48 = vadd.f32 %v464_v42, %v463_v44 }
 0x11c   : > { %v792_v41 = vadd.f32 %v431_v3, %v408_v36 }
 0x11e   : > { %v443_v45 = vsel %vm437_vm0, %v792_v41, 0.0  ;;  %v460_v46 = vmul.f32 %v792_v41, %v792_v41 }
 0x11f   : > { %v444_v47 = vadd.f32 %v443_v45, %v442_v43 }
 0x120   : > { %v466_v49 = vsel %vm437_vm0, %v460_v46, 0.0 }
 0x121   : > { %445 = vadd.xlane.f32.xlu1 %v444_v47  ;;  %v467_v50 = vadd.f32 %v466_v49, %v465_v48 }
 0x123   : > { %468 = vadd.xlane.f32.xlu0 %v467_v50 }
 0x132   : > { %503 = vperm.xlu1 %663, %v488_v51  }
 0x136   : > { %508 = vperm.xlu1 %663, %v489_v52  }
 0x139   : > { %498 = vperm.xlu0 %660, %v487_v53  }
 0x13a   : > { %531 = vperm.xlu1 %663, %v525_v54  }
 0x13d   : > { %513 = vperm.xlu0 %660, %v490_v55  }
 0x13e   : > { %541 = vperm.xlu1 %663, %v527_v56  }
 0x141   : > { %536 = vperm.xlu0 %660, %v526_v57  }
 0x145   : > { %546 = vperm.xlu0 %660, %v528_v58  }
 0x1ae   : > { %v446_v59 = vpop.xlane.xlu1 %445 }
 0x1af   : > { %v447_v60 = vrot.slane %v446_v59, 4 }
 0x1b0   : > { %v469_v61 = vpop.xlane.xlu0 %468 }
 0x1b1   : > { %v448_v62 = vadd.f32 %v447_v60, %v446_v59  ;;  %v470_v63 = vrot.slane %v469_v61, 4 }
 0x1b2   : > { %v504_v11 = vpop.permute.xlu1 %503 }
 0x1b3   : > { %v449_v0 = vrot.slane %v448_v62, 2  ;;  %v471_v1 = vadd.f32 %v470_v63, %v469_v61 }
 0x1b5   : > { %v472_v2 = vrot.slane %v471_v1, 2  ;;  %v450_v3 = vadd.f32 %v449_v0, %v448_v62 }
 0x1b6   : > { %v509_v13 = vpop.permute.xlu1 %508 }
 0x1b7   : > { %v451_v4 = vrot.slane %v450_v3, 1  ;;  %v473_v5 = vadd.f32 %v472_v2, %v471_v1 }
 0x1b8   : > { %v499_v12 = vpop.permute.xlu0 %498 }
 0x1b9   : > { %v452_v6 = vadd.f32 %v451_v4, %v450_v3  ;;  %v474_v7 = vrot.slane %v473_v5, 1 }
 0x1ba   : > { %v532_v20 = vpop.permute.xlu1 %531 }
 0x1bb   : > { %625 = vpush %v452_v6  ;;  %v475_v8 = vadd.f32 %v474_v7, %v473_v5 }
 0x1bc   : > { %v514_v14 = vpop.permute.xlu0 %513 }
 0x1bd   : > { %627 = vpush %v475_v8 }
 0x1c0   : > { %v537_v21 = vpop.permute.xlu0 %536 }
 0x1c4   : > { %v547_v34 = vpop.permute.xlu0 %546 }
 0x1ec   : > { %s626_s10 = spop %625 }
 0x1ed   : > { %s456_s11 = smul.f32 0.001953125, %s626_s10 }
 0x1ee   : > { %s628_s12 = spop %627 }
 0x1ef   : > { %s480_s13 = smul.f32 %s456_s11, %s456_s11  ;;  %v491_v15 = vstv %s456_s11 }
 0x1f0   : > { %s479_s14 = smul.f32 0.001953125, %s628_s12  ;;  %v492_v16 = vsub.f32 %v772_v22, %v491_v15  ;;  %v493_v17 = vsub.f32 %v774_v23, %v491_v15  ;;  %v494_v18 = vsub.f32 %v780_v30, %v491_v15  ;;  %v495_v19 = vsub.f32 %v792_v41, %v491_v15  ;;  %v542_v22 = vpop.permute.xlu1 %541 }
 0x1f2   : > { %s481_s15 = ssub.f32 %s479_s14, %s480_s13  ;;  %v516_v24 = vmul.f32 %v499_v12, %v492_v16  ;;  %v517_v25 = vmul.f32 %v504_v11, %v493_v17  ;;  %v518_v26 = vmul.f32 %v509_v13, %v494_v18  ;;  %v519_v27 = vmul.f32 %v514_v14, %v495_v19 }
 0x1f4   : > { %s482_s17 = smax.f32 %s681_s16, %s481_s15 }
 0x1f5   : > { %s483_s20 = sadd.f32 1e-08, %s482_s17 }
 0x1f7   : > { %v484_v9 = vstv %s483_s20 }
 0x1f8   : > { %664 = vrsqrt.f32 %v484_v9 }
 0x202   : > { %v665_v10 = vpop.eup %664 }
 0x203   : > { %629 = vpush %v665_v10 }
 0x234   : > { %s630_s22 = spop %629 }
 0x235   : > { %v520_v28 = vstv %s630_s22 }
 0x236   : > { %v521_v29 = vmul.f32 %v520_v28, %v516_v24  ;;  %v522_v31 = vmul.f32 %v520_v28, %v517_v25  ;;  %v523_v32 = vmul.f32 %v520_v28, %v518_v26  ;;  %v524_v33 = vmul.f32 %v520_v28, %v519_v27 }
 0x238   : > { %v549_v23 = vadd.f32 %v532_v20, %v521_v29  ;;  %v550_v30 = vadd.f32 %v537_v21, %v522_v31  ;;  %v551_v35 = vadd.f32 %v542_v22, %v523_v32  ;;  %v552_v36 = vadd.f32 %v547_v34, %v524_v33 }
 0x23a   : > { %553 = vst.msk [vmem:[%s224_s25] sm:$0xff] %vm437_vm0, %v549_v23  ;;  %554 = vst.msk [vmem:[%s224_s25 + $0x8] sm:$0xff] %vm437_vm0, %v550_v30 }
 0x23b   : > { %555 = vst.msk [vmem:[%s224_s25 + $0x10] sm:$0xff] %vm437_vm0, %v551_v35  ;;  %556 = vst.msk [vmem:[%s224_s25 + $0x18] sm:$0xff] %vm437_vm0, %v552_v36 }
 0x23c PF: > { %s15_s18 = sadd.s32 1, %s672_s18  }
 0x23d   : > { %p12_p4 = scmp.ge.s32.totalorder %s15_s18, 4  }
 0x23f   :  { %14 = sbr.rel (!%p12_p4) target bundleno = 1 (0x1), region = 70 }

// kernel: _lambda_.26
= control target key start
LH: loop header
LB: loop body
LE: loop exit
PB: predicated region body
PF: predicated region fallthrough
CT: control target
= control target key end

     0   :  { %s538_s20 = smov 0   ;;  %s623_s0 = inlined_call_operand.vmem [shape: f32[2,32,32], index: 0, kind: input, shape index: {}]   ;;  %s624_s1 = inlined_call_operand.vmem [shape: f32[2,32,32], index: 1, kind: input, shape index: {}]   ;;  %s625_s2 = inlined_call_operand.vmem [shape: f32[32,1], index: 2, kind: input, shape index: {}]   ;;  %s626_s3 = inlined_call_operand.vmem [shape: f32[32,1], index: 3, kind: input, shape index: {}]   ;;  %s627_s4 = inlined_call_operand.<no memory space> [shape: f32[1], index: 4, kind: input, shape index: {}]   ;;  %s628_s5 = inlined_call_operand.vmem [shape: f32[2,32,32], index: 5, kind: output, shape index: {}]  }
   0x1   :  { %10 = sst [smem:[#allocation2]] %s627_s4 }
   0x2 LB: > { %s459_s21 = sadd.s32 4294967295, %s501_s20   ;;  %p463_p0 = scmp.ge.s32.totalorder %s501_s20, 1  ;;  %s501_s20 = sphi %s538_s20, %s16_s20  }
   0x3   : > { %p198_p1 = scmp.lt.s32.totalorder %s501_s20, 3 }
   0x5   : > { %p199_p2 = pnand %p463_p0, %p198_p1 }
   0x6   : > { %p231_p3 = scmp.lt.s32.totalorder (!%p199_p2), %s459_s21, 1  ;;  %v308_v0 = vld [vmem:[%s625_s2] sm:$0xff] (!%p199_p2)  ;;  %v503_v1 = vmov (!%p199_p2), 0   ;;  %v309_v2 = vld [vmem:[%s625_s2 + $0x8] sm:$0xff] (!%p199_p2)  ;;  %v311_v3 = vld [vmem:[%s625_s2 + $0x18] sm:$0xff] (!%p199_p2)  ;;  %vm258_vm0 = vcmask (!%p199_p2), 261120  }
   0x7   : > { %202 = sbr.rel (%p199_p2) target bundleno = 316 (0x13c), region = 40  ;;  %491 = vset.pattern.permute.xlu1 (!%p199_p2), %v503_v1  ;;  %492 = vset.pattern.permute.xlu0 (!%p199_p2), %v503_v1  ;;  %v346_v23 = vld [vmem:[%s626_s3] sm:$0xff] (!%p199_p2)  ;;  %v347_v34 = vld [vmem:[%s626_s3 + $0x8] sm:$0xff] (!%p199_p2)  ;;  %v348_v36 = vld [vmem:[%s626_s3 + $0x10] sm:$0xff] (!%p199_p2)  ;;  %s504_s26 = smov (!%p199_p2), 0.0  }
   0x8   : > { %319 = vperm.xlu1 (!%p199_p2), %491, %v308_v0   ;;  %v349_v37 = vld [vmem:[%s626_s3 + $0x18] sm:$0xff] (!%p199_p2)  ;;  %v310_v38 = vld [vmem:[%s625_s2 + $0x10] sm:$0xff] (!%p199_p2)  ;;  %s374_s29 = sld [smem:[#allocation2]] (!%p199_p2) }
   0xc   : > { %324 = vperm.xlu1 (!%p199_p2), %491, %v309_v2  }
   0xe   : > { %s630_s21 = smov (!%p231_p3, %s459_s21), 1 }
   0xf   : > { %s552_s25 = sshll.u32 %s630_s21, 5 }
  0x10   : > { %s235_s28 = scalar_lea.vmem %s623_s0, %s552_s25  ;;  %s240_s6 = scalar_lea.vmem %s624_s1, %s552_s25  ;;  %334 = vperm.xlu1 %491, %v311_v3  }
  0x11   : > { %v246_v4 = vld [vmem:[%s235_s28] sm:$0xff]  ;;  %v247_v5 = vld [vmem:[%s235_s28 + $0x8] sm:$0xff]  ;;  %v248_v6 = vld [vmem:[%s235_s28 + $0x10] sm:$0xff]  ;;  %s245_s8 = scalar_lea.vmem %s628_s5, %s552_s25 }
  0x12   : > { %v249_v7 = vld [vmem:[%s235_s28 + $0x18] sm:$0xff]  ;;  %v250_v8 = vld [vmem:[%s240_s6] sm:$0xff]  ;;  %v251_v9 = vld [vmem:[%s240_s6 + $0x8] sm:$0xff] }
  0x13   : > { %v252_v10 = vld [vmem:[%s240_s6 + $0x10] sm:$0xff]  ;;  %v253_v11 = vld [vmem:[%s240_s6 + $0x18] sm:$0xff]  ;;  %v565_v12 = vadd.f32 %v250_v8, %v246_v4  ;;  %v567_v13 = vadd.f32 %v251_v9, %v247_v5 }
  0x14   : > { %v569_v14 = vadd.f32 %v252_v10, %v248_v6  ;;  %v571_v15 = vadd.f32 %v253_v11, %v249_v7  ;;  %352 = vperm.xlu1 %491, %v346_v23  }
  0x15   : > { %v259_v16 = vsel %vm258_vm0, %v565_v12, 0.0  ;;  %v260_v17 = vsel %vm258_vm0, %v567_v13, 0.0  ;;  %v278_v18 = vmul.f32 %v565_v12, %v565_v12  ;;  %v279_v19 = vmul.f32 %v567_v13, %v567_v13 }
  0x16   : > { %v261_v20 = vadd.f32 %v260_v17, %v259_v16  ;;  %v262_v21 = vsel %vm258_vm0, %v569_v14, 0.0  ;;  %v280_v22 = vmul.f32 %v569_v14, %v569_v14  ;;  %v264_v24 = vsel %vm258_vm0, %v571_v15, 0.0 }
  0x17   : > { %v281_v25 = vmul.f32 %v571_v15, %v571_v15  ;;  %v282_v26 = vsel %vm258_vm0, %v278_v18, 0.0  ;;  %v283_v27 = vsel %vm258_vm0, %v279_v19, 0.0  ;;  %v379_v16 = vstv %s374_s29 }
  0x18   : > { %v263_v28 = vadd.f32 %v262_v21, %v261_v20  ;;  %v284_v29 = vadd.f32 %v283_v27, %v282_v26  ;;  %v285_v30 = vsel %vm258_vm0, %v280_v22, 0.0  ;;  %357 = vperm.xlu1 %491, %v347_v34  }
  0x19   : > { %v287_v31 = vsel %vm258_vm0, %v281_v25, 0.0 }
  0x1a   : > { %v265_v32 = vadd.f32 %v264_v24, %v263_v28  ;;  %v286_v33 = vadd.f32 %v285_v30, %v284_v29 }
  0x1c   : > { %266 = vadd.xlane.f32.xlu0 %v265_v32  ;;  %v288_v35 = vadd.f32 %v287_v31, %v286_v33  ;;  %362 = vperm.xlu1 %491, %v348_v36  }
  0x20   : > { %289 = vadd.xlane.f32.xlu0 %v288_v35  ;;  %367 = vperm.xlu1 %491, %v349_v37  }
  0x36   : > { %329 = vperm.xlu0 %492, %v310_v38  }
  0x87   : > { %v320_v55 = vpop.permute.xlu1 %319 }
  0x8b   : > { %v325_v56 = vpop.permute.xlu1 %324 }
  0x8f   : > { %v335_v57 = vpop.permute.xlu1 %334 }
  0x93   : > { %v353_v58 = vpop.permute.xlu1 %352 }
  0x97   : > { %v358_v59 = vpop.permute.xlu1 %357 }
  0x9b   : > { %v363_v2 = vpop.permute.xlu1 %362 }
  0xa9   : > { %v267_v39 = vpop.xlane.xlu0 %266 }
  0xaa   : > { %v268_v40 = vrot.slane %v267_v39, 4 }
  0xac   : > { %v269_v41 = vadd.f32 %v268_v40, %v267_v39 }
  0xad   : > { %v290_v42 = vpop.xlane.xlu0 %289 }
  0xae   : > { %v270_v43 = vrot.slane %v269_v41, 2  ;;  %v291_v44 = vrot.slane %v290_v42, 4 }
  0xb0   : > { %v292_v45 = vadd.f32 %v291_v44, %v290_v42  ;;  %v271_v46 = vadd.f32 %v270_v43, %v269_v41 }
  0xb2   : > { %v293_v47 = vrot.slane %v292_v45, 2  ;;  %v272_v48 = vrot.slane %v271_v46, 1 }
  0xb4   : > { %v273_v49 = vadd.f32 %v272_v48, %v271_v46  ;;  %v294_v50 = vadd.f32 %v293_v47, %v292_v45 }
  0xb5   : > { %v330_v1 = vpop.permute.xlu0 %329 }
  0xb6   : > { %475 = vpush %v273_v49  ;;  %v295_v51 = vrot.slane %v294_v50, 1 }
  0xb8   : > { %v296_v52 = vadd.f32 %v295_v51, %v294_v50 }
  0xba   : > { %477 = vpush %v296_v52 }
  0xe7   : > { %s476_s19 = spop %475 }
  0xe8   : > { %s277_s21 = smul.f32 0.0009765625, %s476_s19 }
  0xea   : > { %s301_s22 = smul.f32 %s277_s21, %s277_s21  ;;  %v312_v60 = vstv %s277_s21 }
  0xeb   : > { %s478_s23 = spop %477  ;;  %v313_v61 = vsub.f32 %v565_v12, %v312_v60  ;;  %v314_v62 = vsub.f32 %v567_v13, %v312_v60  ;;  %v316_v63 = vsub.f32 %v571_v15, %v312_v60  ;;  %v315_v0 = vsub.f32 %v569_v14, %v312_v60  ;;  %v368_v12 = vpop.permute.xlu1 %367 }
  0xec   : > { %s300_s4 = smul.f32 0.0009765625, %s478_s23 }
  0xed   : > { %v338_v3 = vmul.f32 %v325_v56, %v314_v62  ;;  %v340_v4 = vmul.f32 %v335_v57, %v316_v63  ;;  %v339_v5 = vmul.f32 %v330_v1, %v315_v0  ;;  %v337_v6 = vmul.f32 %v320_v55, %v313_v61 }
  0xee   : > { %s302_s24 = ssub.f32 %s300_s4, %s301_s22 }
  0xf0   : > { %s303_s27 = smax.f32 %s504_s26, %s302_s24 }
  0xf1   : > { %s304_s28 = sadd.f32 1e-08, %s303_s27 }
  0xf3   : > { %v305_v53 = vstv %s304_s28 }
  0xf4   : > { %493 = vrsqrt.f32 %v305_v53 }
  0xfe   : > { %v494_v54 = vpop.eup %493 }
  0xff   : > { %479 = vpush %v494_v54 }
 0x130   : > { %s480_s30 = spop %479 }
 0x131   : > { %v341_v7 = vstv %s480_s30 }
 0x132   : > { %v342_v8 = vmul.f32 %v341_v7, %v337_v6  ;;  %v343_v9 = vmul.f32 %v341_v7, %v338_v3  ;;  %v344_v10 = vmul.f32 %v341_v7, %v339_v5  ;;  %v345_v11 = vmul.f32 %v341_v7, %v340_v4 }
 0x134   : > { %v370_v13 = vadd.f32 %v353_v58, %v342_v8  ;;  %v371_v17 = vadd.f32 %v358_v59, %v343_v9  ;;  %v372_v15 = vadd.f32 %v363_v2, %v344_v10  ;;  %v373_v18 = vadd.f32 %v368_v12, %v345_v11 }
 0x136   : > { %vm375_vm1 = vcmp.ge.f32.partialorder %v370_v13, 0.0  ;;  %vm376_vm2 = vcmp.ge.f32.partialorder %v371_v17, 0.0  ;;  %vm377_vm3 = vcmp.ge.f32.partialorder %v372_v15, 0.0  ;;  %vm378_vm4 = vcmp.ge.f32.partialorder %v373_v18, 0.0 }
 0x137   : > { %v380_v14 = vmul.f32 %v379_v16, %v370_v13  ;;  %v381_v19 = vmul.f32 %v379_v16, %v371_v17  ;;  %v382_v20 = vmul.f32 %v379_v16, %v372_v15  ;;  %v383_v21 = vmul.f32 %v379_v16, %v373_v18 }
 0x139   : > { %v384_v22 = vsel %vm375_vm1, %v370_v13, %v380_v14  ;;  %v385_v23 = vsel %vm376_vm2, %v371_v17, %v381_v19  ;;  %v386_v24 = vsel %vm377_vm3, %v372_v15, %v382_v20  ;;  %v387_v25 = vsel %vm378_vm4, %v373_v18, %v383_v21 }
 0x13a   : > { %388 = vst.msk [vmem:[%s245_s8] sm:$0xff] %vm258_vm0, %v384_v22  ;;  %389 = vst.msk [vmem:[%s245_s8 + $0x8] sm:$0xff] %vm258_vm0, %v385_v23 }
 0x13b   : > { %390 = vst.msk [vmem:[%s245_s8 + $0x10] sm:$0xff] %vm258_vm0, %v386_v24  ;;  %391 = vst.msk [vmem:[%s245_s8 + $0x18] sm:$0xff] %vm258_vm0, %v387_v25 }
 0x13c PF: > { %s16_s20 = sadd.s32 1, %s501_s20  }
 0x13d   : > { %p13_p4 = scmp.ge.s32.totalorder %s16_s20, 4  }
 0x13f   :  { %15 = sbr.rel (!%p13_p4) target bundleno = 2 (0x2), region = 73 }

// kernel: _lambda_.28
= control target key start
LH: loop header
LB: loop body
LE: loop exit
PB: predicated region body
PF: predicated region fallthrough
CT: control target
= control target key end

     0   :  { %s538_s20 = smov 0   ;;  %s623_s0 = inlined_call_operand.vmem [shape: f32[2,32,16], index: 0, kind: input, shape index: {}]   ;;  %s624_s1 = inlined_call_operand.vmem [shape: f32[2,32,16], index: 1, kind: input, shape index: {}]   ;;  %s625_s2 = inlined_call_operand.vmem [shape: f32[32,1], index: 2, kind: input, shape index: {}]   ;;  %s626_s3 = inlined_call_operand.vmem [shape: f32[32,1], index: 3, kind: input, shape index: {}]   ;;  %s627_s4 = inlined_call_operand.<no memory space> [shape: f32[1], index: 4, kind: input, shape index: {}]   ;;  %s628_s5 = inlined_call_operand.vmem [shape: f32[2,32,16], index: 5, kind: output, shape index: {}]  }
   0x1   :  { %10 = sst [smem:[#allocation2]] %s627_s4 }
   0x2 LB: > { %s459_s21 = sadd.s32 4294967295, %s501_s20   ;;  %p463_p0 = scmp.ge.s32.totalorder %s501_s20, 1  ;;  %s501_s20 = sphi %s538_s20, %s16_s20  }
   0x3   : > { %p198_p1 = scmp.lt.s32.totalorder %s501_s20, 3 }
   0x5   : > { %p199_p2 = pnand %p463_p0, %p198_p1 }
   0x6   : > { %p231_p3 = scmp.lt.s32.totalorder (!%p199_p2), %s459_s21, 1  ;;  %v308_v0 = vld [vmem:[%s625_s2] sm:$0xff] (!%p199_p2)  ;;  %v503_v1 = vmov (!%p199_p2), 0   ;;  %v309_v2 = vld [vmem:[%s625_s2 + $0x8] sm:$0xff] (!%p199_p2)  ;;  %v311_v3 = vld [vmem:[%s625_s2 + $0x18] sm:$0xff] (!%p199_p2)  ;;  %vm258_vm0 = vcmask (!%p199_p2), 130048  }
   0x7   : > { %202 = sbr.rel (%p199_p2) target bundleno = 316 (0x13c), region = 40  ;;  %491 = vset.pattern.permute.xlu1 (!%p199_p2), %v503_v1  ;;  %492 = vset.pattern.permute.xlu0 (!%p199_p2), %v503_v1  ;;  %v346_v23 = vld [vmem:[%s626_s3] sm:$0xff] (!%p199_p2)  ;;  %v347_v34 = vld [vmem:[%s626_s3 + $0x8] sm:$0xff] (!%p199_p2)  ;;  %v348_v36 = vld [vmem:[%s626_s3 + $0x10] sm:$0xff] (!%p199_p2)  ;;  %s504_s26 = smov (!%p199_p2), 0.0  }
   0x8   : > { %319 = vperm.xlu1 (!%p199_p2), %491, %v308_v0   ;;  %v349_v37 = vld [vmem:[%s626_s3 + $0x18] sm:$0xff] (!%p199_p2)  ;;  %v310_v38 = vld [vmem:[%s625_s2 + $0x10] sm:$0xff] (!%p199_p2)  ;;  %s374_s29 = sld [smem:[#allocation2]] (!%p199_p2) }
   0xc   : > { %324 = vperm.xlu1 (!%p199_p2), %491, %v309_v2  }
   0xe   : > { %s630_s21 = smov (!%p231_p3, %s459_s21), 1 }
   0xf   : > { %s552_s25 = sshll.u32 %s630_s21, 5 }
  0x10   : > { %s235_s28 = scalar_lea.vmem %s623_s0, %s552_s25  ;;  %s240_s6 = scalar_lea.vmem %s624_s1, %s552_s25  ;;  %334 = vperm.xlu1 %491, %v311_v3  }
  0x11   : > { %v246_v4 = vld [vmem:[%s235_s28] sm:$0xff]  ;;  %v247_v5 = vld [vmem:[%s235_s28 + $0x8] sm:$0xff]  ;;  %v248_v6 = vld [vmem:[%s235_s28 + $0x10] sm:$0xff]  ;;  %s245_s8 = scalar_lea.vmem %s628_s5, %s552_s25 }
  0x12   : > { %v249_v7 = vld [vmem:[%s235_s28 + $0x18] sm:$0xff]  ;;  %v250_v8 = vld [vmem:[%s240_s6] sm:$0xff]  ;;  %v251_v9 = vld [vmem:[%s240_s6 + $0x8] sm:$0xff] }
  0x13   : > { %v252_v10 = vld [vmem:[%s240_s6 + $0x10] sm:$0xff]  ;;  %v253_v11 = vld [vmem:[%s240_s6 + $0x18] sm:$0xff]  ;;  %v565_v12 = vadd.f32 %v250_v8, %v246_v4  ;;  %v567_v13 = vadd.f32 %v251_v9, %v247_v5 }
  0x14   : > { %v569_v14 = vadd.f32 %v252_v10, %v248_v6  ;;  %v571_v15 = vadd.f32 %v253_v11, %v249_v7  ;;  %352 = vperm.xlu1 %491, %v346_v23  }
  0x15   : > { %v259_v16 = vsel %vm258_vm0, %v565_v12, 0.0  ;;  %v260_v17 = vsel %vm258_vm0, %v567_v13, 0.0  ;;  %v278_v18 = vmul.f32 %v565_v12, %v565_v12  ;;  %v279_v19 = vmul.f32 %v567_v13, %v567_v13 }
  0x16   : > { %v261_v20 = vadd.f32 %v260_v17, %v259_v16  ;;  %v262_v21 = vsel %vm258_vm0, %v569_v14, 0.0  ;;  %v280_v22 = vmul.f32 %v569_v14, %v569_v14  ;;  %v264_v24 = vsel %vm258_vm0, %v571_v15, 0.0 }
  0x17   : > { %v281_v25 = vmul.f32 %v571_v15, %v571_v15  ;;  %v282_v26 = vsel %vm258_vm0, %v278_v18, 0.0  ;;  %v283_v27 = vsel %vm258_vm0, %v279_v19, 0.0  ;;  %v379_v16 = vstv %s374_s29 }
  0x18   : > { %v263_v28 = vadd.f32 %v262_v21, %v261_v20  ;;  %v284_v29 = vadd.f32 %v283_v27, %v282_v26  ;;  %v285_v30 = vsel %vm258_vm0, %v280_v22, 0.0  ;;  %357 = vperm.xlu1 %491, %v347_v34  }
  0x19   : > { %v287_v31 = vsel %vm258_vm0, %v281_v25, 0.0 }
  0x1a   : > { %v265_v32 = vadd.f32 %v264_v24, %v263_v28  ;;  %v286_v33 = vadd.f32 %v285_v30, %v284_v29 }
  0x1c   : > { %266 = vadd.xlane.f32.xlu0 %v265_v32  ;;  %v288_v35 = vadd.f32 %v287_v31, %v286_v33  ;;  %362 = vperm.xlu1 %491, %v348_v36  }
  0x20   : > { %289 = vadd.xlane.f32.xlu0 %v288_v35  ;;  %367 = vperm.xlu1 %491, %v349_v37  }
  0x36   : > { %329 = vperm.xlu0 %492, %v310_v38  }
  0x87   : > { %v320_v55 = vpop.permute.xlu1 %319 }
  0x8b   : > { %v325_v56 = vpop.permute.xlu1 %324 }
  0x8f   : > { %v335_v57 = vpop.permute.xlu1 %334 }
  0x93   : > { %v353_v58 = vpop.permute.xlu1 %352 }
  0x97   : > { %v358_v59 = vpop.permute.xlu1 %357 }
  0x9b   : > { %v363_v2 = vpop.permute.xlu1 %362 }
  0xa9   : > { %v267_v39 = vpop.xlane.xlu0 %266 }
  0xaa   : > { %v268_v40 = vrot.slane %v267_v39, 4 }
  0xac   : > { %v269_v41 = vadd.f32 %v268_v40, %v267_v39 }
  0xad   : > { %v290_v42 = vpop.xlane.xlu0 %289 }
  0xae   : > { %v270_v43 = vrot.slane %v269_v41, 2  ;;  %v291_v44 = vrot.slane %v290_v42, 4 }
  0xb0   : > { %v292_v45 = vadd.f32 %v291_v44, %v290_v42  ;;  %v271_v46 = vadd.f32 %v270_v43, %v269_v41 }
  0xb2   : > { %v293_v47 = vrot.slane %v292_v45, 2  ;;  %v272_v48 = vrot.slane %v271_v46, 1 }
  0xb4   : > { %v273_v49 = vadd.f32 %v272_v48, %v271_v46  ;;  %v294_v50 = vadd.f32 %v293_v47, %v292_v45 }
  0xb5   : > { %v330_v1 = vpop.permute.xlu0 %329 }
  0xb6   : > { %475 = vpush %v273_v49  ;;  %v295_v51 = vrot.slane %v294_v50, 1 }
  0xb8   : > { %v296_v52 = vadd.f32 %v295_v51, %v294_v50 }
  0xba   : > { %477 = vpush %v296_v52 }
  0xe7   : > { %s476_s19 = spop %475 }
  0xe8   : > { %s277_s21 = smul.f32 0.001953125, %s476_s19 }
  0xea   : > { %s301_s22 = smul.f32 %s277_s21, %s277_s21  ;;  %v312_v60 = vstv %s277_s21 }
  0xeb   : > { %s478_s23 = spop %477  ;;  %v313_v61 = vsub.f32 %v565_v12, %v312_v60  ;;  %v314_v62 = vsub.f32 %v567_v13, %v312_v60  ;;  %v316_v63 = vsub.f32 %v571_v15, %v312_v60  ;;  %v315_v0 = vsub.f32 %v569_v14, %v312_v60  ;;  %v368_v12 = vpop.permute.xlu1 %367 }
  0xec   : > { %s300_s4 = smul.f32 0.001953125, %s478_s23 }
  0xed   : > { %v338_v3 = vmul.f32 %v325_v56, %v314_v62  ;;  %v340_v4 = vmul.f32 %v335_v57, %v316_v63  ;;  %v339_v5 = vmul.f32 %v330_v1, %v315_v0  ;;  %v337_v6 = vmul.f32 %v320_v55, %v313_v61 }
  0xee   : > { %s302_s24 = ssub.f32 %s300_s4, %s301_s22 }
  0xf0   : > { %s303_s27 = smax.f32 %s504_s26, %s302_s24 }
  0xf1   : > { %s304_s28 = sadd.f32 1e-08, %s303_s27 }
  0xf3   : > { %v305_v53 = vstv %s304_s28 }
  0xf4   : > { %493 = vrsqrt.f32 %v305_v53 }
  0xfe   : > { %v494_v54 = vpop.eup %493 }
  0xff   : > { %479 = vpush %v494_v54 }
 0x130   : > { %s480_s30 = spop %479 }
 0x131   : > { %v341_v7 = vstv %s480_s30 }
 0x132   : > { %v342_v8 = vmul.f32 %v341_v7, %v337_v6  ;;  %v343_v9 = vmul.f32 %v341_v7, %v338_v3  ;;  %v344_v10 = vmul.f32 %v341_v7, %v339_v5  ;;  %v345_v11 = vmul.f32 %v341_v7, %v340_v4 }
 0x134   : > { %v370_v13 = vadd.f32 %v353_v58, %v342_v8  ;;  %v371_v17 = vadd.f32 %v358_v59, %v343_v9  ;;  %v372_v15 = vadd.f32 %v363_v2, %v344_v10  ;;  %v373_v18 = vadd.f32 %v368_v12, %v345_v11 }
 0x136   : > { %vm375_vm1 = vcmp.ge.f32.partialorder %v370_v13, 0.0  ;;  %vm376_vm2 = vcmp.ge.f32.partialorder %v371_v17, 0.0  ;;  %vm377_vm3 = vcmp.ge.f32.partialorder %v372_v15, 0.0  ;;  %vm378_vm4 = vcmp.ge.f32.partialorder %v373_v18, 0.0 }
 0x137   : > { %v380_v14 = vmul.f32 %v379_v16, %v370_v13  ;;  %v381_v19 = vmul.f32 %v379_v16, %v371_v17  ;;  %v382_v20 = vmul.f32 %v379_v16, %v372_v15  ;;  %v383_v21 = vmul.f32 %v379_v16, %v373_v18 }
 0x139   : > { %v384_v22 = vsel %vm375_vm1, %v370_v13, %v380_v14  ;;  %v385_v23 = vsel %vm376_vm2, %v371_v17, %v381_v19  ;;  %v386_v24 = vsel %vm377_vm3, %v372_v15, %v382_v20  ;;  %v387_v25 = vsel %vm378_vm4, %v373_v18, %v383_v21 }
 0x13a   : > { %388 = vst.msk [vmem:[%s245_s8] sm:$0xff] %vm258_vm0, %v384_v22  ;;  %389 = vst.msk [vmem:[%s245_s8 + $0x8] sm:$0xff] %vm258_vm0, %v385_v23 }
 0x13b   : > { %390 = vst.msk [vmem:[%s245_s8 + $0x10] sm:$0xff] %vm258_vm0, %v386_v24  ;;  %391 = vst.msk [vmem:[%s245_s8 + $0x18] sm:$0xff] %vm258_vm0, %v387_v25 }
 0x13c PF: > { %s16_s20 = sadd.s32 1, %s501_s20  }
 0x13d   : > { %p13_p4 = scmp.ge.s32.totalorder %s16_s20, 4  }
 0x13f   :  { %15 = sbr.rel (!%p13_p4) target bundleno = 2 (0x2), region = 73 }

// kernel: _lambda_.29
= control target key start
LH: loop header
LB: loop body
LE: loop exit
PB: predicated region body
PF: predicated region fallthrough
CT: control target
= control target key end

     0   :  { %s786_s26 = smov 0   ;;  %s899_s0 = inlined_call_operand.vmem [shape: f32[2,32,32], index: 0, kind: input, shape index: {}]   ;;  %s900_s1 = inlined_call_operand.vmem [shape: f32[2,32,32], index: 1, kind: input, shape index: {}]   ;;  %s901_s2 = inlined_call_operand.vmem [shape: f32[32,64], index: 2, kind: input, shape index: {}]   ;;  %s902_s3 = inlined_call_operand.vmem [shape: f32[32,1], index: 3, kind: input, shape index: {}]   ;;  %s903_s4 = inlined_call_operand.vmem [shape: f32[32,1], index: 4, kind: input, shape index: {}]   ;;  %s904_s5 = inlined_call_operand.vmem [shape: f32[32,1], index: 5, kind: input, shape index: {}]   ;;  %s905_s6 = inlined_call_operand.<no memory space> [shape: f32[1], index: 6, kind: input, shape index: {}]   ;;  %s906_s7 = inlined_call_operand.vmem [shape: f32[2,32,32], index: 7, kind: output, shape index: {}]  }
   0x1   :  { %12 = sst [smem:[#allocation2]] %s905_s6 }
   0x2 LB: > { %s635_s27 = sadd.s32 4294967295, %s739_s26   ;;  %p639_p0 = scmp.ge.s32.totalorder %s739_s26, 1  ;;  %s739_s26 = sphi %s786_s26, %s18_s26  }
   0x3   : > { %p248_p1 = scmp.lt.s32.totalorder %s739_s26, 3 }
   0x5   : > { %p249_p2 = pnand %p639_p0, %p248_p1 }
   0x6   : > { %p285_p3 = scmp.lt.s32.totalorder (!%p249_p2), %s635_s27, 1  ;;  %v308_v0 = vld [vmem:[%s901_s2] sm:$0xff] (!%p249_p2)  ;;  %vm336_vm0 = vcmask (!%p249_p2), 523264   ;;  %v310_v1 = vld [vmem:[%s901_s2 + $0x10] sm:$0xff] (!%p249_p2)  ;;  %v741_v4 = vmov (!%p249_p2), 0   ;;  %v313_v5 = vld [vmem:[%s902_s3 + $0x8] sm:$0xff] (!%p249_p2) }
   0x7   : > { %252 = sbr.rel (%p249_p2) target bundleno = 545 (0x221), region = 48  ;;  %683 = vmatprep.mubr.msk.f32.mxu0 (!%p249_p2), %vm336_vm0, %v308_v0  ;;  %686 = vmatprep.mubr.msk.f32.mxu1 (!%p249_p2), %vm336_vm0, %v310_v1  ;;  %v312_v2 = vld [vmem:[%s902_s3] sm:$0xff] (!%p249_p2)  ;;  %v314_v3 = vld [vmem:[%s902_s3 + $0x10] sm:$0xff] (!%p249_p2)  ;;  %v315_v6 = vld [vmem:[%s902_s3 + $0x18] sm:$0xff] (!%p249_p2)  ;;  %vm434_vm1 = vcmask (!%p249_p2), 261120   ;;  %s742_s28 = smov (!%p249_p2), 0.0  }
   0x8   : > { %729 = vset.pattern.permute.xlu0 (!%p249_p2), %v741_v4  ;;  %730 = vset.pattern.permute.xlu1 (!%p249_p2), %v741_v4  ;;  %v309_v19 = vld [vmem:[%s901_s2 + $0x8] sm:$0xff] (!%p249_p2)  ;;  %v311_v20 = vld [vmem:[%s901_s2 + $0x18] sm:$0xff] (!%p249_p2)  ;;  %v484_v52 = vld [vmem:[%s903_s4] sm:$0xff] (!%p249_p2)  ;;  %s550_s30 = sld [smem:[#allocation2]] (!%p249_p2) }
   0x9   : > { %318 = vperm.xlu0 (!%p249_p2), %729, %v312_v2   ;;  %328 = vperm.xlu1 (!%p249_p2), %730, %v314_v3   ;;  %v485_v51 = vld [vmem:[%s903_s4 + $0x8] sm:$0xff] (!%p249_p2)  ;;  %v487_v53 = vld [vmem:[%s903_s4 + $0x18] sm:$0xff] (!%p249_p2)  ;;  %v486_v54 = vld [vmem:[%s903_s4 + $0x10] sm:$0xff] (!%p249_p2) }
   0xa   : > { %v523_v55 = vld [vmem:[%s904_s5 + $0x8] sm:$0xff] (!%p249_p2)  ;;  %v522_v56 = vld [vmem:[%s904_s5] sm:$0xff] (!%p249_p2)  ;;  %v525_v57 = vld [vmem:[%s904_s5 + $0x18] sm:$0xff] (!%p249_p2) }
   0xb   : > { %v524_v58 = vld [vmem:[%s904_s5 + $0x10] sm:$0xff] (!%p249_p2) }
   0xd   : > { %323 = vperm.xlu0 (!%p249_p2), %729, %v313_v5   ;;  %333 = vperm.xlu1 (!%p249_p2), %730, %v315_v6  }
   0xe   : > { %s908_s27 = smov (!%p285_p3, %s635_s27), 1 }
   0xf   : > { %s808_s12 = sshll.u32 %s908_s27, 5 }
  0x10   : > { %s289_s19 = scalar_lea.vmem %s899_s0, %s808_s12  ;;  %s294_s22 = scalar_lea.vmem %s900_s1, %s808_s12 }
  0x11   : > { %v300_v7 = vld [vmem:[%s289_s19] sm:$0xff]  ;;  %v301_v8 = vld [vmem:[%s289_s19 + $0x8] sm:$0xff]  ;;  %v302_v9 = vld [vmem:[%s289_s19 + $0x10] sm:$0xff]  ;;  %s299_s11 = scalar_lea.vmem %s906_s7, %s808_s12 }
  0x12   : > { %v689_v10 = vpack.c.bf16 %v301_v8, %v300_v7  ;;  %v303_v11 = vld [vmem:[%s289_s19 + $0x18] sm:$0xff]  ;;  %v304_v13 = vld [vmem:[%s294_s22] sm:$0xff]  ;;  %v305_v14 = vld [vmem:[%s294_s22 + $0x8] sm:$0xff] }
  0x13   : > { %v693_v12 = vpack.c.bf16 %v303_v11, %v302_v9  ;;  %v697_v15 = vpack.c.bf16 %v305_v14, %v304_v13  ;;  %v306_v16 = vld [vmem:[%s294_s22 + $0x10] sm:$0xff]  ;;  %v307_v17 = vld [vmem:[%s294_s22 + $0x18] sm:$0xff] }
  0x14   : > { %690 = vmatprep.subr.bf16.mxu0 %v689_v10  ;;  %705 = vmatprep.subr.bf16.mxu1 %v689_v10  ;;  %v701_v18 = vpack.c.bf16 %v307_v17, %v306_v16 }
  0x15   : > { %692 = vmatpush3.bf16.msra.mxu0 %v689_v10  ;;  %709 = vmatpush3.bf16.msra.mxu1 %v689_v10 }
  0x16   : > { %694 = vmatprep.subr.bf16.mxu0 %v693_v12  ;;  %706 = vmatprep.subr.bf16.mxu1 %v693_v12 }
  0x19   : > { %696 = vmatpush3.bf16.msra.mxu0 %v693_v12  ;;  %710 = vmatpush3.bf16.msra.mxu1 %v693_v12 }
  0x1a   : > { %698 = vmatprep.subr.bf16.mxu0 %v697_v15  ;;  %707 = vmatprep.subr.bf16.mxu1 %v697_v15 }
  0x1d   : > { %700 = vmatpush3.bf16.msra.mxu0 %v697_v15  ;;  %711 = vmatpush3.bf16.msra.mxu1 %v697_v15 }
  0x1e   : > { %702 = vmatprep.subr.bf16.mxu0 %v701_v18  ;;  %708 = vmatprep.subr.bf16.mxu1 %v701_v18 }
  0x21   : > { %704 = vmatpush3.bf16.msra.mxu0 %v701_v18  ;;  %712 = vmatpush3.bf16.msra.mxu1 %v701_v18 }
  0x24   : > { %684 = vmatmul.mubr.msk.f32.vlgmr.msra.gmra.mrb[0].mxu0 %vm336_vm0, %v309_v19  ;;  %687 = vmatmul.mubr.msk.f32.vlgmr.msra.gmra.mrb[0].mxu1 %vm336_vm0, %v311_v20 }
  0x88   : > { %v319_v21 = vpop.permute.xlu0 %318  ;;  %v329_v22 = vpop.permute.xlu1 %328 }
  0x8c   : > { %v324_v23 = vpop.permute.xlu0 %323  ;;  %v334_v24 = vpop.permute.xlu1 %333 }
  0xf7   : > { %v685_v25 = vpop.f32.mrb[0].mxu0  ;;  %v688_v26 = vpop.f32.mrb[0].mxu1 }
  0xf8   : > { %v832_v27 = vadd.f32 %v685_v25, %v324_v23  ;;  %v415_v28 = vpop.f32.mrb[1].mxu0  ;;  %v425_v29 = vpop.f32.mrb[1].mxu1  ;;  %v834_v30 = vadd.f32 %v688_v26, %v334_v24 }
  0xf9   : > { %v836_v31 = vadd.f32 %v415_v28, %v319_v21  ;;  %v838_v32 = vadd.f32 %v425_v29, %v329_v22 }
  0xfa   : > { %v436_v33 = vsel %vm434_vm1, %v832_v27, 0.0  ;;  %v455_v34 = vmul.f32 %v832_v27, %v832_v27  ;;  %v457_v41 = vmul.f32 %v834_v30, %v834_v30  ;;  %v440_v45 = vsel %vm434_vm1, %v834_v30, 0.0 }
  0xfb   : > { %v435_v35 = vsel %vm434_vm1, %v836_v31, 0.0  ;;  %v454_v36 = vmul.f32 %v836_v31, %v836_v31  ;;  %v456_v37 = vmul.f32 %v838_v32, %v838_v32  ;;  %v438_v40 = vsel %vm434_vm1, %v838_v32, 0.0 }
  0xfc   : > { %v437_v38 = vadd.f32 %v436_v33, %v435_v35  ;;  %v459_v39 = vsel %vm434_vm1, %v455_v34, 0.0  ;;  %v463_v49 = vsel %vm434_vm1, %v457_v41, 0.0 }
  0xfd   : > { %v458_v42 = vsel %vm434_vm1, %v454_v36, 0.0  ;;  %v461_v46 = vsel %vm434_vm1, %v456_v37, 0.0 }
  0xfe   : > { %v439_v43 = vadd.f32 %v438_v40, %v437_v38  ;;  %v460_v44 = vadd.f32 %v459_v39, %v458_v42 }
 0x100   : > { %v441_v47 = vadd.f32 %v440_v45, %v439_v43  ;;  %v462_v48 = vadd.f32 %v461_v46, %v460_v44 }
 0x102   : > { %442 = vadd.xlane.f32.xlu0 %v441_v47  ;;  %v464_v50 = vadd.f32 %v463_v49, %v462_v48 }
 0x104   : > { %465 = vadd.xlane.f32.xlu1 %v464_v50 }
 0x115   : > { %500 = vperm.xlu1 %730, %v485_v51  }
 0x118   : > { %495 = vperm.xlu0 %729, %v484_v52  }
 0x119   : > { %510 = vperm.xlu1 %730, %v487_v53  }
 0x11c   : > { %505 = vperm.xlu0 %729, %v486_v54  }
 0x11d   : > { %533 = vperm.xlu1 %730, %v523_v55  }
 0x120   : > { %528 = vperm.xlu0 %729, %v522_v56  }
 0x121   : > { %543 = vperm.xlu1 %730, %v525_v57  }
 0x124   : > { %538 = vperm.xlu0 %729, %v524_v58  }
 0x18f   : > { %v443_v59 = vpop.xlane.xlu0 %442 }
 0x190   : > { %v444_v60 = vrot.slane %v443_v59, 4 }
 0x191   : > { %v466_v61 = vpop.xlane.xlu1 %465 }
 0x192   : > { %v445_v62 = vadd.f32 %v444_v60, %v443_v59  ;;  %v467_v63 = vrot.slane %v466_v61, 4 }
 0x194   : > { %v446_v0 = vrot.slane %v445_v62, 2  ;;  %v468_v1 = vadd.f32 %v467_v63, %v466_v61 }
 0x195   : > { %v501_v11 = vpop.permute.xlu1 %500 }
 0x196   : > { %v469_v2 = vrot.slane %v468_v1, 2  ;;  %v447_v3 = vadd.f32 %v446_v0, %v445_v62 }
 0x197   : > { %v496_v12 = vpop.permute.xlu0 %495 }
 0x198   : > { %v448_v4 = vrot.slane %v447_v3, 1  ;;  %v470_v5 = vadd.f32 %v469_v2, %v468_v1 }
 0x199   : > { %v511_v13 = vpop.permute.xlu1 %510 }
 0x19a   : > { %v449_v6 = vadd.f32 %v448_v4, %v447_v3  ;;  %v471_v7 = vrot.slane %v470_v5, 1 }
 0x19b   : > { %v506_v14 = vpop.permute.xlu0 %505 }
 0x19c   : > { %713 = vpush %v449_v6  ;;  %v472_v8 = vadd.f32 %v471_v7, %v470_v5 }
 0x19d   : > { %v534_v20 = vpop.permute.xlu1 %533 }
 0x19e   : > { %715 = vpush %v472_v8 }
 0x19f   : > { %v529_v21 = vpop.permute.xlu0 %528 }
 0x1a3   : > { %v539_v35 = vpop.permute.xlu0 %538 }
 0x1cd   : > { %s714_s21 = spop %713 }
 0x1ce   : > { %s453_s22 = smul.f32 0.0009765625, %s714_s21 }
 0x1cf   : > { %s716_s23 = spop %715 }
 0x1d0   : > { %s477_s24 = smul.f32 %s453_s22, %s453_s22  ;;  %v488_v15 = vstv %s453_s22 }
 0x1d1   : > { %s476_s25 = smul.f32 0.0009765625, %s716_s23  ;;  %v489_v16 = vsub.f32 %v836_v31, %v488_v15  ;;  %v490_v17 = vsub.f32 %v832_v27, %v488_v15  ;;  %v491_v18 = vsub.f32 %v838_v32, %v488_v15  ;;  %v492_v19 = vsub.f32 %v834_v30, %v488_v15  ;;  %v544_v31 = vpop.permute.xlu1 %543 }
 0x1d2   : > { %v555_v27 = vstv %s550_s30 }
 0x1d3   : > { %s478_s27 = ssub.f32 %s476_s25, %s477_s24  ;;  %v513_v22 = vmul.f32 %v496_v12, %v489_v16  ;;  %v514_v23 = vmul.f32 %v501_v11, %v490_v17  ;;  %v515_v24 = vmul.f32 %v506_v14, %v491_v18  ;;  %v516_v25 = vmul.f32 %v511_v13, %v492_v19 }
 0x1d5   : > { %s479_s29 = smax.f32 %s742_s28, %s478_s27 }
 0x1d6   : > { %s480_s6 = sadd.f32 1e-08, %s479_s29 }
 0x1d8   : > { %v481_v9 = vstv %s480_s6 }
 0x1d9   : > { %731 = vrsqrt.f32 %v481_v9 }
 0x1e3   : > { %v732_v10 = vpop.eup %731 }
 0x1e4   : > { %717 = vpush %v732_v10 }
 0x215   : > { %s718_s8 = spop %717 }
 0x216   : > { %v517_v26 = vstv %s718_s8 }
 0x217   : > { %v518_v28 = vmul.f32 %v517_v26, %v513_v22  ;;  %v519_v29 = vmul.f32 %v517_v26, %v514_v23  ;;  %v520_v33 = vmul.f32 %v517_v26, %v515_v24  ;;  %v521_v34 = vmul.f32 %v517_v26, %v516_v25 }
 0x219   : > { %v546_v36 = vadd.f32 %v529_v21, %v518_v28  ;;  %v547_v32 = vadd.f32 %v534_v20, %v519_v29  ;;  %v548_v37 = vadd.f32 %v539_v35, %v520_v33  ;;  %v549_v30 = vadd.f32 %v544_v31, %v521_v34 }
 0x21b   : > { %vm551_vm2 = vcmp.ge.f32.partialorder %v546_v36, 0.0  ;;  %vm552_vm3 = vcmp.ge.f32.partialorder %v547_v32, 0.0  ;;  %vm553_vm4 = vcmp.ge.f32.partialorder %v548_v37, 0.0  ;;  %vm554_vm5 = vcmp.ge.f32.partialorder %v549_v30, 0.0 }
 0x21c   : > { %v556_v38 = vmul.f32 %v555_v27, %v546_v36  ;;  %v557_v39 = vmul.f32 %v555_v27, %v547_v32  ;;  %v558_v40 = vmul.f32 %v555_v27, %v548_v37  ;;  %v559_v41 = vmul.f32 %v555_v27, %v549_v30 }
 0x21e   : > { %v560_v42 = vsel %vm551_vm2, %v546_v36, %v556_v38  ;;  %v561_v43 = vsel %vm552_vm3, %v547_v32, %v557_v39  ;;  %v562_v44 = vsel %vm553_vm4, %v548_v37, %v558_v40  ;;  %v563_v45 = vsel %vm554_vm5, %v549_v30, %v559_v41 }
 0x21f   : > { %564 = vst.msk [vmem:[%s299_s11] sm:$0xff] %vm434_vm1, %v560_v42  ;;  %565 = vst.msk [vmem:[%s299_s11 + $0x8] sm:$0xff] %vm434_vm1, %v561_v43 }
 0x220   : > { %566 = vst.msk [vmem:[%s299_s11 + $0x10] sm:$0xff] %vm434_vm1, %v562_v44  ;;  %567 = vst.msk [vmem:[%s299_s11 + $0x18] sm:$0xff] %vm434_vm1, %v563_v45 }
 0x221 PF: > { %s18_s26 = sadd.s32 1, %s739_s26  }
 0x222   : > { %p15_p4 = scmp.ge.s32.totalorder %s18_s26, 4  }
 0x224   :  { %17 = sbr.rel (!%p15_p4) target bundleno = 2 (0x2), region = 81 }

// kernel: _lambda_.30
= control target key start
LH: loop header
LB: loop body
LE: loop exit
PB: predicated region body
PF: predicated region fallthrough
CT: control target
= control target key end

     0   :  { %s478_s15 = smov 0   ;;  %s514_s0 = inlined_call_operand.vmem [shape: f32[2,32,32], index: 0, kind: input, shape index: {}]   ;;  %s515_s1 = inlined_call_operand.vmem [shape: f32[16,32], index: 1, kind: input, shape index: {}]   ;;  %s516_s2 = inlined_call_operand.vmem [shape: f32[16,1], index: 2, kind: input, shape index: {}]   ;;  %s517_s3 = inlined_call_operand.vmem [shape: f32[2,16,32], index: 3, kind: input, shape index: {}]   ;;  %s518_s4 = inlined_call_operand.vmem [shape: f32[2,16,32], index: 4, kind: output, shape index: {}]  }
   0x1 LB: > { %s391_s16 = sadd.s32 4294967295, %s450_s15   ;;  %p395_p0 = scmp.ge.s32.totalorder %s450_s15, 1  ;;  %s450_s15 = sphi %s478_s15, %s14_s15  }
   0x2   : > { %p172_p1 = scmp.lt.s32.totalorder %s450_s15, 3 }
   0x4   : > { %p173_p2 = pnand %p395_p0, %p172_p1 }
   0x5   : > { %p203_p3 = scmp.lt.s32.totalorder (!%p173_p2), %s391_s16, 1  ;;  %v218_v0 = vld [vmem:[%s515_s1] sm:$0xff] (!%p173_p2)  ;;  %vm236_vm0 = vcmask (!%p173_p2), 261120   ;;  %v452_v2 = vmov (!%p173_p2), 0   ;;  %v225_v3 = vld [vmem:[%s516_s2 + $0x8] sm:$0xff] (!%p173_p2) }
   0x6   : > { %176 = sbr.rel (%p173_p2) target bundleno = 245 (0xf5), region = 36  ;;  %v224_v1 = vld [vmem:[%s516_s2] sm:$0xff] (!%p173_p2)  ;;  %423 = vmatprep.mubr.msk.f32.mxu0 (!%p173_p2), %vm236_vm0, %v218_v0  ;;  %443 = vset.pattern.permute.xlu0 (!%p173_p2), %v452_v2  ;;  %v219_v10 = vld [vmem:[%s515_s1 + $0x8] sm:$0xff] (!%p173_p2) }
   0x7   : > { %228 = vperm.xlu0 (!%p173_p2), %443, %v224_v1  }
   0xb   : > { %233 = vperm.xlu0 (!%p173_p2), %443, %v225_v3  }
   0xd   : > { %s520_s16 = smov (!%p203_p3, %s391_s16), 1 }
   0xe   : > { %s406_s23 = sshll.u32 %s520_s16, 5  ;;  %s407_s29 = sshll.u32 %s520_s16, 4 }
   0xf   : > { %s207_s26 = scalar_lea.vmem %s514_s0, %s406_s23  ;;  %s212_s6 = scalar_lea.vmem %s517_s3, %s407_s29 }
  0x10   : > { %v220_v4 = vld [vmem:[%s207_s26] sm:$0xff]  ;;  %v221_v5 = vld [vmem:[%s207_s26 + $0x8] sm:$0xff]  ;;  %v222_v6 = vld [vmem:[%s207_s26 + $0x10] sm:$0xff]  ;;  %s217_s9 = scalar_lea.vmem %s518_s4, %s407_s29 }
  0x11   : > { %v426_v7 = vpack.c.bf16 %v221_v5, %v220_v4  ;;  %v223_v8 = vld [vmem:[%s207_s26 + $0x18] sm:$0xff]  ;;  %v319_v14 = vld [vmem:[%s212_s6 + $0x8] sm:$0xff]  ;;  %v318_v17 = vld [vmem:[%s212_s6] sm:$0xff] }
  0x12   : > { %v430_v9 = vpack.c.bf16 %v223_v8, %v222_v6 }
  0x13   : > { %427 = vmatprep.subr.bf16.mxu0 %v426_v7 }
  0x14   : > { %429 = vmatpush3.bf16.msra.mxu0 %v426_v7 }
  0x15   : > { %431 = vmatprep.subr.bf16.mxu0 %v430_v9 }
  0x18   : > { %433 = vmatpush3.bf16.msra.mxu0 %v430_v9 }
  0x1b   : > { %424 = vmatmul.mubr.msk.f32.vlgmr.msra.gmra.mrb[0].mxu0 %vm236_vm0, %v219_v10 }
  0x86   : > { %v229_v11 = vpop.permute.xlu0 %228 }
  0x8a   : > { %v234_v12 = vpop.permute.xlu0 %233 }
  0xee   : > { %v425_v13 = vpop.f32.mrb[0].mxu0 }
  0xef   : > { %v315_v15 = vadd.f32 %v425_v13, %v234_v12  ;;  %v309_v16 = vpop.f32.mrb[1].mxu0 }
  0xf0   : > { %v310_v18 = vadd.f32 %v309_v16, %v229_v11 }
  0xf1   : > { %v321_v19 = vadd.f32 %v319_v14, %v315_v15 }
  0xf2   : > { %v320_v20 = vadd.f32 %v318_v17, %v310_v18 }
  0xf3   : > { %323 = vst.msk [vmem:[%s217_s9 + $0x8] sm:$0xff] %vm236_vm0, %v321_v19 }
  0xf4   : > { %322 = vst.msk [vmem:[%s217_s9] sm:$0xff] %vm236_vm0, %v320_v20 }
  0xf5 PF: > { %s14_s15 = sadd.s32 1, %s450_s15  }
  0xf6   : > { %p11_p4 = scmp.ge.s32.totalorder %s14_s15, 4  }
  0xf8   :  { %13 = sbr.rel (!%p11_p4) target bundleno = 1 (0x1), region = 69 }

// kernel: _lambda_.31
= control target key start
LH: loop header
LB: loop body
LE: loop exit
PB: predicated region body
PF: predicated region fallthrough
CT: control target
= control target key end

     0   :  { %s427_s20 = smov 0   ;;  %s459_s0 = inlined_call_operand.vmem [shape: f32[2,16,32], index: 0, kind: input, shape index: {}]   ;;  %s460_s1 = inlined_call_operand.vmem [shape: f32[2,16,32], index: 1, kind: input, shape index: {}]   ;;  %s461_s2 = inlined_call_operand.vmem [shape: f32[16,1], index: 2, kind: input, shape index: {}]   ;;  %s462_s3 = inlined_call_operand.vmem [shape: f32[16,1], index: 3, kind: input, shape index: {}]   ;;  %s463_s4 = inlined_call_operand.<no memory space> [shape: f32[1], index: 4, kind: input, shape index: {}]   ;;  %s464_s5 = inlined_call_operand.vmem [shape: f32[2,16,32], index: 5, kind: output, shape index: {}]  }
   0x1   :  { %10 = sst [smem:[#allocation2]] %s463_s4 }
   0x2 LB: > { %s358_s21 = sadd.s32 4294967295, %s391_s20   ;;  %p362_p0 = scmp.ge.s32.totalorder %s391_s20, 1  ;;  %s391_s20 = sphi %s427_s20, %s16_s20  }
   0x3   : > { %p198_p1 = scmp.lt.s32.totalorder %s391_s20, 3 }
   0x5   : > { %p199_p2 = pnand %p362_p0, %p198_p1 }
   0x6   : > { %v266_v0 = vld [vmem:[%s462_s3] sm:$0xff] (!%p199_p2)  ;;  %v393_v2 = vmov (!%p199_p2), 0   ;;  %v267_v3 = vld [vmem:[%s462_s3 + $0x8] sm:$0xff] (!%p199_p2)  ;;  %p231_p3 = scmp.lt.s32.totalorder (!%p199_p2), %s358_s21, 1  ;;  %s280_s11 = sld [smem:[#allocation2]] (!%p199_p2)  ;;  %vm288_vm0 = vcmask (!%p199_p2), 261120  }
   0x7   : > { %202 = sbr.rel (%p199_p2) target bundleno = 148 (0x94), region = 40  ;;  %v252_v1 = vld [vmem:[%s461_s2] sm:$0xff] (!%p199_p2)  ;;  %384 = vset.pattern.permute.xlu1 (!%p199_p2), %v393_v2  ;;  %383 = vset.pattern.permute.xlu0 (!%p199_p2), %v393_v2  ;;  %v253_v4 = vld [vmem:[%s461_s2 + $0x8] sm:$0xff] (!%p199_p2) }
   0x8   : > { %270 = vperm.xlu1 (!%p199_p2), %384, %v266_v0   ;;  %256 = vperm.xlu0 (!%p199_p2), %383, %v252_v1  }
   0xc   : > { %275 = vperm.xlu1 (!%p199_p2), %384, %v267_v3   ;;  %261 = vperm.xlu0 (!%p199_p2), %383, %v253_v4   ;;  %v283_v14 = vstv (!%p199_p2), %s280_s11 }
   0xe   : > { %s466_s21 = smov (!%p231_p3, %s358_s21), 1 }
   0xf   : > { %s371_s29 = sshll.u32 %s466_s21, 4 }
  0x10   : > { %s235_s7 = scalar_lea.vmem %s459_s0, %s371_s29  ;;  %s240_s10 = scalar_lea.vmem %s460_s1, %s371_s29 }
  0x11   : > { %v246_v5 = vld [vmem:[%s235_s7] sm:$0xff]  ;;  %v247_v8 = vld [vmem:[%s235_s7 + $0x8] sm:$0xff]  ;;  %s245_s14 = scalar_lea.vmem %s464_s5, %s371_s29 }
  0x12   : > { %v248_v6 = vld [vmem:[%s240_s10] sm:$0xff]  ;;  %v249_v9 = vld [vmem:[%s240_s10 + $0x8] sm:$0xff] }
  0x13   : > { %v250_v7 = vadd.f32 %v248_v6, %v246_v5  ;;  %v251_v13 = vadd.f32 %v249_v9, %v247_v8 }
  0x87   : > { %v271_v10 = vpop.permute.xlu1 %270  ;;  %v257_v11 = vpop.permute.xlu0 %256 }
  0x88   : > { %v264_v12 = vmul.f32 %v257_v11, %v250_v7 }
  0x8a   : > { %v278_v15 = vadd.f32 %v271_v10, %v264_v12 }
  0x8b   : > { %v262_v16 = vpop.permute.xlu0 %261  ;;  %v276_v19 = vpop.permute.xlu1 %275 }
  0x8c   : > { %vm281_vm1 = vcmp.ge.f32.partialorder %v278_v15, 0.0  ;;  %v284_v17 = vmul.f32 %v283_v14, %v278_v15  ;;  %v265_v18 = vmul.f32 %v262_v16, %v251_v13 }
  0x8e   : > { %v286_v20 = vsel %vm281_vm1, %v278_v15, %v284_v17  ;;  %v279_v21 = vadd.f32 %v276_v19, %v265_v18 }
  0x8f   : > { %289 = vst.msk [vmem:[%s245_s14] sm:$0xff] %vm288_vm0, %v286_v20 }
  0x90   : > { %vm282_vm2 = vcmp.ge.f32.partialorder %v279_v21, 0.0  ;;  %v285_v22 = vmul.f32 %v283_v14, %v279_v21 }
  0x92   : > { %v287_v23 = vsel %vm282_vm2, %v279_v21, %v285_v22 }
  0x93   : > { %290 = vst.msk [vmem:[%s245_s14 + $0x8] sm:$0xff] %vm288_vm0, %v287_v23 }
  0x94 PF: > { %s16_s20 = sadd.s32 1, %s391_s20  }
  0x95   : > { %p13_p4 = scmp.ge.s32.totalorder %s16_s20, 4  }
  0x97   :  { %15 = sbr.rel (!%p13_p4) target bundleno = 2 (0x2), region = 73 }

// kernel: _lambda_.40
= control target key start
LH: loop header
LB: loop body
LE: loop exit
PB: predicated region body
PF: predicated region fallthrough
CT: control target
= control target key end

     0   :  { %s647_s20 = smov 0   ;;  %s752_s0 = inlined_call_operand.vmem [shape: f32[2,16,32], index: 0, kind: input, shape index: {}]   ;;  %s753_s1 = inlined_call_operand.vmem [shape: f32[64,16], index: 1, kind: input, shape index: {}]   ;;  %s754_s2 = inlined_call_operand.vmem [shape: f32[64,1], index: 2, kind: input, shape index: {}]   ;;  %s755_s3 = inlined_call_operand.<no memory space> [shape: f32[1], index: 3, kind: input, shape index: {}]   ;;  %s756_s4 = inlined_call_operand.vmem [shape: f32[2,32,32], index: 4, kind: input, shape index: {}]   ;;  %s757_s5 = inlined_call_operand.vmem [shape: f32[2,64,32], index: 5, kind: output, shape index: {}]  }
   0x1   :  { %10 = sst [smem:[#allocation2]] %s755_s3 }
   0x2 LB: > { %s538_s21 = sadd.s32 4294967295, %s611_s20   ;;  %p542_p0 = scmp.ge.s32.totalorder %s611_s20, 1  ;;  %s611_s20 = sphi %s647_s20, %s16_s20  }
   0x3   : > { %p198_p1 = scmp.lt.s32.totalorder %s611_s20, 3 }
   0x5   : > { %p199_p2 = pnand %p542_p0, %p198_p1 }
   0x6   : > { %p231_p3 = scmp.lt.s32.totalorder (!%p199_p2), %s538_s21, 1  ;;  %s248_s22 = sld [smem:[#allocation2]] (!%p199_p2)  ;;  %v256_v0 = vld [vmem:[%s753_s1] sm:$0xff] (!%p199_p2)  ;;  %vm312_vm0 = vcmask (!%p199_p2), 130048   ;;  %v613_v2 = vmov (!%p199_p2), 0   ;;  %v266_v3 = vld [vmem:[%s754_s2 + $0x10] sm:$0xff] (!%p199_p2) }
   0x7   : > { %202 = sbr.rel (%p199_p2) target bundleno = 251 (0xfb), region = 40  ;;  %v260_v1 = vld [vmem:[%s753_s1 + $0x20] sm:$0xff] (!%p199_p2)  ;;  %576 = vmatprep.mubr.msk.f32.mxu0 (!%p199_p2), %vm312_vm0, %v256_v0  ;;  %604 = vset.pattern.permute.xlu1 (!%p199_p2), %v613_v2  ;;  %v267_v5 = vld [vmem:[%s754_s2 + $0x18] sm:$0xff] (!%p199_p2)  ;;  %v265_v6 = vld [vmem:[%s754_s2 + $0x8] sm:$0xff] (!%p199_p2)  ;;  %vm462_vm3 = vcmask (!%p199_p2), 261120  }
   0x8   : > { %582 = vmatprep.mubr.msk.f32.mxu1 (!%p199_p2), %vm312_vm0, %v260_v1  ;;  %603 = vset.pattern.permute.xlu0 (!%p199_p2), %v613_v2  ;;  %v264_v4 = vld [vmem:[%s754_s2] sm:$0xff] (!%p199_p2)  ;;  %v269_v15 = vld [vmem:[%s754_s2 + $0x28] sm:$0xff] (!%p199_p2)  ;;  %v258_v19 = vld [vmem:[%s753_s1 + $0x10] sm:$0xff] (!%p199_p2) }
   0x9   : > { %284 = vperm.xlu1 (!%p199_p2), %604, %v266_v3   ;;  %274 = vperm.xlu0 (!%p199_p2), %603, %v264_v4   ;;  %v268_v16 = vld [vmem:[%s754_s2 + $0x20] sm:$0xff] (!%p199_p2)  ;;  %v257_v17 = vld [vmem:[%s753_s1 + $0x8] sm:$0xff] (!%p199_p2)  ;;  %v262_v20 = vld [vmem:[%s753_s1 + $0x30] sm:$0xff] (!%p199_p2) }
   0xa   : > { %v261_v18 = vld [vmem:[%s753_s1 + $0x28] sm:$0xff] (!%p199_p2)  ;;  %v271_v21 = vld [vmem:[%s754_s2 + $0x38] sm:$0xff] (!%p199_p2)  ;;  %v270_v22 = vld [vmem:[%s754_s2 + $0x30] sm:$0xff] (!%p199_p2) }
   0xb   : > { %v259_v23 = vld [vmem:[%s753_s1 + $0x18] sm:$0xff] (!%p199_p2) }
   0xc   : > { %v251_v9 = vstv (!%p199_p2), %s248_s22  ;;  %v263_v24 = vld [vmem:[%s753_s1 + $0x38] sm:$0xff] (!%p199_p2) }
   0xd   : > { %289 = vperm.xlu1 (!%p199_p2), %604, %v267_v5   ;;  %279 = vperm.xlu0 (!%p199_p2), %603, %v265_v6  }
   0xe   : > { %s759_s21 = smov (!%p231_p3, %s538_s21), 1 }
   0xf   : > { %s559_s30 = sshll.u32 %s759_s21, 4  ;;  %s560_s9 = sshll.u32 %s759_s21, 5 }
  0x10   : > { %s235_s8 = scalar_lea.vmem %s752_s0, %s559_s30  ;;  %s721_s12 = scalar_lea.vmem %s756_s4, %s560_s9 }
  0x11   : > { %v246_v7 = vld [vmem:[%s235_s8] sm:$0xff]  ;;  %v247_v8 = vld [vmem:[%s235_s8 + $0x8] sm:$0xff]  ;;  %299 = vperm.xlu1 %604, %v269_v15   ;;  %294 = vperm.xlu0 %603, %v268_v16   ;;  %s561_s13 = sshll.u32 %s759_s21, 6  ;;  %v453_v57 = vld [vmem:[%s721_s12 + $0x18] sm:$0xff] }
  0x12   : > { %vm249_vm1 = vcmp.ge.f32.partialorder %v246_v7, 0.0  ;;  %vm250_vm2 = vcmp.ge.f32.partialorder %v247_v8, 0.0  ;;  %v252_v10 = vmul.f32 %v251_v9, %v246_v7  ;;  %v253_v11 = vmul.f32 %v251_v9, %v247_v8  ;;  %v451_v37 = vld [vmem:[%s721_s12 + $0x8] sm:$0xff]  ;;  %v450_v44 = vld [vmem:[%s721_s12] sm:$0xff]  ;;  %s729_s16 = scalar_lea.vmem %s757_s5, %s561_s13  ;;  %v452_v62 = vld [vmem:[%s721_s12 + $0x10] sm:$0xff] }
  0x14   : > { %v254_v12 = vsel %vm249_vm1, %v246_v7, %v252_v10  ;;  %v255_v13 = vsel %vm250_vm2, %v247_v8, %v253_v11 }
  0x15   : > { %v588_v14 = vpack.c.bf16 %v255_v13, %v254_v12  ;;  %309 = vperm.xlu1 %604, %v271_v21   ;;  %304 = vperm.xlu0 %603, %v270_v22  }
  0x17   : > { %589 = vmatprep.subr.bf16.mxu0 %v588_v14  ;;  %592 = vmatprep.subr.bf16.mxu1 %v588_v14 }
  0x18   : > { %591 = vmatpush3.bf16.msra.mxu0 %v588_v14  ;;  %593 = vmatpush3.bf16.msra.mxu1 %v588_v14 }
  0x1b   : > { %577 = vmatmul.mubr.msk.f32.vlgmr.msra.gmra.mrb[0].mxu0 %vm312_vm0, %v257_v17  ;;  %583 = vmatmul.mubr.msk.f32.vlgmr.msra.gmra.mrb[0].mxu1 %vm312_vm0, %v261_v18 }
  0x1c   : > { %579 = vmatprep.mubr.msk.f32.mxu0 %vm312_vm0, %v258_v19  ;;  %585 = vmatprep.mubr.msk.f32.mxu1 %vm312_vm0, %v262_v20 }
  0x1f   : > { %580 = vmatmul.mubr.msk.f32.gmra.mrb[2].mxu0 %vm312_vm0, %v259_v23  ;;  %586 = vmatmul.mubr.msk.f32.gmra.mrb[2].mxu1 %vm312_vm0, %v263_v24 }
  0x88   : > { %v285_v25 = vpop.permute.xlu1 %284  ;;  %v275_v26 = vpop.permute.xlu0 %274 }
  0x8c   : > { %v290_v27 = vpop.permute.xlu1 %289  ;;  %v280_v28 = vpop.permute.xlu0 %279 }
  0x90   : > { %v300_v29 = vpop.permute.xlu1 %299  ;;  %v295_v30 = vpop.permute.xlu0 %294 }
  0x94   : > { %v310_v40 = vpop.permute.xlu1 %309  ;;  %v305_v41 = vpop.permute.xlu0 %304 }
  0xee   : > { %v578_v31 = vpop.f32.mrb[0].mxu0  ;;  %v584_v32 = vpop.f32.mrb[0].mxu1 }
  0xef   : > { %v409_v33 = vadd.f32 %v578_v31, %v280_v28  ;;  %v429_v34 = vadd.f32 %v584_v32, %v300_v29  ;;  %v403_v35 = vpop.f32.mrb[1].mxu0  ;;  %v423_v36 = vpop.f32.mrb[1].mxu1 }
  0xf0   : > { %v404_v38 = vadd.f32 %v403_v35, %v275_v26  ;;  %v424_v39 = vadd.f32 %v423_v36, %v295_v30 }
  0xf1   : > { %v443_v42 = vmax.f32 %v409_v33, 0.0  ;;  %v447_v43 = vmax.f32 %v429_v34, 0.0 }
  0xf2   : > { %v442_v45 = vmax.f32 %v404_v38, 0.0  ;;  %v446_v46 = vmax.f32 %v424_v39, 0.0  ;;  %v581_v47 = vpop.f32.mrb[2].mxu0  ;;  %v587_v48 = vpop.f32.mrb[2].mxu1 }
  0xf3   : > { %v455_v49 = vmul.f32 %v451_v37, %v443_v42  ;;  %v459_v50 = vmul.f32 %v451_v37, %v447_v43  ;;  %v419_v51 = vadd.f32 %v581_v47, %v290_v27  ;;  %v439_v52 = vadd.f32 %v587_v48, %v310_v40  ;;  %v413_v53 = vpop.f32.mrb[3].mxu0  ;;  %v433_v54 = vpop.f32.mrb[3].mxu1 }
  0xf4   : > { %v454_v55 = vmul.f32 %v450_v44, %v442_v45  ;;  %v458_v56 = vmul.f32 %v450_v44, %v446_v46  ;;  %v414_v58 = vadd.f32 %v413_v53, %v285_v25  ;;  %v434_v59 = vadd.f32 %v433_v54, %v305_v41 }
  0xf5   : > { %464 = vst.msk [vmem:[%s729_s16 + $0x8] sm:$0xff] %vm462_vm3, %v455_v49  ;;  %468 = vst.msk [vmem:[%s729_s16 + $0x28] sm:$0xff] %vm462_vm3, %v459_v50  ;;  %v445_v60 = vmax.f32 %v419_v51, 0.0  ;;  %v449_v61 = vmax.f32 %v439_v52, 0.0 }
  0xf6   : > { %463 = vst.msk [vmem:[%s729_s16] sm:$0xff] %vm462_vm3, %v454_v55  ;;  %467 = vst.msk [vmem:[%s729_s16 + $0x20] sm:$0xff] %vm462_vm3, %v458_v56  ;;  %v444_v63 = vmax.f32 %v414_v58, 0.0  ;;  %v448_v0 = vmax.f32 %v434_v59, 0.0 }
  0xf7   : > { %v457_v1 = vmul.f32 %v453_v57, %v445_v60  ;;  %v461_v2 = vmul.f32 %v453_v57, %v449_v61 }
  0xf8   : > { %v456_v3 = vmul.f32 %v452_v62, %v444_v63  ;;  %v460_v4 = vmul.f32 %v452_v62, %v448_v0 }
  0xf9   : > { %466 = vst.msk [vmem:[%s729_s16 + $0x18] sm:$0xff] %vm462_vm3, %v457_v1  ;;  %470 = vst.msk [vmem:[%s729_s16 + $0x38] sm:$0xff] %vm462_vm3, %v461_v2 }
  0xfa   : > { %465 = vst.msk [vmem:[%s729_s16 + $0x10] sm:$0xff] %vm462_vm3, %v456_v3  ;;  %469 = vst.msk [vmem:[%s729_s16 + $0x30] sm:$0xff] %vm462_vm3, %v460_v4 }
  0xfb PF: > { %s16_s20 = sadd.s32 1, %s611_s20  }
  0xfc   : > { %p13_p4 = scmp.ge.s32.totalorder %s16_s20, 4  }
  0xfe   :  { %15 = sbr.rel (!%p13_p4) target bundleno = 2 (0x2), region = 73 }

// kernel: _lambda_.41
= control target key start
LH: loop header
LB: loop body
LE: loop exit
PB: predicated region body
PF: predicated region fallthrough
CT: control target
= control target key end

     0   :  { %7 = vsyncpa [#allocation3], 0  ;;  %s916_s0 = inlined_call_operand.vmem [shape: f32[2,320,64], index: 0, kind: input, shape index: {}]   ;;  %s917_s1 = inlined_call_operand.vmem [shape: f32[2,320], index: 1, kind: input, shape index: {}]   ;;  %s918_s2 = inlined_call_operand.hbm [shape: f32[2,2,64], index: 2, kind: output, shape index: {}]  }
   0x1   :  { %9 = vsyncpa [#allocation3 + $0x1], 0  ;;  %s741_s9 = smov 0   ;;  %s743_s10 = smov 0  }
   0x2   :  { %s745_s11 = smov 0   ;;  %s747_s12 = smov 0  }
   0x3   :  { %s749_s13 = smov 0   ;;  %s751_s14 = smov 0  }
   0x4 LB: > { %s461_s15 = sadd.s32 4294967295, %s719_s14   ;;  %s462_s16 = sadd.s32 4294967294, %s719_s14   ;;  %s719_s14 = sphi %s751_s14, %s15_s14   ;;  %s715_s13 = sphi %s749_s13, %s925_s13   ;;  %s711_s12 = sphi %s747_s12, %s924_s12   ;;  %s707_s11 = sphi %s745_s11, %s923_s11   ;;  %s703_s10 = sphi %s743_s10, %s922_s10   ;;  %s699_s9 = sphi %s741_s9, %s921_s9  }
   0x5   : > { %s27_s17 = sadd.s32 1, %s715_s13  ;;  %s85_s18 = sadd.s32 1, %s707_s11 }
   0x6   : > { %p29_p0 = scmp.ge.s32.totalorder %s27_s17, 2  ;;  %p95_p1 = scmp.ne.s32.totalorder %s707_s11, %s703_s10 }
   0x7   : > { %p96_p2 = scmp.eq.s32.totalorder %s461_s15, 1  ;;  %p101_p3 = scmp.ne.s32.totalorder %s703_s10, %s699_s9 }
   0x8   : > { %s927_s17 = smov (%p29_p0, %s27_s17), 0  ;;  %p102_p5 = scmp.eq.s32.totalorder %s462_s16, 1 }
   0x9   : > { %p781_p4 = por %p96_p2, %p95_p1  ;;  %s80_s20 = ssub.s32 %s715_s13, %s927_s17 }
   0xa   : > { %p465_p6 = scmp.ge.s32.totalorder %s719_s14, 1  ;;  %p83_p7 = scmp.eq.s32.totalorder %s80_s20, 0 }
   0xb   : > { %p788_p8 = por %p102_p5, %p101_p3  ;;  %p134_p9 = scmp.lt.s32.totalorder %s719_s14, 3 }
   0xc   : > { %s794_s22 = scalar_select %p83_p7, %s707_s11, %s85_s18  }
   0xd   : > { %p135_p10 = pnand %p465_p6, %p134_p9 }
   0xe   : > { %p159_p11 = scmp.lt.s32.totalorder (!%p135_p10), %s711_s12, 1  ;;  %v213_v0 = vlaneseq (!%p135_p10)  ;;  %v721_v1 = vmov (!%p135_p10), 0.0|0.0   ;;  %v722_v2 = vmov (!%p135_p10), 1983009808   ;;  %vm723_vm0 = vmmov (!%p135_p10), 0   ;;  %s156_s30 = sand.u32 (!%p135_p10), 1, %s703_s10  }
   0xf   : > { %138 = sbr.rel (%p135_p10) target bundleno = 293 (0x125), region = 28  ;;  %568 = vmatprep.subr.bf16.mxu1 (!%p135_p10), %v721_v1  ;;  %v211_v3 = vunpack.c.l.s4 (!%p135_p10), %v722_v2  ;;  %v724_v5 = vmov (!%p135_p10), 0.0   ;;  %v802_v7 = vld [vmem:[%s917_s1] sm:$0x3f] (!%p135_p10)  ;;  %vm227_vm1 = vcmask (!%p135_p10), 523264   ;;  %s466_s3 = sshll.u32 (!%p135_p10), %s156_s30, 1 }
  0x10   : > { %v214_v4 = vshrl.u32 (!%p135_p10), %v213_v0, 7  ;;  %533 = vmatprep.mubr.msk.f32.mxu1 (!%p135_p10), %vm723_vm0, %v724_v5  ;;  %v209_v57 = vcombine.high (!%p135_p10), %v802_v7, %v802_v7  ;;  %s470_s4 = sshll.u32 (!%p135_p10), %s711_s12, 5  ;;  %s158_s5 = scalar_lea.vmem (!%p135_p10), [#allocation2], %s466_s3  ;;  %vm370_vm2 = vcmask (!%p135_p10), 517120  }
  0x11   : > { %v212_v6 = vunpack.c.0.s8 (!%p135_p10), %v211_v3  ;;  %s387_s6 = sshll.u32 (!%p135_p10), %s158_s5, 4  ;;  %s869_s15 = scalar_lea.hbm (!%p135_p10), %s918_s2, %s470_s4  ;;  %s871_s6 = int_to_ptr.vmem [resolvable:$true] %s387_s6 }
  0x12   : > { %s373_s16 = scalar_lea.sflag (!%p135_p10), [#allocation3], %s156_s30  ;;  %s641_s18 = scalar_lea.vmem (!%p135_p10), %s871_s6, 32 }
  0x13   : > { %v804_v8 = vsub.s32 (!%p135_p10), %v212_v6, %v214_v4  ;;  %p642_p12 = scmp.ne.s32.totalorder (!%p135_p10), %s871_s6, %s641_s18 }
  0x15   : > { %v816_v12 = vrot.slane (!%p135_p10), %v802_v7, %v804_v8  ;;  %v223_v2 = vrot.slane (!%p135_p10), %v209_v57, %v804_v8  ;;  %p643_p13 = pnand (!%p135_p10), %p642_p12, %p781_p4 }
  0x16   : > { %s160_s23 = scalar_select %p159_p11, %s711_s12, 1 }
  0x17   : > { %v224_v22 = vcombine.high %v816_v12, %v816_v12  ;;  %p644_p0 = pneg %p643_p13  ;;  %s725_s12 = smov [#allocation2]  }
  0x18   : > { %s580_s24 = smul.u32 320, %s160_s23  ;;  %s645_s20 = sshll.u32 %s725_s12, 4  ;;  %s646_s20 = int_to_ptr.vmem [resolvable:$false] %s645_s20 }
  0x19   : > { %294 = vmatprep.mubr.f32.mxu0 %v224_v22  ;;  %s647_s23 = scalar_lea.vmem %s646_s20, 64  ;;  %p648_p1 = scmp.lt.s32.totalorder %s871_s6, %s646_s20 }
  0x1a   : > { %s809_s29 = scalar_lea.vmem %s916_s0, %s580_s24  ;;  %p649_p2 = scmp.lt.s32.totalorder %s647_s23, %s641_s18 }
  0x1b   : > { %v184_v9 = vld [vmem:[%s809_s29 + $0x80] sm:$0xff]  ;;  %v185_v10 = vld [vmem:[%s809_s29 + $0x88] sm:$0xff]  ;;  %v186_v15 = vld [vmem:[%s809_s29 + $0x90] sm:$0xff] }
  0x1c   : > { %v168_v11 = vld [vmem:[%s809_s29] sm:$0xff]  ;;  %v536_v13 = vpack.c.bf16 %v185_v10, %v184_v9  ;;  %v169_v14 = vld [vmem:[%s809_s29 + $0x8] sm:$0xff]  ;;  %v187_v16 = vld [vmem:[%s809_s29 + $0x98] sm:$0xff]  ;;  %p650_p3 = por %p649_p2, %p648_p1 }
  0x1d   : > { %v538_v17 = vpack.c.bf16 %v169_v14, %v168_v11  ;;  %v540_v18 = vpack.c.bf16 %v187_v16, %v186_v15  ;;  %v170_v19 = vld [vmem:[%s809_s29 + $0x10] sm:$0xff]  ;;  %v171_v20 = vld [vmem:[%s809_s29 + $0x18] sm:$0xff]  ;;  %v188_v21 = vld [vmem:[%s809_s29 + $0xa0] sm:$0xff] }
  0x1e   : > { %537 = vmatprep.subr.bf16.mxu0 %v536_v13  ;;  %v189_v23 = vld [vmem:[%s809_s29 + $0xa8] sm:$0xff]  ;;  %v542_v24 = vpack.c.bf16 %v171_v20, %v170_v19  ;;  %v172_v26 = vld [vmem:[%s809_s29 + $0x20] sm:$0xff]  ;;  %v190_v28 = vld [vmem:[%s809_s29 + $0xb0] sm:$0xff]  ;;  %p651_p5 = pnand %p650_p3, %p644_p0 }
  0x1f   : > { %539 = vmatpush3.bf16.msra.mxu0 %v538_v17  ;;  %v544_v25 = vpack.c.bf16 %v189_v23, %v188_v21  ;;  %v173_v27 = vld [vmem:[%s809_s29 + $0x28] sm:$0xff]  ;;  %v191_v29 = vld [vmem:[%s809_s29 + $0xb8] sm:$0xff]  ;;  %v200_v30 = vld [vmem:[%s809_s29 + $0x100] sm:$0xff] }
  0x20   : > { %541 = vmatprep.subr.bf16.mxu0 %v540_v18  ;;  %v201_v31 = vld [vmem:[%s809_s29 + $0x108] sm:$0xff]  ;;  %v546_v32 = vpack.c.bf16 %v173_v27, %v172_v26  ;;  %v202_v34 = vld [vmem:[%s809_s29 + $0x110] sm:$0xff]  ;;  %v548_v35 = vpack.c.bf16 %v191_v29, %v190_v28  ;;  %v175_v37 = vld [vmem:[%s809_s29 + $0x38] sm:$0xff] }
  0x21   : > { %v569_v33 = vpack.c.bf16 %v201_v31, %v200_v30  ;;  %v174_v36 = vld [vmem:[%s809_s29 + $0x30] sm:$0xff]  ;;  %v203_v38 = vld [vmem:[%s809_s29 + $0x118] sm:$0xff]  ;;  %v192_v39 = vld [vmem:[%s809_s29 + $0xc0] sm:$0xff] }
  0x22   : > { %v193_v40 = vld [vmem:[%s809_s29 + $0xc8] sm:$0xff]  ;;  %v572_v41 = vpack.c.bf16 %v203_v38, %v202_v34  ;;  %v204_v42 = vld [vmem:[%s809_s29 + $0x120] sm:$0xff]  ;;  %v550_v44 = vpack.c.bf16 %v175_v37, %v174_v36  ;;  %v194_v48 = vld [vmem:[%s809_s29 + $0xd0] sm:$0xff] }
  0x23   : > { %543 = vmatpush3.bf16.msra.mxu0 %v542_v24  ;;  %570 = vmatpush3.bf16.msra.mxu1 %v569_v33  ;;  %v205_v43 = vld [vmem:[%s809_s29 + $0x128] sm:$0xff]  ;;  %v552_v45 = vpack.c.bf16 %v193_v40, %v192_v39  ;;  %v176_v46 = vld [vmem:[%s809_s29 + $0x40] sm:$0xff]  ;;  %v195_v49 = vld [vmem:[%s809_s29 + $0xd8] sm:$0xff] }
  0x24   : > { %545 = vmatprep.subr.bf16.mxu0 %v544_v25  ;;  %571 = vmatprep.subr.bf16.mxu1 %v721_v1  ;;  %v177_v47 = vld [vmem:[%s809_s29 + $0x48] sm:$0xff]  ;;  %v575_v50 = vpack.c.bf16 %v205_v43, %v204_v42  ;;  %v206_v51 = vld [vmem:[%s809_s29 + $0x130] sm:$0xff]  ;;  %v207_v52 = vld [vmem:[%s809_s29 + $0x138] sm:$0xff]  ;;  %v556_v54 = vpack.c.bf16 %v195_v49, %v194_v48 }
  0x25   : > { %v554_v53 = vpack.c.bf16 %v177_v47, %v176_v46  ;;  %v178_v55 = vld [vmem:[%s809_s29 + $0x50] sm:$0xff]  ;;  %v179_v56 = vld [vmem:[%s809_s29 + $0x58] sm:$0xff]  ;;  %v196_v58 = vld [vmem:[%s809_s29 + $0xe0] sm:$0xff]  ;;  %v578_v60 = vpack.c.bf16 %v207_v52, %v206_v51 }
  0x26   : > { %v197_v59 = vld [vmem:[%s809_s29 + $0xe8] sm:$0xff]  ;;  %v558_v61 = vpack.c.bf16 %v179_v56, %v178_v55  ;;  %v180_v63 = vld [vmem:[%s809_s29 + $0x60] sm:$0xff]  ;;  %v198_v3 = vld [vmem:[%s809_s29 + $0xf0] sm:$0xff] }
  0x27   : > { %547 = vmatpush3.bf16.msra.mxu0 %v546_v32  ;;  %573 = vmatpush3.bf16.msra.mxu1 %v572_v41  ;;  %v560_v62 = vpack.c.bf16 %v197_v59, %v196_v58  ;;  %v181_v0 = vld [vmem:[%s809_s29 + $0x68] sm:$0xff]  ;;  %v199_v4 = vld [vmem:[%s809_s29 + $0xf8] sm:$0xff]  ;;  %v182_v6 = vld [vmem:[%s809_s29 + $0x70] sm:$0xff] }
  0x28   : > { %549 = vmatprep.subr.bf16.mxu0 %v548_v35  ;;  %574 = vmatprep.subr.bf16.mxu1 %v721_v1  ;;  %v562_v5 = vpack.c.bf16 %v181_v0, %v180_v63  ;;  %v183_v7 = vld [vmem:[%s809_s29 + $0x78] sm:$0xff] }
  0x29   : > { %v566_v9 = vpack.c.bf16 %v183_v7, %v182_v6 }
  0x2b   : > { %551 = vmatpush3.bf16.msra.mxu0 %v550_v44  ;;  %576 = vmatpush3.bf16.msra.mxu1 %v575_v50 }
  0x2c   : > { %553 = vmatprep.subr.bf16.mxu0 %v552_v45  ;;  %577 = vmatprep.subr.bf16.mxu1 %v721_v1  ;;  %v564_v1 = vpack.c.bf16 %v199_v4, %v198_v3 }
  0x2f   : > { %555 = vmatpush3.bf16.msra.mxu0 %v554_v53  ;;  %579 = vmatpush3.bf16.msra.mxu1 %v578_v60 }
  0x30   : > { %557 = vmatprep.subr.bf16.mxu0 %v556_v54 }
  0x32   : > { %534 = vmatmul.mubr.msk.f32.vlgmr.msra.gmra.mrb[0].mxu1 %vm227_vm1, %v223_v2 }
  0x33   : > { %559 = vmatpush3.bf16.msra.mxu0 %v558_v61 }
  0x34   : > { %561 = vmatprep.subr.bf16.mxu0 %v560_v62 }
  0x37   : > { %563 = vmatpush3.bf16.msra.mxu0 %v562_v5 }
  0x38   : > { %565 = vmatprep.subr.bf16.mxu0 %v564_v1 }
  0x3b   : > { %567 = vmatpush3.bf16.msra.mxu0 %v566_v9 }
  0x3e   : > { %295 = vmatmul.mubr.f32.vlgmr.msra.gmra.mrb[0].mxu0 %v816_v12 }
 0x105   : > { %v366_v8 = vpop.f32.mrb[0].mxu1 }
 0x106   : > { %v535_v10 = vpop.f32.mrb[1].mxu1 }
 0x111   : > { %v505_v11 = vpop.f32.mrb[0].mxu0 }
 0x112   : > { %v506_v13 = vpop.f32.mrb[1].mxu0 }
 0x113   : > { %v507_v14 = vadd.f32 %v506_v13, %v505_v11 }
 0x115   : > { %v367_v15 = vadd.f32 %v507_v14, %v366_v8 }
 0x117   : > { %371 = vst.msk [vmem:[%s158_s5] sm:$0x3] %vm370_vm2, %v367_v15 }
 0x118   : > { %654 = shalt.err (!%p651_p5)
}
 0x119   : > { %s655_s24 = scalar_lea.hbm %s869_s15, 32  ;;  %s659_s27 = scalar_lea.hbm %s918_s2, 64 }
 0x11a   : > { %p656_p6 = scmp.ne.s32.totalorder %s869_s15, %s655_s24  ;;  %p660_p10 = scmp.lt.u32.totalorder %s869_s15, %s918_s2 }
 0x11b   : > { %p661_p11 = scmp.lt.u32.totalorder %s659_s27, %s655_s24  ;;  %p663_p13 = scmp.lt.u32.totalorder %s655_s24, %s869_s15 }
 0x11c   : > { %p657_p7 = pnand %p656_p6, %p781_p4 }
 0x11d   : > { %p662_p12 = por %p661_p11, %p660_p10 }
 0x11e   : > { %p658_p9 = pneg %p657_p7 }
 0x11f   : > { %p664_p0 = por %p663_p13, %p662_p12 }
 0x121   : > { %p665_p1 = pnand %p664_p0, %p658_p9 }
 0x123   : > { %668 = shalt.err (!%p665_p1)
}
 0x124   : > { %581 = dma.vmem_to_hbm [thread:$0]  (%p781_p4), %s871_s6, 32, %s869_s15, %s373_s16  }
 0x125 PF: > { %p587_p2 = scmp.ge.s32.totalorder %s719_s14, 2  ;;  %s399_s30 = sand.u32 1, %s699_s9  }
 0x126   : > { %s400_s3 = scalar_lea.sflag [#allocation3], %s399_s30 }
 0x127   : > { %p584_p3 = pnand %p587_p2, %p788_p8 }
 0x129   : > { %694 = dma.done.wait (!%p584_p3), %s400_s3, 32  }
 0x12a   : > { %696 = vsyncadd (!%p584_p3), %s400_s3, 4294967264  ;;  %s15_s14 = sadd.s32 1, %s719_s14   ;;  %s921_s9 = smov %s703_s10 }
 0x12b   : > { %p12_p5 = scmp.ge.s32.totalorder %s15_s14, 4   ;;  %s922_s10 = smov %s707_s11 }
 0x12c   : > { %s923_s11 = smov %s794_s22  ;;  %s924_s12 = smov %s715_s13 }
 0x12d   : > { %s925_s13 = smov %s927_s17  ;;  %14 = sbr.rel (!%p12_p5) target bundleno = 4 (0x4), region = 63 }
 0x134   :  { %405 = vsyncpa [#allocation3], 1 }
 0x135   :  { %407 = vsyncpa [#allocation3 + $0x1], 1 }

</bundles_post_ra>
